<compile_context>
chip_gen: v7x
topology: tpu7x:2x2x1
jax: 0.10.0
libtpu: 0.0.40
codegen_flags: <defaults>
</compile_context>

<pallas_src>
import jax
import jax.numpy as jnp
import numpy as np
from jax.experimental import pallas as pl
from jax.experimental.pallas import tpu as pltpu


# --------------------------------------------------------------------------
# in-kernel helpers
# --------------------------------------------------------------------------
def _halo_conv(x_ref, w_ref, xpad_ref):
    """3x3 / stride-1 / pad-1 conv on one (Nb, H, W, Cin) NHWC block.

    Builds the 1-px zero halo in a VMEM scratch (no wrapper jnp.pad HBM pass)
    and contracts with 9 accumulated MXU matmuls (no im2col concat, no
    lane-sparse (rows, 9*Cin) slab).  f32 accumulation.
    Returns (Nb*H*W, Cpad) float32.
    """
    Nb, H, W, Cin = x_ref.shape
    Cpad = w_ref.shape[-1]
    rows = Nb * H * W

    # Zero halo + interior copy.  Re-zeroed every step (cheap, tile-sized) so
    # the kernel stays correct when the grid axis is split across megacore TCs.
    xpad_ref[...] = jnp.zeros_like(xpad_ref)
    xpad_ref[:, 1:H + 1, 1:W + 1, :] = x_ref[...]
    xpad = xpad_ref[...]                                     # (Nb, H+2, W+2, Cin)

    acc = jnp.zeros((rows, Cpad), jnp.float32)
    for kh in range(3):
        for kw in range(3):
            tap = xpad[:, kh:kh + H, kw:kw + W, :]           # (Nb, H, W, Cin)
            acc = acc + jnp.dot(tap.reshape(rows, Cin), w_ref[kh * 3 + kw],
                                preferred_element_type=jnp.float32)
    return acc


def conv_stats_kernel(x_ref, w_ref, stats_ref, xpad_ref):
    # x_ref    : (Nb, H, W, Cin)      un-padded NHWC image block
    # w_ref    : (9, Cin, Cpad)       resident conv weight (tap-major)
    # stats_ref: (1, 2, Cpad)         per-block [sum, sum of squares]
    # xpad_ref : (Nb, H+2, W+2, Cin)  VMEM halo scratch
    conv = _halo_conv(x_ref, w_ref, xpad_ref)                # (rows, Cpad) f32
    s = jnp.sum(conv, axis=0, keepdims=True)
    ss = jnp.sum(conv * conv, axis=0, keepdims=True)
    stats_ref[...] = jnp.concatenate([s, ss], axis=0)[None]  # (1, 2, Cpad)


def conv_bn_relu_kernel(x_ref, w_ref, shift_ref, out_ref, xpad_ref):
    # x_ref    : (Nb, H, W, Cin)
    # w_ref    : (9, Cin, Cpad)       BN scale already folded into the weight
    # shift_ref: (1, Cpad)            beta - mean * scale
    # out_ref  : (Nb*H*W, Cpad)       lane-dense output block
    conv = _halo_conv(x_ref, w_ref, xpad_ref)                # (rows, Cpad) f32
    out_ref[...] = jnp.maximum(conv + shift_ref[...], 0.0).astype(out_ref.dtype)


# --------------------------------------------------------------------------
# wrapper helpers
# --------------------------------------------------------------------------
def _padded_vmem_bytes(shape, dtype):
    """VMEM footprint of an array including (sublane x 128-lane) tile padding."""
    itemsize = jnp.dtype(dtype).itemsize
    shape = tuple(int(d) for d in shape)
    if len(shape) < 2:
        shape = (1,) * (2 - len(shape)) + shape
    lead = 1
    for d in shape[:-2]:
        lead *= d
    sub, lane = shape[-2], shape[-1]
    sub_tile = 8 * max(1, 4 // itemsize)       # 8 f32 / 16 bf16 / 32 int8
    sub_p = -(-sub // sub_tile) * sub_tile
    lane_p = -(-lane // 128) * 128
    return lead * sub_p * lane_p * itemsize


def _vmem_cap_bytes():
    """~70% of the running chip's physical VMEM (fallback: v7x's 64 MiB)."""
    try:
        phys = int(pltpu.get_tpu_info().vmem_capacity_bytes)
    except Exception:
        phys = 0
    if phys <= 0:
        phys = 64 * 2**20
    return int(0.70 * phys)


# --------------------------------------------------------------------------
# NHWC-native forward
# --------------------------------------------------------------------------
def conv_bn_relu_nhwc(x_nhwc, weight_oihw, gamma, beta, *, eps=1e-5,
                      compute_dtype=jnp.float32, out_dtype=None):
    """Forward pass of BasicBlock1_1w4a_B (stride=1), NHWC in -> NHWC out.

    compute_dtype: MXU operand dtype (bf16 for throughput on v5e/v6e/v7x).
    out_dtype:     activation store dtype (bf16 halves the dominant HBM write).
    Accumulation and the BN epilogue stay float32 on every generation.
    """
    if out_dtype is None:
        out_dtype = x_nhwc.dtype
    N, H, W, Cin = x_nhwc.shape
    Cout = weight_oihw.shape[0]
    Cpad = 128 * pl.cdiv(Cout, 128)                          # lane-dense Cout
    rows_img = H * W

    # --- weight to tap-major (9, Cin, Cpad) layout (tiny O(9*Cin*Cout) work) --
    w_hwio = jnp.transpose(weight_oihw, (2, 3, 1, 0))        # (3,3,Cin,Cout)
    w3 = w_hwio.reshape(9, Cin, Cout).astype(jnp.float32)
    w3 = jnp.pad(w3, ((0, 0), (0, 0), (0, Cpad - Cout)))

    x_c = x_nhwc.astype(compute_dtype)
    w_p1 = w3.astype(compute_dtype)

    # --- batch blocking + VMEM budget from padded (sublane x lane) footprints -
    budget = _vmem_cap_bytes()

    def est(nb):
        rows = nb * rows_img
        b = 2 * _padded_vmem_bytes((nb, H, W, Cin), compute_dtype)       # in (2x buf)
        b += 2 * _padded_vmem_bytes((9, Cin, Cpad), compute_dtype)       # weight
        b += 2 * _padded_vmem_bytes((1, Cpad), jnp.float32)              # shift
        b += 2 * _padded_vmem_bytes((rows, Cpad), out_dtype)             # out block
        b += _padded_vmem_bytes((nb, H + 2, W + 2, Cin), compute_dtype)  # halo scratch
        b += 2 * _padded_vmem_bytes((rows, Cpad), jnp.float32)           # acc + tmp
        b += 2 * _padded_vmem_bytes((rows, Cin), compute_dtype)          # tap slabs
        return b

    divisors = [d for d in range(1, N + 1) if N % d == 0]
    ok = [d for d in divisors
          if (d == N or (d * rows_img) % 8 == 0) and est(d) <= budget]
    if not ok:
        Nb = 1
    else:
        big = [d for d in ok if d * rows_img >= 512]         # fill the MXU M dim
        Nb = min(big) if big else max(ok)
    G = N // Nb
    vmem_limit = int(min(budget, max(16 * 2**20, int(1.5 * est(Nb)))))

    cparams = pltpu.CompilerParams(
        dimension_semantics=("parallel",),                   # megacore on v7x
        vmem_limit_bytes=vmem_limit,
    )

    x_spec = pl.BlockSpec((Nb, H, W, Cin), lambda g: (g, 0, 0, 0))
    w_spec = pl.BlockSpec((9, Cin, Cpad), lambda g: (0, 0, 0))      # resident
    halo_scratch = pltpu.VMEM((Nb, H + 2, W + 2, Cin), compute_dtype)

    # ---------------- pass 1: conv -> per-block partial BN stats -------------
    stats = pl.pallas_call(
        conv_stats_kernel,
        out_shape=jax.ShapeDtypeStruct((G, 2, Cpad), jnp.float32),
        grid=(G,),
        in_specs=[x_spec, w_spec],
        out_specs=pl.BlockSpec((1, 2, Cpad), lambda g: (g, 0, 0)),
        scratch_shapes=[halo_scratch],
        compiler_params=cparams,
    )(x_c, w_p1)

    # --- tiny per-channel reduction + BN folding (O(Cout) work, in XLA) ------
    # TODO(synk): E[x^2]-E[x]^2 in f32; a shifted / Welford accumulation would
    #             be safer for channels with |mean| >> std.
    count = float(N * rows_img)
    total = jnp.sum(stats, axis=0)                           # (2, Cpad) f32
    mean = total[0] / count
    var = jnp.maximum(total[1] / count - mean * mean, 0.0)   # biased (training BN)
    inv = jax.lax.rsqrt(var + eps)
    gamma_p = jnp.pad(gamma.astype(jnp.float32), (0, Cpad - Cout))
    beta_p = jnp.pad(beta.astype(jnp.float32), (0, Cpad - Cout))
    scale = gamma_p * inv
    shift = (beta_p - mean * scale).reshape(1, Cpad)
    w_p2 = (w3 * scale[None, None, :]).astype(compute_dtype)  # fold scale into weight

    # ---------------- pass 2: conv(scale-folded) -> +shift -> ReLU -----------
    out_flat = pl.pallas_call(
        conv_bn_relu_kernel,
        out_shape=jax.ShapeDtypeStruct((N * rows_img, Cpad), out_dtype),
        grid=(G,),
        in_specs=[x_spec, w_spec, pl.BlockSpec((1, Cpad), lambda g: (0, 0))],
        out_specs=pl.BlockSpec((Nb * rows_img, Cpad), lambda g: (g, 0)),
        scratch_shapes=[halo_scratch],
        compiler_params=cparams,
    )(x_c, w_p2, shift)

    # A chained NHWC network would keep the lane-dense (..., Cpad) slab; slice
    # back to Cout only because the block is used standalone here.
    return out_flat.reshape(N, H, W, Cpad)[..., :Cout]


# --------------------------------------------------------------------------
# NCHW compatibility wrapper (PyTorch interface parity only)
# --------------------------------------------------------------------------
def basic_block1(x_nchw, weight_oihw, gamma, beta, *, eps=1e-5,
                 compute_dtype=jnp.float32, out_dtype=None):
    """NCHW in/out wrapper.  The transposes here are interface plumbing only;
    use conv_bn_relu_nhwc end-to-end in an NHWC network to avoid them."""
    x_nhwc = jnp.transpose(x_nchw, (0, 2, 3, 1))
    out = conv_bn_relu_nhwc(x_nhwc, weight_oihw, gamma, beta, eps=eps,
                            compute_dtype=compute_dtype, out_dtype=out_dtype)
    return jnp.transpose(out, (0, 3, 1, 2))


# --------------------------------------------------------------------------
# pure-JAX reference (matches the PyTorch module, training-mode BN)
# --------------------------------------------------------------------------
def reference_forward(x_nchw, weight_oihw, gamma, beta):
    y = jax.lax.conv_general_dilated(
        x_nchw, weight_oihw, window_strides=(1, 1),
        padding=((1, 1), (1, 1)),
        dimension_numbers=('NCHW', 'OIHW', 'NCHW'))
    mean = jnp.mean(y, axis=(0, 2, 3), keepdims=True)
    var = jnp.mean((y - mean) ** 2, axis=(0, 2, 3), keepdims=True)
    y = (y - mean) * jax.lax.rsqrt(var + 1e-5)
    y = y * gamma[None, :, None, None] + beta[None, :, None, None]
    return jnp.maximum(y, 0.0)


if __name__ == "__main__":
    key = jax.random.PRNGKey(0)
    k_x, k_w, k_g, k_b = jax.random.split(key, 4)

    N, in_planes, planes, H, W = 2, 4, 8, 16, 16

    x = jax.random.normal(k_x, (N, in_planes, H, W), dtype=jnp.float32)
    conv_w = 0.1 * jax.random.normal(k_w, (planes, in_planes, 3, 3),
                                     dtype=jnp.float32)
    gamma = 1.0 + 0.1 * jax.random.normal(k_g, (planes,), dtype=jnp.float32)
    beta = 0.1 * jax.random.normal(k_b, (planes,), dtype=jnp.float32)

    ref = jax.block_until_ready(reference_forward(x, conv_w, gamma, beta))

    # --- f32 path (exact semantics check) ---
    out = jax.block_until_ready(
        basic_block1(x, conv_w, gamma, beta,
                     compute_dtype=jnp.float32, out_dtype=jnp.float32))
    assert out.shape == (N, planes, H, W)
    np.testing.assert_allclose(np.asarray(out), np.asarray(ref),
                               rtol=1e-4, atol=1e-4)

    # --- bf16 operand + bf16 activation store path (throughput path) ---
    out_bf16 = jax.block_until_ready(
        basic_block1(x, conv_w, gamma, beta,
                     compute_dtype=jnp.bfloat16, out_dtype=jnp.bfloat16))
    np.testing.assert_allclose(np.asarray(out_bf16.astype(jnp.float32)),
                               np.asarray(ref), rtol=5e-2, atol=5e-2)

    print("KERNEL_OK")
</pallas_src>

<mosaic_0001>
module attributes {stable_mosaic.version = 11 : i64} {
  func.func @conv_stats_kernel(%arg0: i32, %arg1: memref<2x16x16x4xf32, #tpu.memory_space<vmem>>, %arg2: memref<9x4x128xf32, #tpu.memory_space<vmem>>, %arg3: memref<1x2x128xf32, #tpu.memory_space<vmem>>, %arg4: memref<2x18x18x4xf32, #tpu.memory_space<vmem>>) attributes {dimension_semantics = [#tpu.dimension_semantics<parallel>], iteration_bounds = array<i64: 1>, scalar_prefetch = 0 : i64, scratch_operands = 1 : i64, tpu.core_type = #tpu.core_type<tc>, window_params = [{transform_indices = @transform_0, window_bounds = array<i64: 2, 16, 16, 4>}, {pipeline_mode = #tpu.pipeline_mode<synchronous>, transform_indices = @transform_1, window_bounds = array<i64: 9, 4, 128>}, {transform_indices = @transform_2, window_bounds = array<i64: 1, 2, 128>}]} {
    %cst = arith.constant 0.000000e+00 : f32
    %0 = vector.broadcast %cst : f32 to vector<2x18x18x4xf32>
    %c0 = arith.constant 0 : index
    %c0_0 = arith.constant 0 : index
    %c0_1 = arith.constant 0 : index
    %c0_2 = arith.constant 0 : index
    %1 = vector.load %arg4[%c0, %c0_0, %c0_1, %c0_2] : memref<2x18x18x4xf32, #tpu.memory_space<vmem>>, vector<2x18x18x4xf32>
    tpu.vector_store %arg4[%c0, %c0_0, %c0_1, %c0_2], %0 {strides = array<i32>} : memref<2x18x18x4xf32, #tpu.memory_space<vmem>>, vector<2x18x18x4xf32>,
    %c0_3 = arith.constant 0 : index
    %c0_4 = arith.constant 0 : index
    %c0_5 = arith.constant 0 : index
    %c0_6 = arith.constant 0 : index
    %2 = vector.load %arg1[%c0_3, %c0_4, %c0_5, %c0_6] : memref<2x16x16x4xf32, #tpu.memory_space<vmem>>, vector<2x16x16x4xf32>
    %c0_7 = arith.constant 0 : index
    %c1 = arith.constant 1 : index
    %c1_8 = arith.constant 1 : index
    %c0_9 = arith.constant 0 : index
    %3 = vector.load %arg4[%c0_7, %c1, %c1_8, %c0_9] : memref<2x18x18x4xf32, #tpu.memory_space<vmem>>, vector<2x16x16x4xf32>
    tpu.vector_store %arg4[%c0_7, %c1, %c1_8, %c0_9], %2 {strides = array<i32>} : memref<2x18x18x4xf32, #tpu.memory_space<vmem>>, vector<2x16x16x4xf32>,
    %c0_10 = arith.constant 0 : index
    %c0_11 = arith.constant 0 : index
    %c0_12 = arith.constant 0 : index
    %c0_13 = arith.constant 0 : index
    %4 = vector.load %arg4[%c0_10, %c0_11, %c0_12, %c0_13] : memref<2x18x18x4xf32, #tpu.memory_space<vmem>>, vector<2x18x18x4xf32>
    %cst_14 = arith.constant 0.000000e+00 : f32
    %5 = vector.broadcast %cst_14 : f32 to vector<512x128xf32>
    %6 = vector.extract_strided_slice %4 {offsets = [0, 0, 0, 0], sizes = [2, 16, 16, 4], strides = [1, 1, 1, 1]} : vector<2x18x18x4xf32> to vector<2x16x16x4xf32>
    %7 = vector.shape_cast %6 : vector<2x16x16x4xf32> to vector<512x4xf32>
    %c0_15 = arith.constant 0 : index
    %c0_16 = arith.constant 0 : index
    %c0_17 = arith.constant 0 : index
    %8 = vector.load %arg2[%c0_15, %c0_16, %c0_17] : memref<9x4x128xf32, #tpu.memory_space<vmem>>, vector<1x4x128xf32>
    %9 = vector.shape_cast %8 : vector<1x4x128xf32> to vector<4x128xf32>
    %cst_18 = arith.constant dense<0.000000e+00> : vector<512x128xf32>
    %10 = tpu.matmul %7, %9, %cst_18 {dimension_numbers = #tpu.dot_dimension_numbers<[1], [0], [0], [1], [0, 0, 1, 1], [], []>} : vector<512x4xf32>, vector<4x128xf32>, vector<512x128xf32> -> vector<512x128xf32>
    %11 = arith.addf %5, %10 : vector<512x128xf32>
    %12 = vector.extract_strided_slice %4 {offsets = [0, 0, 1, 0], sizes = [2, 16, 16, 4], strides = [1, 1, 1, 1]} : vector<2x18x18x4xf32> to vector<2x16x16x4xf32>
    %13 = vector.shape_cast %12 : vector<2x16x16x4xf32> to vector<512x4xf32>
    %c1_19 = arith.constant 1 : index
    %c0_20 = arith.constant 0 : index
    %c0_21 = arith.constant 0 : index
    %14 = vector.load %arg2[%c1_19, %c0_20, %c0_21] : memref<9x4x128xf32, #tpu.memory_space<vmem>>, vector<1x4x128xf32>
    %15 = vector.shape_cast %14 : vector<1x4x128xf32> to vector<4x128xf32>
    %cst_22 = arith.constant dense<0.000000e+00> : vector<512x128xf32>
    %16 = tpu.matmul %13, %15, %cst_22 {dimension_numbers = #tpu.dot_dimension_numbers<[1], [0], [0], [1], [0, 0, 1, 1], [], []>} : vector<512x4xf32>, vector<4x128xf32>, vector<512x128xf32> -> vector<512x128xf32>
    %17 = arith.addf %11, %16 : vector<512x128xf32>
    %18 = vector.extract_strided_slice %4 {offsets = [0, 0, 2, 0], sizes = [2, 16, 16, 4], strides = [1, 1, 1, 1]} : vector<2x18x18x4xf32> to vector<2x16x16x4xf32>
    %19 = vector.shape_cast %18 : vector<2x16x16x4xf32> to vector<512x4xf32>
    %c2 = arith.constant 2 : index
    %c0_23 = arith.constant 0 : index
    %c0_24 = arith.constant 0 : index
    %20 = vector.load %arg2[%c2, %c0_23, %c0_24] : memref<9x4x128xf32, #tpu.memory_space<vmem>>, vector<1x4x128xf32>
    %21 = vector.shape_cast %20 : vector<1x4x128xf32> to vector<4x128xf32>
    %cst_25 = arith.constant dense<0.000000e+00> : vector<512x128xf32>
    %22 = tpu.matmul %19, %21, %cst_25 {dimension_numbers = #tpu.dot_dimension_numbers<[1], [0], [0], [1], [0, 0, 1, 1], [], []>} : vector<512x4xf32>, vector<4x128xf32>, vector<512x128xf32> -> vector<512x128xf32>
    %23 = arith.addf %17, %22 : vector<512x128xf32>
    %24 = vector.extract_strided_slice %4 {offsets = [0, 1, 0, 0], sizes = [2, 16, 16, 4], strides = [1, 1, 1, 1]} : vector<2x18x18x4xf32> to vector<2x16x16x4xf32>
    %25 = vector.shape_cast %24 : vector<2x16x16x4xf32> to vector<512x4xf32>
    %c3 = arith.constant 3 : index
    %c0_26 = arith.constant 0 : index
    %c0_27 = arith.constant 0 : index
    %26 = vector.load %arg2[%c3, %c0_26, %c0_27] : memref<9x4x128xf32, #tpu.memory_space<vmem>>, vector<1x4x128xf32>
    %27 = vector.shape_cast %26 : vector<1x4x128xf32> to vector<4x128xf32>
    %cst_28 = arith.constant dense<0.000000e+00> : vector<512x128xf32>
    %28 = tpu.matmul %25, %27, %cst_28 {dimension_numbers = #tpu.dot_dimension_numbers<[1], [0], [0], [1], [0, 0, 1, 1], [], []>} : vector<512x4xf32>, vector<4x128xf32>, vector<512x128xf32> -> vector<512x128xf32>
    %29 = arith.addf %23, %28 : vector<512x128xf32>
    %30 = vector.extract_strided_slice %4 {offsets = [0, 1, 1, 0], sizes = [2, 16, 16, 4], strides = [1, 1, 1, 1]} : vector<2x18x18x4xf32> to vector<2x16x16x4xf32>
    %31 = vector.shape_cast %30 : vector<2x16x16x4xf32> to vector<512x4xf32>
    %c4 = arith.constant 4 : index
    %c0_29 = arith.constant 0 : index
    %c0_30 = arith.constant 0 : index
    %32 = vector.load %arg2[%c4, %c0_29, %c0_30] : memref<9x4x128xf32, #tpu.memory_space<vmem>>, vector<1x4x128xf32>
    %33 = vector.shape_cast %32 : vector<1x4x128xf32> to vector<4x128xf32>
    %cst_31 = arith.constant dense<0.000000e+00> : vector<512x128xf32>
    %34 = tpu.matmul %31, %33, %cst_31 {dimension_numbers = #tpu.dot_dimension_numbers<[1], [0], [0], [1], [0, 0, 1, 1], [], []>} : vector<512x4xf32>, vector<4x128xf32>, vector<512x128xf32> -> vector<512x128xf32>
    %35 = arith.addf %29, %34 : vector<512x128xf32>
    %36 = vector.extract_strided_slice %4 {offsets = [0, 1, 2, 0], sizes = [2, 16, 16, 4], strides = [1, 1, 1, 1]} : vector<2x18x18x4xf32> to vector<2x16x16x4xf32>
    %37 = vector.shape_cast %36 : vector<2x16x16x4xf32> to vector<512x4xf32>
    %c5 = arith.constant 5 : index
    %c0_32 = arith.constant 0 : index
    %c0_33 = arith.constant 0 : index
    %38 = vector.load %arg2[%c5, %c0_32, %c0_33] : memref<9x4x128xf32, #tpu.memory_space<vmem>>, vector<1x4x128xf32>
    %39 = vector.shape_cast %38 : vector<1x4x128xf32> to vector<4x128xf32>
    %cst_34 = arith.constant dense<0.000000e+00> : vector<512x128xf32>
    %40 = tpu.matmul %37, %39, %cst_34 {dimension_numbers = #tpu.dot_dimension_numbers<[1], [0], [0], [1], [0, 0, 1, 1], [], []>} : vector<512x4xf32>, vector<4x128xf32>, vector<512x128xf32> -> vector<512x128xf32>
    %41 = arith.addf %35, %40 : vector<512x128xf32>
    %42 = vector.extract_strided_slice %4 {offsets = [0, 2, 0, 0], sizes = [2, 16, 16, 4], strides = [1, 1, 1, 1]} : vector<2x18x18x4xf32> to vector<2x16x16x4xf32>
    %43 = vector.shape_cast %42 : vector<2x16x16x4xf32> to vector<512x4xf32>
    %c6 = arith.constant 6 : index
    %c0_35 = arith.constant 0 : index
    %c0_36 = arith.constant 0 : index
    %44 = vector.load %arg2[%c6, %c0_35, %c0_36] : memref<9x4x128xf32, #tpu.memory_space<vmem>>, vector<1x4x128xf32>
    %45 = vector.shape_cast %44 : vector<1x4x128xf32> to vector<4x128xf32>
    %cst_37 = arith.constant dense<0.000000e+00> : vector<512x128xf32>
    %46 = tpu.matmul %43, %45, %cst_37 {dimension_numbers = #tpu.dot_dimension_numbers<[1], [0], [0], [1], [0, 0, 1, 1], [], []>} : vector<512x4xf32>, vector<4x128xf32>, vector<512x128xf32> -> vector<512x128xf32>
    %47 = arith.addf %41, %46 : vector<512x128xf32>
    %48 = vector.extract_strided_slice %4 {offsets = [0, 2, 1, 0], sizes = [2, 16, 16, 4], strides = [1, 1, 1, 1]} : vector<2x18x18x4xf32> to vector<2x16x16x4xf32>
    %49 = vector.shape_cast %48 : vector<2x16x16x4xf32> to vector<512x4xf32>
    %c7 = arith.constant 7 : index
    %c0_38 = arith.constant 0 : index
    %c0_39 = arith.constant 0 : index
    %50 = vector.load %arg2[%c7, %c0_38, %c0_39] : memref<9x4x128xf32, #tpu.memory_space<vmem>>, vector<1x4x128xf32>
    %51 = vector.shape_cast %50 : vector<1x4x128xf32> to vector<4x128xf32>
    %cst_40 = arith.constant dense<0.000000e+00> : vector<512x128xf32>
    %52 = tpu.matmul %49, %51, %cst_40 {dimension_numbers = #tpu.dot_dimension_numbers<[1], [0], [0], [1], [0, 0, 1, 1], [], []>} : vector<512x4xf32>, vector<4x128xf32>, vector<512x128xf32> -> vector<512x128xf32>
    %53 = arith.addf %47, %52 : vector<512x128xf32>
    %54 = vector.extract_strided_slice %4 {offsets = [0, 2, 2, 0], sizes = [2, 16, 16, 4], strides = [1, 1, 1, 1]} : vector<2x18x18x4xf32> to vector<2x16x16x4xf32>
    %55 = vector.shape_cast %54 : vector<2x16x16x4xf32> to vector<512x4xf32>
    %c8 = arith.constant 8 : index
    %c0_41 = arith.constant 0 : index
    %c0_42 = arith.constant 0 : index
    %56 = vector.load %arg2[%c8, %c0_41, %c0_42] : memref<9x4x128xf32, #tpu.memory_space<vmem>>, vector<1x4x128xf32>
    %57 = vector.shape_cast %56 : vector<1x4x128xf32> to vector<4x128xf32>
    %cst_43 = arith.constant dense<0.000000e+00> : vector<512x128xf32>
    %58 = tpu.matmul %55, %57, %cst_43 {dimension_numbers = #tpu.dot_dimension_numbers<[1], [0], [0], [1], [0, 0, 1, 1], [], []>} : vector<512x4xf32>, vector<4x128xf32>, vector<512x128xf32> -> vector<512x128xf32>
    %59 = arith.addf %53, %58 : vector<512x128xf32>
    %cst_44 = arith.constant dense<0.000000e+00> : vector<128xf32>
    %60 = vector.multi_reduction <add>, %59, %cst_44 [0] : vector<512x128xf32> to vector<128xf32>
    %61 = vector.shape_cast %60 : vector<128xf32> to vector<1x128xf32>
    %62 = arith.mulf %59, %59 : vector<512x128xf32>
    %cst_45 = arith.constant dense<0.000000e+00> : vector<128xf32>
    %63 = vector.multi_reduction <add>, %62, %cst_45 [0] : vector<512x128xf32> to vector<128xf32>
    %64 = vector.shape_cast %63 : vector<128xf32> to vector<1x128xf32>
    %65 = tpu.concatenate %61, %64 in 0 : vector<1x128xf32>, vector<1x128xf32> -> vector<2x128xf32>
    %66 = vector.shape_cast %65 : vector<2x128xf32> to vector<1x2x128xf32>
    %c0_46 = arith.constant 0 : index
    %c0_47 = arith.constant 0 : index
    %c0_48 = arith.constant 0 : index
    %67 = vector.load %arg3[%c0_46, %c0_47, %c0_48] : memref<1x2x128xf32, #tpu.memory_space<vmem>>, vector<1x2x128xf32>
    tpu.vector_store %arg3[%c0_46, %c0_47, %c0_48], %66 {strides = array<i32>} : memref<1x2x128xf32, #tpu.memory_space<vmem>>, vector<1x2x128xf32>,
    return
  }
  func.func @transform_0(%arg0: i32) -> (i32, i32, i32, i32) {
    %c0_i32 = arith.constant 0 : i32
    %c0_i32_0 = arith.constant 0 : i32
    %c0_i32_1 = arith.constant 0 : i32
    %c0_i32_2 = arith.constant 0 : i32
    return %arg0, %c0_i32, %c0_i32_0, %c0_i32_1 : i32, i32, i32, i32
  }
  func.func @transform_1(%arg0: i32) -> (i32, i32, i32) {
    %c0_i32 = arith.constant 0 : i32
    %c0_i32_0 = arith.constant 0 : i32
    %c0_i32_1 = arith.constant 0 : i32
    %c0_i32_2 = arith.constant 0 : i32
    return %c0_i32, %c0_i32_0, %c0_i32_1 : i32, i32, i32
  }
  func.func @transform_2(%arg0: i32) -> (i32, i32, i32) {
    %c0_i32 = arith.constant 0 : i32
    %c0_i32_0 = arith.constant 0 : i32
    %c0_i32_1 = arith.constant 0 : i32
    return %arg0, %c0_i32, %c0_i32_0 : i32, i32, i32
  }
}

</mosaic_0001>

<bundles_post_ra>
// kernel: tpu_custom_call.1
= control target key start
LH: loop header
LB: loop body
LE: loop exit
PB: predicated region body
PF: predicated region fallthrough
CT: control target
= control target key end

     0   :  { %vm747_vm0 = vcmask 1043456   ;;  %vm12_vm1 = vcmask 31744   ;;  %vm15_vm2 = vcmask 25600   ;;  %v8107_v4 = vmov 0.0   ;;  %s10745_s0 = inlined_call_operand.vmem [shape: f32[2,16,16,4], index: 0, kind: input, shape index: {}]   ;;  %s10746_s1 = inlined_call_operand.vmem [shape: f32[9,4,128], index: 1, kind: input, shape index: {}]   ;;  %s10747_s2 = inlined_call_operand.hbm [shape: f32[1,2,128], index: 2, kind: output, shape index: {}]  }
   0x1   :  { %v5438_v0 = vld [vmem:[%s10746_s1 + $0x4] sm:$0xf]  ;;  %v8130_v1 = vld [vmem:[%s10746_s1 + $0x10] sm:$0xf]  ;;  %v8138_v2 = vld [vmem:[%s10746_s1] sm:$0xf] }
   0x2   :  { %6616 = vmatprep.subr.msk.mxu1 %vm747_vm0, %v5438_v0  ;;  %7008 = vmatprep.subr.msk.mxu0 %vm747_vm0, %v8130_v1  ;;  %v8143_v3 = vld [vmem:[%s10745_s0] sm:$0xff]  ;;  %13 = vst.msk [vmem:[#allocation2] sm:$0xff] %vm12_vm1, %v8107_v4  ;;  %14 = vst.msk [vmem:[#allocation2 + $0x8] sm:$0xff] %vm12_vm1, %v8107_v4  ;;  %v123_v5 = vld [vmem:[%s10745_s0 + $0x8] sm:$0xff]  ;;  %vm456_vm3 = vcmask 1046528  }
   0x3   :  { %6617 = vmatpush3.msk.msra.mxu1 %vm747_vm0, %v5438_v0  ;;  %17 = vst.msk [vmem:[#allocation2 + $0x18] sm:$0xff] %vm12_vm1, %v8107_v4  ;;  %18 = vst.msk [vmem:[#allocation2 + $0x20] sm:$0xff] %vm12_vm1, %v8107_v4  ;;  %7009 = vmatpush3.msk.msra.mxu0 %vm747_vm0, %v8130_v1  ;;  %v8370_v6 = vld [vmem:[%s10746_s1 + $0x14] sm:$0xf]  ;;  %v125_v8 = vld [vmem:[%s10745_s0 + $0x18] sm:$0xff] }
   0x4   :  { %20 = vst.msk [vmem:[#allocation2 + $0x30] sm:$0xff] %vm12_vm1, %v8107_v4  ;;  %21 = vst.msk [vmem:[#allocation2 + $0x38] sm:$0xff] %vm12_vm1, %v8107_v4  ;;  %v124_v7 = vld [vmem:[%s10745_s0 + $0x10] sm:$0xff]  ;;  %6714 = vmatprep.subr.msk.mxu1 %vm747_vm0, %v8138_v2  ;;  %7106 = vmatprep.subr.msk.mxu0 %vm747_vm0, %v8370_v6  ;;  %v126_v9 = vld [vmem:[%s10745_s0 + $0x20] sm:$0xff] }
   0x5   :  { %23 = vst.msk [vmem:[#allocation2 + $0x48] sm:$0xff] %vm12_vm1, %v8107_v4  ;;  %24 = vst.msk [vmem:[#allocation2 + $0x50] sm:$0xff] %vm12_vm1, %v8107_v4  ;;  %v127_v10 = vld [vmem:[%s10745_s0 + $0x28] sm:$0xff]  ;;  %v128_v11 = vld [vmem:[%s10745_s0 + $0x30] sm:$0xff] }
   0x6   :  { %26 = vst.msk [vmem:[#allocation2 + $0x60] sm:$0xff] %vm12_vm1, %v8107_v4  ;;  %27 = vst.msk [vmem:[#allocation2 + $0x68] sm:$0xff] %vm12_vm1, %v8107_v4  ;;  %v129_v12 = vld [vmem:[%s10745_s0 + $0x38] sm:$0xff]  ;;  %v130_v13 = vld [vmem:[%s10745_s0 + $0x40] sm:$0xff] }
   0x7   :  { %29 = vst.msk [vmem:[#allocation2 + $0x78] sm:$0xff] %vm12_vm1, %v8107_v4  ;;  %30 = vst.msk [vmem:[#allocation2 + $0x80] sm:$0xff] %vm12_vm1, %v8107_v4  ;;  %v131_v14 = vld [vmem:[%s10745_s0 + $0x48] sm:$0xff]  ;;  %v132_v15 = vld [vmem:[%s10745_s0 + $0x50] sm:$0xff] }
   0x8   :  { %32 = vst.msk [vmem:[#allocation2 + $0x90] sm:$0xff] %vm12_vm1, %v8107_v4  ;;  %33 = vst.msk [vmem:[#allocation2 + $0x98] sm:$0xff] %vm12_vm1, %v8107_v4  ;;  %v133_v16 = vld [vmem:[%s10745_s0 + $0x58] sm:$0xff]  ;;  %v134_v17 = vld [vmem:[%s10745_s0 + $0x60] sm:$0xff] }
   0x9   :  { %35 = vst.msk [vmem:[#allocation2 + $0xa8] sm:$0xff] %vm12_vm1, %v8107_v4  ;;  %36 = vst.msk [vmem:[#allocation2 + $0xb0] sm:$0xff] %vm12_vm1, %v8107_v4  ;;  %v135_v18 = vld [vmem:[%s10745_s0 + $0x68] sm:$0xff]  ;;  %v136_v19 = vld [vmem:[%s10745_s0 + $0x70] sm:$0xff] }
   0xa   :  { %38 = vst.msk [vmem:[#allocation2 + $0xc0] sm:$0xff] %vm12_vm1, %v8107_v4  ;;  %39 = vst.msk [vmem:[#allocation2 + $0xc8] sm:$0xff] %vm12_vm1, %v8107_v4  ;;  %v137_v20 = vld [vmem:[%s10745_s0 + $0x78] sm:$0xff]  ;;  %v138_v21 = vld [vmem:[%s10745_s0 + $0x80] sm:$0xff] }
   0xb   :  { %41 = vst.msk [vmem:[#allocation2 + $0xd8] sm:$0xff] %vm12_vm1, %v8107_v4  ;;  %42 = vst.msk [vmem:[#allocation2 + $0xe0] sm:$0xff] %vm12_vm1, %v8107_v4  ;;  %v139_v22 = vld [vmem:[%s10745_s0 + $0x88] sm:$0xff]  ;;  %v140_v23 = vld [vmem:[%s10745_s0 + $0x90] sm:$0xff] }
   0xc   :  { %44 = vst.msk [vmem:[#allocation2 + $0xf0] sm:$0xff] %vm12_vm1, %v8107_v4  ;;  %45 = vst.msk [vmem:[#allocation2 + $0xf8] sm:$0xff] %vm12_vm1, %v8107_v4  ;;  %v141_v24 = vld [vmem:[%s10745_s0 + $0x98] sm:$0xff]  ;;  %v142_v25 = vld [vmem:[%s10745_s0 + $0xa0] sm:$0xff] }
   0xd   :  { %47 = vst.msk [vmem:[#allocation2 + $0x108] sm:$0xff] %vm12_vm1, %v8107_v4  ;;  %48 = vst.msk [vmem:[#allocation2 + $0x110] sm:$0xff] %vm12_vm1, %v8107_v4  ;;  %v251_v26 = vld [vmem:[#allocation2] sm:$0xff]  ;;  %v252_v27 = vld [vmem:[#allocation2 + $0x8] sm:$0xff] }
   0xe   :  { %50 = vst.msk [vmem:[#allocation2 + $0x120] sm:$0xff] %vm12_vm1, %v8107_v4  ;;  %51 = vst.msk [vmem:[#allocation2 + $0x128] sm:$0xff] %vm12_vm1, %v8107_v4  ;;  %v457_v29 = vrot.slane %v251_v26, 1  ;;  %v458_v30 = vrot.slane %v252_v27, 1  ;;  %v8612_v27 = vld [vmem:[%s10746_s1 + $0x18] sm:$0xf] }
   0xf   :  { %53 = vst.msk [vmem:[#allocation2 + $0x138] sm:$0xff] %vm12_vm1, %v8107_v4  ;;  %54 = vst.msk [vmem:[#allocation2 + $0x140] sm:$0xff] %vm12_vm1, %v8107_v4 }
  0x10   :  { %56 = vst.msk [vmem:[#allocation2 + $0x150] sm:$0xff] %vm12_vm1, %v8107_v4  ;;  %57 = vst.msk [vmem:[#allocation2 + $0x158] sm:$0xff] %vm12_vm1, %v8107_v4  ;;  %v459_v39 = vsel %vm456_vm3, %v457_v29, %v458_v30  ;;  %v155_v29 = vld [vmem:[%s10745_s0 + $0x108] sm:$0xff] }
  0x11   :  { %59 = vst.msk [vmem:[#allocation2 + $0x168] sm:$0xff] %vm12_vm1, %v8107_v4  ;;  %60 = vst.msk [vmem:[#allocation2 + $0x170] sm:$0xff] %vm12_vm1, %v8107_v4  ;;  %6618 = vmatprep.mubr.msk.f32.mxu1 %vm12_vm1, %v459_v39  ;;  %v158_v39 = vld [vmem:[%s10745_s0 + $0x120] sm:$0xff] }
  0x12   :  { %62 = vst.msk [vmem:[#allocation2 + $0x180] sm:$0xff] %vm12_vm1, %v8107_v4  ;;  %63 = vst.msk [vmem:[#allocation2 + $0x188] sm:$0xff] %vm12_vm1, %v8107_v4 }
  0x13   :  { %65 = vst.msk [vmem:[#allocation2 + $0x198] sm:$0xff] %vm12_vm1, %v8107_v4  ;;  %66 = vst.msk [vmem:[#allocation2 + $0x1a0] sm:$0xff] %vm12_vm1, %v8107_v4 }
  0x14   :  { %68 = vst.msk [vmem:[#allocation2 + $0x1b0] sm:$0xff] %vm12_vm1, %v8107_v4  ;;  %69 = vst.msk [vmem:[#allocation2 + $0x1b8] sm:$0xff] %vm12_vm1, %v8107_v4 }
  0x15   :  { %71 = vst.msk [vmem:[#allocation2 + $0x1c8] sm:$0xff] %vm12_vm1, %v8107_v4  ;;  %72 = vst.msk [vmem:[#allocation2 + $0x1d0] sm:$0xff] %vm12_vm1, %v8107_v4 }
  0x16   :  { %74 = vst.msk [vmem:[#allocation2 + $0x1e0] sm:$0xff] %vm12_vm1, %v8107_v4  ;;  %75 = vst.msk [vmem:[#allocation2 + $0x1e8] sm:$0xff] %vm12_vm1, %v8107_v4 }
  0x17   :  { %77 = vst.msk [vmem:[#allocation2 + $0x1f8] sm:$0xff] %vm12_vm1, %v8107_v4  ;;  %78 = vst.msk [vmem:[#allocation2 + $0x200] sm:$0xff] %vm12_vm1, %v8107_v4 }
  0x18   :  { %80 = vst.msk [vmem:[#allocation2 + $0x210] sm:$0xff] %vm12_vm1, %v8107_v4  ;;  %81 = vst.msk [vmem:[#allocation2 + $0x218] sm:$0xff] %vm12_vm1, %v8107_v4 }
  0x19   :  { %83 = vst.msk [vmem:[#allocation2 + $0x228] sm:$0xff] %vm12_vm1, %v8107_v4  ;;  %84 = vst.msk [vmem:[#allocation2 + $0x230] sm:$0xff] %vm12_vm1, %v8107_v4 }
  0x1a   :  { %86 = vst.msk [vmem:[#allocation2 + $0x240] sm:$0xff] %vm12_vm1, %v8107_v4  ;;  %87 = vst.msk [vmem:[#allocation2 + $0x248] sm:$0xff] %vm12_vm1, %v8107_v4 }
  0x1b   :  { %89 = vst.msk [vmem:[#allocation2 + $0x258] sm:$0xff] %vm12_vm1, %v8107_v4  ;;  %90 = vst.msk [vmem:[#allocation2 + $0x260] sm:$0xff] %vm12_vm1, %v8107_v4 }
  0x1c   :  { %92 = vst.msk [vmem:[#allocation2 + $0x270] sm:$0xff] %vm12_vm1, %v8107_v4  ;;  %93 = vst.msk [vmem:[#allocation2 + $0x278] sm:$0xff] %vm12_vm1, %v8107_v4 }
  0x1d   :  { %95 = vst.msk [vmem:[#allocation2 + $0x288] sm:$0xff] %vm12_vm1, %v8107_v4  ;;  %96 = vst.msk [vmem:[#allocation2 + $0x290] sm:$0xff] %vm12_vm1, %v8107_v4 }
  0x1e   :  { %98 = vst.msk [vmem:[#allocation2 + $0x2a0] sm:$0xff] %vm12_vm1, %v8107_v4  ;;  %99 = vst.msk [vmem:[#allocation2 + $0x2a8] sm:$0xff] %vm12_vm1, %v8107_v4 }
  0x1f   :  { %101 = vst.msk [vmem:[#allocation2 + $0x2b8] sm:$0xff] %vm12_vm1, %v8107_v4  ;;  %102 = vst.msk [vmem:[#allocation2 + $0x2c0] sm:$0xff] %vm12_vm1, %v8107_v4 }
  0x20   :  { %104 = vst.msk [vmem:[#allocation2 + $0x2d0] sm:$0xff] %vm12_vm1, %v8107_v4  ;;  %105 = vst.msk [vmem:[#allocation2 + $0x2d8] sm:$0xff] %vm12_vm1, %v8107_v4 }
  0x21   :  { %107 = vst.msk [vmem:[#allocation2 + $0x2e8] sm:$0xff] %vm12_vm1, %v8107_v4  ;;  %108 = vst.msk [vmem:[#allocation2 + $0x2f0] sm:$0xff] %vm12_vm1, %v8107_v4 }
  0x22   :  { %110 = vst.msk [vmem:[#allocation2 + $0x300] sm:$0xff] %vm12_vm1, %v8107_v4  ;;  %111 = vst.msk [vmem:[#allocation2 + $0x308] sm:$0xff] %vm12_vm1, %v8107_v4 }
  0x23   :  { %113 = vst.msk [vmem:[#allocation2 + $0x318] sm:$0xff] %vm12_vm1, %v8107_v4  ;;  %114 = vst.msk [vmem:[#allocation2 + $0x320] sm:$0xff] %vm12_vm1, %v8107_v4 }
  0x24   :  { %116 = vst.msk [vmem:[#allocation2 + $0x330] sm:$0xff] %vm12_vm1, %v8107_v4  ;;  %117 = vst.msk [vmem:[#allocation2 + $0x338] sm:$0xff] %vm12_vm1, %v8107_v4 }
  0x25   :  { %119 = vst.msk [vmem:[#allocation2 + $0x348] sm:$0xff] %vm12_vm1, %v8107_v4  ;;  %120 = vst.msk [vmem:[#allocation2 + $0x350] sm:$0xff] %vm12_vm1, %v8107_v4 }
  0x26   :  { %16 = vst.msk [vmem:[#allocation2 + $0x10] sm:$0x3] %vm15_vm2, %v8107_v4  ;;  %19 = vst.msk [vmem:[#allocation2 + $0x28] sm:$0x3] %vm15_vm2, %v8107_v4 }
  0x27   :  { %22 = vst.msk [vmem:[#allocation2 + $0x40] sm:$0x3] %vm15_vm2, %v8107_v4  ;;  %25 = vst.msk [vmem:[#allocation2 + $0x58] sm:$0x3] %vm15_vm2, %v8107_v4 }
  0x28   :  { %28 = vst.msk [vmem:[#allocation2 + $0x70] sm:$0x3] %vm15_vm2, %v8107_v4  ;;  %31 = vst.msk [vmem:[#allocation2 + $0x88] sm:$0x3] %vm15_vm2, %v8107_v4 }
  0x29   :  { %34 = vst.msk [vmem:[#allocation2 + $0xa0] sm:$0x3] %vm15_vm2, %v8107_v4  ;;  %37 = vst.msk [vmem:[#allocation2 + $0xb8] sm:$0x3] %vm15_vm2, %v8107_v4 }
  0x2a   :  { %40 = vst.msk [vmem:[#allocation2 + $0xd0] sm:$0x3] %vm15_vm2, %v8107_v4  ;;  %43 = vst.msk [vmem:[#allocation2 + $0xe8] sm:$0x3] %vm15_vm2, %v8107_v4 }
  0x2b   :  { %46 = vst.msk [vmem:[#allocation2 + $0x100] sm:$0x3] %vm15_vm2, %v8107_v4  ;;  %49 = vst.msk [vmem:[#allocation2 + $0x118] sm:$0x3] %vm15_vm2, %v8107_v4 }
  0x2c   :  { %52 = vst.msk [vmem:[#allocation2 + $0x130] sm:$0x3] %vm15_vm2, %v8107_v4  ;;  %55 = vst.msk [vmem:[#allocation2 + $0x148] sm:$0x3] %vm15_vm2, %v8107_v4 }
  0x2d   :  { %58 = vst.msk [vmem:[#allocation2 + $0x160] sm:$0x3] %vm15_vm2, %v8107_v4  ;;  %61 = vst.msk [vmem:[#allocation2 + $0x178] sm:$0x3] %vm15_vm2, %v8107_v4  ;;  %v253_v28 = vld [vmem:[#allocation2 + $0x10] sm:$0x3] }
  0x2e   :  { %64 = vst.msk [vmem:[#allocation2 + $0x190] sm:$0x3] %vm15_vm2, %v8107_v4  ;;  %67 = vst.msk [vmem:[#allocation2 + $0x1a8] sm:$0x3] %vm15_vm2, %v8107_v4  ;;  %v460_v31 = vrot.slane %v253_v28, 1  ;;  %v154_v28 = vld [vmem:[%s10745_s0 + $0x100] sm:$0xff] }
  0x2f   :  { %70 = vst.msk [vmem:[#allocation2 + $0x1c0] sm:$0x3] %vm15_vm2, %v8107_v4  ;;  %73 = vst.msk [vmem:[#allocation2 + $0x1d8] sm:$0x3] %vm15_vm2, %v8107_v4 }
  0x30   :  { %76 = vst.msk [vmem:[#allocation2 + $0x1f0] sm:$0x3] %vm15_vm2, %v8107_v4  ;;  %79 = vst.msk [vmem:[#allocation2 + $0x208] sm:$0x3] %vm15_vm2, %v8107_v4  ;;  %v461_v40 = vsel %vm456_vm3, %v458_v30, %v460_v31  ;;  %v156_v30 = vld [vmem:[%s10745_s0 + $0x110] sm:$0xff] }
  0x31   :  { %82 = vst.msk [vmem:[#allocation2 + $0x220] sm:$0x3] %vm15_vm2, %v8107_v4  ;;  %85 = vst.msk [vmem:[#allocation2 + $0x238] sm:$0x3] %vm15_vm2, %v8107_v4  ;;  %6619 = vmatmul.mubr.msk.f32.vlgmr.msra.gmra.mrb[0].mxu1 %vm12_vm1, %v461_v40  ;;  %v159_v40 = vld [vmem:[%s10745_s0 + $0x128] sm:$0xff] }
  0x32   :  { %88 = vst.msk [vmem:[#allocation2 + $0x250] sm:$0x3] %vm15_vm2, %v8107_v4  ;;  %91 = vst.msk [vmem:[#allocation2 + $0x268] sm:$0x3] %vm15_vm2, %v8107_v4  ;;  %6715 = vmatpush3.msk.msra.mxu1 %vm747_vm0, %v8138_v2 }
  0x33   :  { %94 = vst.msk [vmem:[#allocation2 + $0x280] sm:$0x3] %vm15_vm2, %v8107_v4  ;;  %97 = vst.msk [vmem:[#allocation2 + $0x298] sm:$0x3] %vm15_vm2, %v8107_v4 }
  0x34   :  { %100 = vst.msk [vmem:[#allocation2 + $0x2b0] sm:$0x3] %vm15_vm2, %v8107_v4  ;;  %103 = vst.msk [vmem:[#allocation2 + $0x2c8] sm:$0x3] %vm15_vm2, %v8107_v4 }
  0x35   :  { %106 = vst.msk [vmem:[#allocation2 + $0x2e0] sm:$0x3] %vm15_vm2, %v8107_v4  ;;  %109 = vst.msk [vmem:[#allocation2 + $0x2f8] sm:$0x3] %vm15_vm2, %v8107_v4 }
  0x36   :  { %112 = vst.msk [vmem:[#allocation2 + $0x310] sm:$0x3] %vm15_vm2, %v8107_v4  ;;  %115 = vst.msk [vmem:[#allocation2 + $0x328] sm:$0x3] %vm15_vm2, %v8107_v4 }
  0x37   :  { %118 = vst.msk [vmem:[#allocation2 + $0x340] sm:$0x3] %vm15_vm2, %v8107_v4  ;;  %121 = vst.msk [vmem:[#allocation2 + $0x358] sm:$0x3] %vm15_vm2, %v8107_v4 }
  0x38   :  { %187 = vst.msk [vmem:[#allocation2 + $0x19] sm:$0xff] %vm12_vm1, %v8143_v3  ;;  %188 = vst.msk [vmem:[#allocation2 + $0x21] sm:$0xff] %vm12_vm1, %v123_v5 }
  0x39   :  { %189 = vst.msk [vmem:[#allocation2 + $0x31] sm:$0xff] %vm12_vm1, %v124_v7  ;;  %190 = vst.msk [vmem:[#allocation2 + $0x39] sm:$0xff] %vm12_vm1, %v125_v8  ;;  %v143_v8 = vld [vmem:[%s10745_s0 + $0xa8] sm:$0xff] }
  0x3a   :  { %191 = vst.msk [vmem:[#allocation2 + $0x49] sm:$0xff] %vm12_vm1, %v126_v9  ;;  %192 = vst.msk [vmem:[#allocation2 + $0x51] sm:$0xff] %vm12_vm1, %v127_v10  ;;  %v144_v9 = vld [vmem:[%s10745_s0 + $0xb0] sm:$0xff]  ;;  %v145_v10 = vld [vmem:[%s10745_s0 + $0xb8] sm:$0xff] }
  0x3b   :  { %193 = vst.msk [vmem:[#allocation2 + $0x61] sm:$0xff] %vm12_vm1, %v128_v11  ;;  %194 = vst.msk [vmem:[#allocation2 + $0x69] sm:$0xff] %vm12_vm1, %v129_v12  ;;  %v146_v11 = vld [vmem:[%s10745_s0 + $0xc0] sm:$0xff]  ;;  %v147_v12 = vld [vmem:[%s10745_s0 + $0xc8] sm:$0xff] }
  0x3c   :  { %195 = vst.msk [vmem:[#allocation2 + $0x79] sm:$0xff] %vm12_vm1, %v130_v13  ;;  %196 = vst.msk [vmem:[#allocation2 + $0x81] sm:$0xff] %vm12_vm1, %v131_v14  ;;  %v148_v13 = vld [vmem:[%s10745_s0 + $0xd0] sm:$0xff]  ;;  %v149_v14 = vld [vmem:[%s10745_s0 + $0xd8] sm:$0xff] }
  0x3d   :  { %197 = vst.msk [vmem:[#allocation2 + $0x91] sm:$0xff] %vm12_vm1, %v132_v15  ;;  %198 = vst.msk [vmem:[#allocation2 + $0x99] sm:$0xff] %vm12_vm1, %v133_v16 }
  0x3e   :  { %199 = vst.msk [vmem:[#allocation2 + $0xa9] sm:$0xff] %vm12_vm1, %v134_v17  ;;  %200 = vst.msk [vmem:[#allocation2 + $0xb1] sm:$0xff] %vm12_vm1, %v135_v18  ;;  %v150_v17 = vld [vmem:[%s10745_s0 + $0xe0] sm:$0xff]  ;;  %v151_v18 = vld [vmem:[%s10745_s0 + $0xe8] sm:$0xff] }
  0x3f   :  { %201 = vst.msk [vmem:[#allocation2 + $0xc1] sm:$0xff] %vm12_vm1, %v136_v19  ;;  %202 = vst.msk [vmem:[#allocation2 + $0xc9] sm:$0xff] %vm12_vm1, %v137_v20  ;;  %v8455_v32 = vld [vmem:[#allocation2 + $0x18] sm:$0xff]  ;;  %v8457_v33 = vld [vmem:[#allocation2 + $0x20] sm:$0xff] }
  0x40   :  { %203 = vst.msk [vmem:[#allocation2 + $0xd9] sm:$0xff] %vm12_vm1, %v138_v21  ;;  %204 = vst.msk [vmem:[#allocation2 + $0xe1] sm:$0xff] %vm12_vm1, %v139_v22  ;;  %v462_v34 = vrot.slane %v8455_v32, 1  ;;  %v463_v35 = vrot.slane %v8457_v33, 1  ;;  %v8461_v36 = vld [vmem:[#allocation2 + $0x28] sm:$0x3] }
  0x41   :  { %205 = vst.msk [vmem:[#allocation2 + $0xf1] sm:$0xff] %vm12_vm1, %v140_v23  ;;  %206 = vst.msk [vmem:[#allocation2 + $0xf9] sm:$0xff] %vm12_vm1, %v141_v24  ;;  %v8463_v37 = vld [vmem:[#allocation2 + $0x30] sm:$0xff]  ;;  %v8465_v38 = vld [vmem:[#allocation2 + $0x38] sm:$0xff]  ;;  %v465_v41 = vrot.slane %v8461_v36, 1 }
  0x42   :  { %207 = vst.msk [vmem:[#allocation2 + $0x109] sm:$0xff] %vm12_vm1, %v142_v25  ;;  %v8470_v42 = vld [vmem:[#allocation2 + $0x40] sm:$0x3]  ;;  %v8472_v43 = vld [vmem:[#allocation2 + $0x48] sm:$0xff]  ;;  %v8474_v44 = vld [vmem:[#allocation2 + $0x50] sm:$0xff]  ;;  %v464_v45 = vsel %vm456_vm3, %v462_v34, %v463_v35  ;;  %v467_v46 = vrot.slane %v8463_v37, 1 }
  0x43   :  { %v468_v47 = vrot.slane %v8465_v38, 1  ;;  %v470_v48 = vrot.slane %v8470_v42, 1  ;;  %v8481_v49 = vld [vmem:[#allocation2 + $0x58] sm:$0x3]  ;;  %7010 = vmatprep.mubr.msk.f32.mxu0 %vm12_vm1, %v464_v45  ;;  %v466_v50 = vsel %vm456_vm3, %v463_v35, %v465_v41  ;;  %v472_v51 = vrot.slane %v8472_v43, 1  ;;  %v8488_v53 = vld [vmem:[#allocation2 + $0x60] sm:$0xff]  ;;  %6621 = vmatprep.mubr.msk.f32.mxu1 %vm12_vm1, %v464_v45 }
  0x44   :  { %v473_v52 = vrot.slane %v8474_v44, 1  ;;  %v8490_v54 = vld [vmem:[#allocation2 + $0x68] sm:$0xff]  ;;  %7011 = vmatmul.mubr.msk.f32.vlgmr.msra.gmra.mrb[0].mxu0 %vm12_vm1, %v466_v50  ;;  %v475_v57 = vrot.slane %v8481_v49, 1  ;;  %v477_v59 = vrot.slane %v8488_v53, 1  ;;  %v8512_v61 = vld [vmem:[#allocation2 + $0x70] sm:$0x3]  ;;  %6622 = vmatmul.mubr.msk.f32.gmra.mrb[2].mxu1 %vm12_vm1, %v466_v50 }
  0x45   :  { %v8496_v55 = vsel %vm456_vm3, %v467_v46, %v468_v47  ;;  %7107 = vmatpush3.msk.msra.mxu0 %vm747_vm0, %v8370_v6  ;;  %v8502_v56 = vsel %vm456_vm3, %v468_v47, %v470_v48  ;;  %v478_v60 = vrot.slane %v8490_v54, 1  ;;  %v8515_v62 = vld [vmem:[#allocation2 + $0x78] sm:$0xff]  ;;  %v8517_v63 = vld [vmem:[#allocation2 + $0x80] sm:$0xff]  ;;  %v480_v1 = vrot.slane %v8512_v61, 1  ;;  %v8529_v2 = vld [vmem:[#allocation2 + $0x88] sm:$0x3] }
  0x46   :  { %10988 = vst [vmem:[#allocation6_spill] sm:$0xff] %v8496_v55  ;;  %10989 = vst [vmem:[#allocation7_spill] sm:$0xff] %v8502_v56  ;;  %7013 = vmatprep.mubr.msk.f32.mxu0 %vm12_vm1, %v8496_v55  ;;  %v8508_v58 = vsel %vm456_vm3, %v472_v51, %v473_v52  ;;  %6624 = vmatprep.mubr.msk.f32.mxu1 %vm12_vm1, %v8496_v55  ;;  %v8526_v0 = vsel %vm456_vm3, %v473_v52, %v475_v57  ;;  %v482_v4 = vrot.slane %v8515_v62, 1  ;;  %v8536_v6 = vld [vmem:[#allocation2 + $0x90] sm:$0xff]  ;;  %v8538_v7 = vld [vmem:[#allocation2 + $0x98] sm:$0xff] }
  0x47   :  { %10990 = vst [vmem:[#allocation8_spill] sm:$0xff] %v8508_v58  ;;  %10991 = vst [vmem:[#allocation9_spill] sm:$0xff] %v8526_v0  ;;  %v8532_v3 = vsel %vm456_vm3, %v477_v59, %v478_v60  ;;  %v483_v5 = vrot.slane %v8517_v63, 1  ;;  %v8574_v15 = vsel %vm456_vm3, %v478_v60, %v480_v1  ;;  %v485_v16 = vrot.slane %v8529_v2, 1  ;;  %v152_v19 = vld [vmem:[%s10745_s0 + $0xf0] sm:$0xff]  ;;  %v153_v24 = vld [vmem:[%s10745_s0 + $0xf8] sm:$0xff]  ;;  %7204 = vmatprep.subr.msk.mxu0 %vm747_vm0, %v8612_v27 }
  0x48   :  { %7014 = vmatmul.mubr.msk.f32.gmra.mrb[2].mxu0 %vm12_vm1, %v8502_v56  ;;  %10992 = vst [vmem:[#allocation10_spill] sm:$0xff] %v8532_v3  ;;  %6625 = vmatmul.mubr.msk.f32.gmra.mrb[4].mxu1 %vm12_vm1, %v8502_v56  ;;  %208 = vst.msk [vmem:[#allocation2 + $0x111] sm:$0xff] %vm12_vm1, %v143_v8  ;;  %v487_v21 = vrot.slane %v8536_v6, 1  ;;  %v488_v22 = vrot.slane %v8538_v7, 1  ;;  %v8594_v23 = vld [vmem:[#allocation2 + $0xa0] sm:$0x3] }
  0x49   :  { %7016 = vmatprep.mubr.msk.f32.mxu0 %vm12_vm1, %v8508_v58  ;;  %6627 = vmatprep.mubr.msk.f32.mxu1 %vm12_vm1, %v8508_v58  ;;  %209 = vst.msk [vmem:[#allocation2 + $0x121] sm:$0xff] %vm12_vm1, %v144_v9  ;;  %210 = vst.msk [vmem:[#allocation2 + $0x129] sm:$0xff] %vm12_vm1, %v145_v10  ;;  %v8590_v20 = vsel %vm456_vm3, %v482_v4, %v483_v5  ;;  %v8604_v25 = vld [vmem:[#allocation2 + $0xa8] sm:$0xff]  ;;  %v8606_v26 = vld [vmem:[#allocation2 + $0xb0] sm:$0xff]  ;;  %v8630_v31 = vsel %vm456_vm3, %v483_v5, %v485_v16  ;;  %v490_v34 = vrot.slane %v8594_v23, 1 }
  0x4a   :  { %211 = vst.msk [vmem:[#allocation2 + $0x139] sm:$0xff] %vm12_vm1, %v146_v11  ;;  %10993 = vst [vmem:[#allocation11_spill] sm:$0xff] %v8574_v15  ;;  %v157_v35 = vld [vmem:[%s10745_s0 + $0x118] sm:$0xff]  ;;  %v8648_v41 = vsel %vm456_vm3, %v487_v21, %v488_v22  ;;  %v492_v45 = vrot.slane %v8604_v25, 1  ;;  %v493_v46 = vrot.slane %v8606_v26, 1  ;;  %v160_v48 = vld [vmem:[%s10745_s0 + $0x130] sm:$0xff] }
  0x4b   :  { %212 = vst.msk [vmem:[#allocation2 + $0x141] sm:$0xff] %vm12_vm1, %v147_v12  ;;  %213 = vst.msk [vmem:[#allocation2 + $0x151] sm:$0xff] %vm12_vm1, %v148_v13  ;;  %v8652_v47 = vld [vmem:[#allocation2 + $0xb8] sm:$0x3]  ;;  %v8662_v50 = vld [vmem:[#allocation2 + $0xc0] sm:$0xff]  ;;  %v8674_v52 = vsel %vm456_vm3, %v488_v22, %v490_v34 }
  0x4c   :  { %7017 = vmatmul.mubr.msk.f32.gmra.mrb[4].mxu0 %vm12_vm1, %v8526_v0  ;;  %214 = vst.msk [vmem:[#allocation2 + $0x159] sm:$0xff] %vm12_vm1, %v149_v14  ;;  %10994 = vst [vmem:[#allocation12_spill] sm:$0xff] %v8590_v20  ;;  %6628 = vmatmul.mubr.msk.f32.gmra.mrb[6].mxu1 %vm12_vm1, %v8526_v0  ;;  %v8664_v51 = vld [vmem:[#allocation2 + $0xc8] sm:$0xff]  ;;  %v495_v57 = vrot.slane %v8652_v47, 1  ;;  %v8678_v59 = vsel %vm456_vm3, %v492_v45, %v493_v46  ;;  %v497_v60 = vrot.slane %v8662_v50, 1  ;;  %v8686_v5 = vld [vmem:[#allocation2 + $0xd8] sm:$0xff] }
  0x4d   :  { %7019 = vmatprep.mubr.msk.f32.mxu0 %vm12_vm1, %v8532_v3  ;;  %215 = vst.msk [vmem:[#allocation2 + $0x169] sm:$0xff] %vm12_vm1, %v150_v17  ;;  %216 = vst.msk [vmem:[#allocation2 + $0x171] sm:$0xff] %vm12_vm1, %v151_v18  ;;  %6630 = vmatprep.mubr.msk.f32.mxu1 %vm12_vm1, %v8532_v3  ;;  %v498_v1 = vrot.slane %v8664_v51, 1  ;;  %v8682_v4 = vld [vmem:[#allocation2 + $0xd0] sm:$0x3]  ;;  %v8688_v8 = vld [vmem:[#allocation2 + $0xe0] sm:$0xff] }
  0x4e   :  { %217 = vst.msk [vmem:[#allocation2 + $0x181] sm:$0xff] %vm12_vm1, %v152_v19  ;;  %218 = vst.msk [vmem:[#allocation2 + $0x189] sm:$0xff] %vm12_vm1, %v153_v24  ;;  %v8697_v9 = vsel %vm456_vm3, %v493_v46, %v495_v57  ;;  %v500_v10 = vrot.slane %v8682_v4, 1  ;;  %v502_v12 = vrot.slane %v8686_v5, 1  ;;  %v503_v13 = vrot.slane %v8688_v8, 1  ;;  %v8709_v16 = vld [vmem:[#allocation2 + $0xf0] sm:$0xff] }
  0x4f   :  { %10995 = vst [vmem:[#allocation13_spill] sm:$0xff] %v8630_v31  ;;  %219 = vst.msk [vmem:[#allocation2 + $0x1c9] sm:$0xff] %vm12_vm1, %v154_v28  ;;  %v8701_v11 = vsel %vm456_vm3, %v497_v60, %v498_v1  ;;  %v8705_v14 = vld [vmem:[#allocation2 + $0xe8] sm:$0x3]  ;;  %v8711_v17 = vld [vmem:[#allocation2 + $0xf8] sm:$0xff]  ;;  %v507_v45 = vrot.slane %v8709_v16, 1 }
  0x50   :  { %7020 = vmatmul.mubr.msk.f32.gmra.mrb[6].mxu0 %vm12_vm1, %v8574_v15  ;;  %220 = vst.msk [vmem:[#allocation2 + $0x1d1] sm:$0xff] %vm12_vm1, %v155_v29  ;;  %221 = vst.msk [vmem:[#allocation2 + $0x1e1] sm:$0xff] %vm12_vm1, %v156_v30  ;;  %6631 = vmatmul.mubr.msk.f32.gmra.mrb[8].mxu1 %vm12_vm1, %v8574_v15  ;;  %v161_v18 = vld [vmem:[%s10745_s0 + $0x138] sm:$0xff]  ;;  %v8720_v19 = vld [vmem:[#allocation2 + $0x100] sm:$0x3]  ;;  %v8732_v24 = vsel %vm456_vm3, %v498_v1, %v500_v10  ;;  %v505_v28 = vrot.slane %v8705_v14, 1 }
  0x51   :  { %7022 = vmatprep.mubr.msk.f32.mxu0 %vm12_vm1, %v8590_v20  ;;  %10996 = vst [vmem:[#allocation14_spill] sm:$0xff] %v8648_v41  ;;  %222 = vst.msk [vmem:[#allocation2 + $0x1e9] sm:$0xff] %vm12_vm1, %v157_v35  ;;  %6633 = vmatprep.mubr.msk.f32.mxu1 %vm12_vm1, %v8590_v20  ;;  %v162_v21 = vld [vmem:[%s10745_s0 + $0x140] sm:$0xff]  ;;  %v163_v22 = vld [vmem:[%s10745_s0 + $0x148] sm:$0xff]  ;;  %v508_v46 = vrot.slane %v8711_v17, 1 }
  0x52   :  { %223 = vst.msk [vmem:[#allocation2 + $0x1f9] sm:$0xff] %vm12_vm1, %v158_v39  ;;  %224 = vst.msk [vmem:[#allocation2 + $0x201] sm:$0xff] %vm12_vm1, %v159_v40  ;;  %v8735_v29 = vld [vmem:[#allocation2 + $0x108] sm:$0xff]  ;;  %v8737_v30 = vld [vmem:[#allocation2 + $0x110] sm:$0xff]  ;;  %v8751_v40 = vsel %vm456_vm3, %v502_v12, %v503_v13 }
  0x53   :  { %225 = vst.msk [vmem:[#allocation2 + $0x211] sm:$0xff] %vm12_vm1, %v160_v48  ;;  %10997 = vst [vmem:[#allocation15_spill] sm:$0xff] %v8674_v52  ;;  %v164_v34 = vld [vmem:[%s10745_s0 + $0x150] sm:$0xff]  ;;  %v165_v35 = vld [vmem:[%s10745_s0 + $0x158] sm:$0xff] }
  0x54   :  { %7023 = vmatmul.mubr.msk.f32.gmra.mrb[8].mxu0 %vm12_vm1, %v8630_v31  ;;  %10998 = vst [vmem:[#allocation16_spill] sm:$0xff] %v8678_v59  ;;  %6634 = vmatmul.mubr.msk.f32.gmra.mrb[10].mxu1 %vm12_vm1, %v8630_v31  ;;  %10999 = vst [vmem:[#allocation17_spill] sm:$0xff] %v8697_v9  ;;  %v166_v39 = vld [vmem:[%s10745_s0 + $0x160] sm:$0xff]  ;;  %v167_v48 = vld [vmem:[%s10745_s0 + $0x168] sm:$0xff] }
  0x55   :  { %7025 = vmatprep.mubr.msk.f32.mxu0 %vm12_vm1, %v8648_v41  ;;  %6636 = vmatprep.mubr.msk.f32.mxu1 %vm12_vm1, %v8648_v41  ;;  %11000 = vst [vmem:[#allocation18_spill] sm:$0xff] %v8701_v11  ;;  %226 = vst.msk [vmem:[#allocation2 + $0x219] sm:$0xff] %vm12_vm1, %v161_v18  ;;  %v168_v57 = vld [vmem:[%s10745_s0 + $0x170] sm:$0xff]  ;;  %v169_v60 = vld [vmem:[%s10745_s0 + $0x178] sm:$0xff] }
  0x56   :  { %11001 = vst [vmem:[#allocation19_spill] sm:$0xff] %v8732_v24  ;;  %227 = vst.msk [vmem:[#allocation2 + $0x229] sm:$0xff] %vm12_vm1, %v162_v21  ;;  %v170_v1 = vld [vmem:[%s10745_s0 + $0x180] sm:$0xff]  ;;  %v171_v10 = vld [vmem:[%s10745_s0 + $0x188] sm:$0xff] }
  0x57   :  { %228 = vst.msk [vmem:[#allocation2 + $0x231] sm:$0xff] %vm12_vm1, %v163_v22  ;;  %11002 = vst [vmem:[#allocation20_spill] sm:$0xff] %v8751_v40  ;;  %v172_v12 = vld [vmem:[%s10745_s0 + $0x190] sm:$0xff]  ;;  %v8785_v18 = vld [vmem:[#allocation2 + $0x118] sm:$0x3] }
  0x58   :  { %7026 = vmatmul.mubr.msk.f32.gmra.mrb[10].mxu0 %vm12_vm1, %v8674_v52  ;;  %6637 = vmatmul.mubr.msk.f32.gmra.mrb[12].mxu1 %vm12_vm1, %v8674_v52  ;;  %229 = vst.msk [vmem:[#allocation2 + $0x241] sm:$0xff] %vm12_vm1, %v164_v34  ;;  %230 = vst.msk [vmem:[#allocation2 + $0x249] sm:$0xff] %vm12_vm1, %v165_v35  ;;  %v173_v21 = vld [vmem:[%s10745_s0 + $0x198] sm:$0xff]  ;;  %v174_v22 = vld [vmem:[%s10745_s0 + $0x1a0] sm:$0xff]  ;;  %v8799_v34 = vsel %vm456_vm3, %v503_v13, %v505_v28  ;;  %v510_v35 = vrot.slane %v8720_v19, 1  ;;  %v8814_v13 = vsel %vm456_vm3, %v507_v45, %v508_v46 }
  0x59   :  { %7028 = vmatprep.mubr.msk.f32.mxu0 %vm12_vm1, %v8678_v59  ;;  %6639 = vmatprep.mubr.msk.f32.mxu1 %vm12_vm1, %v8678_v59  ;;  %231 = vst.msk [vmem:[#allocation2 + $0x259] sm:$0xff] %vm12_vm1, %v166_v39  ;;  %232 = vst.msk [vmem:[#allocation2 + $0x261] sm:$0xff] %vm12_vm1, %v167_v48  ;;  %v175_v39 = vld [vmem:[%s10745_s0 + $0x1a8] sm:$0xff]  ;;  %v176_v48 = vld [vmem:[%s10745_s0 + $0x1b0] sm:$0xff]  ;;  %v512_v28 = vrot.slane %v8735_v29, 1 }
  0x5a   :  { %233 = vst.msk [vmem:[#allocation2 + $0x271] sm:$0xff] %vm12_vm1, %v168_v57  ;;  %234 = vst.msk [vmem:[#allocation2 + $0x279] sm:$0xff] %vm12_vm1, %v169_v60  ;;  %v177_v57 = vld [vmem:[%s10745_s0 + $0x1b8] sm:$0xff]  ;;  %v513_v60 = vrot.slane %v8737_v30, 1  ;;  %v180_v45 = vld [vmem:[%s10745_s0 + $0x1d0] sm:$0xff] }
  0x5b   :  { %235 = vst.msk [vmem:[#allocation2 + $0x289] sm:$0xff] %vm12_vm1, %v170_v1  ;;  %236 = vst.msk [vmem:[#allocation2 + $0x291] sm:$0xff] %vm12_vm1, %v171_v10  ;;  %v178_v1 = vld [vmem:[%s10745_s0 + $0x1c0] sm:$0xff]  ;;  %v179_v10 = vld [vmem:[%s10745_s0 + $0x1c8] sm:$0xff] }
  0x5c   :  { %7029 = vmatmul.mubr.msk.f32.gmra.mrb[12].mxu0 %vm12_vm1, %v8697_v9  ;;  %6640 = vmatmul.mubr.msk.f32.gmra.mrb[14].mxu1 %vm12_vm1, %v8697_v9  ;;  %237 = vst.msk [vmem:[#allocation2 + $0x2a1] sm:$0xff] %vm12_vm1, %v172_v12  ;;  %11003 = vst [vmem:[#allocation21_spill] sm:$0xff] %v8799_v34  ;;  %v8832_v12 = vld [vmem:[#allocation2 + $0x120] sm:$0xff]  ;;  %v8887_v9 = vld [vmem:[#allocation2 + $0x158] sm:$0xff] }
  0x5d   :  { %7031 = vmatprep.mubr.msk.f32.mxu0 %vm12_vm1, %v8701_v11  ;;  %6642 = vmatprep.mubr.msk.f32.mxu1 %vm12_vm1, %v8701_v11  ;;  %238 = vst.msk [vmem:[#allocation2 + $0x2a9] sm:$0xff] %vm12_vm1, %v173_v21  ;;  %239 = vst.msk [vmem:[#allocation2 + $0x2b9] sm:$0xff] %vm12_vm1, %v174_v22  ;;  %v8834_v21 = vld [vmem:[#allocation2 + $0x128] sm:$0xff]  ;;  %v181_v22 = vld [vmem:[%s10745_s0 + $0x1d8] sm:$0xff]  ;;  %v528_v59 = vrot.slane %v8887_v9, 1 }
  0x5e   :  { %11004 = vst [vmem:[#allocation22_spill] sm:$0xff] %v8814_v13  ;;  %240 = vst.msk [vmem:[#allocation2 + $0x2c1] sm:$0xff] %vm12_vm1, %v175_v39  ;;  %v8850_v39 = vsel %vm456_vm3, %v508_v46, %v510_v35  ;;  %v8881_v11 = vld [vmem:[#allocation2 + $0x148] sm:$0x3]  ;;  %v8904_v52 = vld [vmem:[#allocation2 + $0x160] sm:$0x3] }
  0x5f   :  { %241 = vst.msk [vmem:[#allocation2 + $0x2d1] sm:$0xff] %vm12_vm1, %v176_v48  ;;  %242 = vst.msk [vmem:[#allocation2 + $0x2d9] sm:$0xff] %vm12_vm1, %v177_v57  ;;  %v515_v48 = vrot.slane %v8785_v18, 1  ;;  %v8854_v57 = vsel %vm456_vm3, %v512_v28, %v513_v60 }
  0x60   :  { %7032 = vmatmul.mubr.msk.f32.gmra.mrb[14].mxu0 %vm12_vm1, %v8732_v24  ;;  %6643 = vmatmul.mubr.msk.f32.gmra.mrb[16].mxu1 %vm12_vm1, %v8732_v24  ;;  %11005 = vst [vmem:[#allocation23_spill] sm:$0xff] %v8834_v21  ;;  %243 = vst.msk [vmem:[#allocation2 + $0x2e9] sm:$0xff] %vm12_vm1, %v178_v1  ;;  %v517_v1 = vrot.slane %v8832_v12, 1 }
  0x61   :  { %7034 = vmatprep.mubr.msk.f32.mxu0 %vm12_vm1, %v8751_v40  ;;  %244 = vst.msk [vmem:[#allocation2 + $0x2f1] sm:$0xff] %vm12_vm1, %v179_v10  ;;  %245 = vst.msk [vmem:[#allocation2 + $0x301] sm:$0xff] %vm12_vm1, %v180_v45  ;;  %6645 = vmatprep.mubr.msk.f32.mxu1 %vm12_vm1, %v8751_v40  ;;  %v518_v10 = vrot.slane %v8834_v21, 1  ;;  %v8858_v45 = vld [vmem:[#allocation2 + $0x130] sm:$0x3]  ;;  %v8864_v40 = vld [vmem:[#allocation2 + $0x140] sm:$0xff]  ;;  %v8873_v46 = vsel %vm456_vm3, %v513_v60, %v515_v48 }
  0x62   :  { %246 = vst.msk [vmem:[#allocation2 + $0x309] sm:$0xff] %vm12_vm1, %v181_v22  ;;  %11006 = vst [vmem:[#allocation24_spill] sm:$0xff] %v8850_v39  ;;  %v8862_v22 = vld [vmem:[#allocation2 + $0x138] sm:$0xff]  ;;  %v520_v35 = vrot.slane %v8858_v45, 1  ;;  %v523_v24 = vrot.slane %v8864_v40, 1  ;;  %v525_v48 = vrot.slane %v8881_v11, 1 }
  0x63   :  { %11007 = vst [vmem:[#allocation25_spill] sm:$0xff] %v8854_v57  ;;  %11008 = vst [vmem:[#allocation26_spill] sm:$0xff] %v8862_v22  ;;  %v8877_v28 = vsel %vm456_vm3, %v517_v1, %v518_v10 }
  0x64   :  { %7035 = vmatmul.mubr.msk.f32.gmra.mrb[16].mxu0 %vm12_vm1, %v8799_v34  ;;  %6646 = vmatmul.mubr.msk.f32.gmra.mrb[18].mxu1 %vm12_vm1, %v8799_v34  ;;  %11009 = vst [vmem:[#allocation27_spill] sm:$0xff] %v8864_v40  ;;  %11010 = vst [vmem:[#allocation28_spill] sm:$0xff] %v8873_v46  ;;  %v522_v34 = vrot.slane %v8862_v22, 1  ;;  %v8896_v60 = vsel %vm456_vm3, %v518_v10, %v520_v35  ;;  %v8911_v10 = vld [vmem:[#allocation2 + $0x168] sm:$0xff]  ;;  %v8913_v35 = vld [vmem:[#allocation2 + $0x170] sm:$0xff]  ;;  %v8932_v41 = vsel %vm456_vm3, %v523_v24, %v525_v48 }
  0x65   :  { %7037 = vmatprep.mubr.msk.f32.mxu0 %vm12_vm1, %v8814_v13  ;;  %6648 = vmatprep.mubr.msk.f32.mxu1 %vm12_vm1, %v8814_v13  ;;  %11011 = vst [vmem:[#allocation29_spill] sm:$0xff] %v8877_v28  ;;  %v8885_v13 = vld [vmem:[#allocation2 + $0x150] sm:$0xff]  ;;  %11013 = vst [vmem:[#allocation31_spill] sm:$0xff] %v8887_v9 }
  0x66   :  { %11012 = vst [vmem:[#allocation30_spill] sm:$0xff] %v8885_v13  ;;  %11014 = vst [vmem:[#allocation32_spill] sm:$0xff] %v8896_v60  ;;  %v8900_v1 = vsel %vm456_vm3, %v522_v34, %v523_v24  ;;  %v183_v34 = vld [vmem:[%s10745_s0 + $0x1e8] sm:$0xff] }
  0x67   :  { %11015 = vst [vmem:[#allocation33_spill] sm:$0xff] %v8900_v1  ;;  %11016 = vst [vmem:[#allocation34_spill] sm:$0xff] %v8911_v10 }
  0x68   :  { %7038 = vmatmul.mubr.msk.f32.gmra.mrb[18].mxu0 %vm12_vm1, %v8850_v39  ;;  %6649 = vmatmul.mubr.msk.f32.gmra.mrb[20].mxu1 %vm12_vm1, %v8850_v39  ;;  %v527_v39 = vrot.slane %v8885_v13, 1  ;;  %11017 = vst [vmem:[#allocation35_spill] sm:$0xff] %v8913_v35  ;;  %248 = vst.msk [vmem:[#allocation2 + $0x321] sm:$0xff] %vm12_vm1, %v183_v34 }
  0x69   :  { %7040 = vmatprep.mubr.msk.f32.mxu0 %vm12_vm1, %v8854_v57  ;;  %6651 = vmatprep.mubr.msk.f32.mxu1 %vm12_vm1, %v8854_v57  ;;  %v182_v57 = vld [vmem:[%s10745_s0 + $0x1e0] sm:$0xff]  ;;  %11019 = vst [vmem:[#allocation37_spill] sm:$0xff] %v8932_v41 }
  0x6a   :  { %247 = vst.msk [vmem:[#allocation2 + $0x319] sm:$0xff] %vm12_vm1, %v182_v57  ;;  %v530_v57 = vrot.slane %v8904_v52, 1 }
  0x6c   :  { %7041 = vmatmul.mubr.msk.f32.gmra.mrb[20].mxu0 %vm12_vm1, %v8873_v46  ;;  %6652 = vmatmul.mubr.msk.f32.gmra.mrb[22].mxu1 %vm12_vm1, %v8873_v46  ;;  %v8927_v46 = vld [vmem:[%s10746_s1 + $0x8] sm:$0xf] }
  0x6d   :  { %7043 = vmatprep.mubr.msk.f32.mxu0 %vm12_vm1, %v8877_v28  ;;  %6654 = vmatprep.mubr.msk.f32.mxu1 %vm12_vm1, %v8877_v28  ;;  %11018 = vst [vmem:[#allocation36_spill] sm:$0xff] %v8927_v46 }
  0x6e   :  { %6812 = vmatprep.subr.msk.mxu1 %vm747_vm0, %v8927_v46 }
  0x70   :  { %7044 = vmatmul.mubr.msk.f32.gmra.mrb[22].mxu0 %vm12_vm1, %v8896_v60 }
  0x71   :  { %7046 = vmatprep.mubr.msk.f32.mxu0 %vm12_vm1, %v8900_v1 }
  0x72   :  { %7 = vsyncpa [#allocation4], 0  ;;  %v8938_v28 = vsel %vm456_vm3, %v527_v39, %v528_v59  ;;  %v532_v34 = vrot.slane %v8911_v10, 1  ;;  %v533_v31 = vrot.slane %v8913_v35, 1  ;;  %v8942_v20 = vld [vmem:[#allocation2 + $0x178] sm:$0x3]  ;;  %6655 = vmatmul.mubr.msk.f32.gmra.mrb[24].mxu1 %vm12_vm1, %v8896_v60  ;;  %v8965_v60 = vsel %vm456_vm3, %v528_v59, %v530_v57 }
  0x73   :  { %11020 = vst [vmem:[#allocation38_spill] sm:$0xff] %v8938_v28  ;;  %11021 = vst [vmem:[#allocation39_spill] sm:$0xff] %v8942_v20  ;;  %v8944_v15 = vld [vmem:[#allocation2 + $0x180] sm:$0xff]  ;;  %v8948_v24 = vld [vmem:[#allocation2 + $0x188] sm:$0xff]  ;;  %6657 = vmatprep.mubr.msk.f32.mxu1 %vm12_vm1, %v8900_v1  ;;  %v535_v3 = vrot.slane %v8942_v20, 1  ;;  %vm1652_vm4 = vcmask 1045504  }
  0x74   :  { %11022 = vst [vmem:[#allocation40_spill] sm:$0xff] %v8944_v15  ;;  %11023 = vst [vmem:[#allocation41_spill] sm:$0xff] %v8948_v24  ;;  %v184_v48 = vld [vmem:[%s10745_s0 + $0x1f0] sm:$0xff]  ;;  %v185_v39 = vld [vmem:[%s10745_s0 + $0x1f8] sm:$0xff]  ;;  %7047 = vmatmul.mubr.msk.f32.gmra.mrb[24].mxu0 %vm12_vm1, %v8932_v41  ;;  %v8969_v0 = vsel %vm456_vm3, %v532_v34, %v533_v31  ;;  %v2863_v58 = vrot.slane %v8944_v15, 1  ;;  %v2864_v56 = vrot.slane %v8948_v24, 1 }
  0x75   :  { %249 = vst.msk [vmem:[#allocation2 + $0x331] sm:$0xff] %vm12_vm1, %v184_v48  ;;  %250 = vst.msk [vmem:[#allocation2 + $0x339] sm:$0xff] %vm12_vm1, %v185_v39  ;;  %7049 = vmatprep.mubr.msk.f32.mxu0 %vm12_vm1, %v8938_v28  ;;  %v8973_v1 = vld [vmem:[#allocation2 + $0x190] sm:$0x3]  ;;  %v8977_v39 = vld [vmem:[#allocation2 + $0x1b8] sm:$0xff]  ;;  %v8988_v59 = vsel %vm456_vm3, %v533_v31, %v535_v3  ;;  %v1658_v24 = vrot.slane %v8455_v32, 2 }
  0x76   :  { %11024 = vst [vmem:[#allocation42_spill] sm:$0xff] %v8965_v60  ;;  %11025 = vst [vmem:[#allocation43_spill] sm:$0xff] %v8969_v0  ;;  %v8975_v48 = vld [vmem:[#allocation2 + $0x1b0] sm:$0xff]  ;;  %6658 = vmatmul.mubr.msk.f32.gmra.mrb[26].mxu1 %vm12_vm1, %v8932_v41  ;;  %v2866_v57 = vrot.slane %v8973_v1, 1  ;;  %v538_v55 = vrot.slane %v8977_v39, 1  ;;  %v8994_v41 = vsel %vm456_vm3, %v2863_v58, %v2864_v56  ;;  %v8998_v15 = vld [vmem:[#allocation2 + $0x1c8] sm:$0xff] }
  0x77   :  { %11026 = vst [vmem:[#allocation44_spill] sm:$0xff] %v8975_v48  ;;  %11027 = vst [vmem:[#allocation45_spill] sm:$0xff] %v8977_v39  ;;  %6660 = vmatprep.mubr.msk.f32.mxu1 %vm12_vm1, %v8938_v28  ;;  %v537_v34 = vrot.slane %v8975_v48, 1  ;;  %v307_v46 = vld [vmem:[#allocation2 + $0x1c0] sm:$0x3]  ;;  %v1659_v28 = vrot.slane %v8457_v33, 2 }
  0x78   :  { %7050 = vmatmul.mubr.msk.f32.gmra.mrb[26].mxu0 %vm12_vm1, %v8965_v60  ;;  %11028 = vst [vmem:[#allocation46_spill] sm:$0xff] %v8988_v59  ;;  %11029 = vst [vmem:[#allocation47_spill] sm:$0xff] %v8994_v41  ;;  %v9000_v20 = vld [vmem:[#allocation2 + $0x1d0] sm:$0xff]  ;;  %v1661_v3 = vrot.slane %v8461_v36, 2  ;;  %v540_v58 = vrot.slane %v307_v46, 1  ;;  %v9012_v32 = vsel %vm456_vm3, %v2864_v56, %v2866_v57  ;;  %v542_v31 = vrot.slane %v8998_v15, 1 }
  0x79   :  { %7052 = vmatprep.mubr.msk.f32.mxu0 %vm12_vm1, %v8969_v0  ;;  %11030 = vst [vmem:[#allocation48_spill] sm:$0xff] %v9012_v32  ;;  %v539_v33 = vsel %vm456_vm3, %v537_v34, %v538_v55  ;;  %v9017_v36 = vld [vmem:[#allocation2 + $0x1d8] sm:$0x3]  ;;  %v9020_v39 = vsel %vm1652_vm4, %v1658_v24, %v1659_v28  ;;  %v1664_v46 = vrot.slane %v8465_v38, 2  ;;  %v9024_v48 = vld [vmem:[#allocation2 + $0x1e0] sm:$0xff]  ;;  %v1666_v57 = vrot.slane %v8470_v42, 2 }
  0x7a   :  { %6661 = vmatmul.mubr.msk.f32.gmra.mrb[28].mxu1 %vm12_vm1, %v8965_v60  ;;  %v543_v60 = vrot.slane %v9000_v20, 1  ;;  %11031 = vst [vmem:[#allocation49_spill] sm:$0xff] %v9020_v39  ;;  %v541_v56 = vsel %vm456_vm3, %v538_v55, %v540_v58  ;;  %v9035_v24 = vsel %vm1652_vm4, %v1659_v28, %v1661_v3  ;;  %v547_v34 = vrot.slane %v9024_v48, 1  ;;  %v9053_v58 = vld [vmem:[#allocation2 + $0x1f8] sm:$0xff] }
  0x7b   :  { %6663 = vmatprep.mubr.msk.f32.mxu1 %vm12_vm1, %v8969_v0  ;;  %v1663_v0 = vrot.slane %v8463_v37, 2  ;;  %11032 = vst [vmem:[#allocation50_spill] sm:$0xff] %v9035_v24  ;;  %v545_v37 = vrot.slane %v9017_v36, 1  ;;  %v1668_v28 = vrot.slane %v8472_v43, 2  ;;  %v1669_v3 = vrot.slane %v8474_v44, 2 }
  0x7c   :  { %7053 = vmatmul.mubr.msk.f32.gmra.mrb[28].mxu0 %vm12_vm1, %v8988_v59  ;;  %v9041_v38 = vsel %vm456_vm3, %v542_v31, %v543_v60  ;;  %v9061_v42 = vld [vmem:[%s10746_s1 + $0x1c] sm:$0xf]  ;;  %v9077_v31 = vsel %vm1652_vm4, %v1664_v46, %v1666_v57  ;;  %v1676_v57 = vrot.slane %v8512_v61, 2  ;;  %v1678_v61 = vrot.slane %v8515_v62, 2 }
  0x7d   :  { %7055 = vmatprep.mubr.msk.f32.mxu0 %vm12_vm1, %v8994_v41  ;;  %v9026_v41 = vld [vmem:[#allocation2 + $0x1e8] sm:$0xff]  ;;  %11033 = vst [vmem:[#allocation51_spill] sm:$0xff] %v9041_v38  ;;  %v9049_v55 = vsel %vm1652_vm4, %v1663_v0, %v1664_v46  ;;  %11035 = vst [vmem:[#allocation53_spill] sm:$0xff] %v9061_v42  ;;  %v9068_v43 = vsel %vm456_vm3, %v543_v60, %v545_v37  ;;  %v1671_v0 = vrot.slane %v8481_v49, 2  ;;  %v9093_v46 = vld [vmem:[#allocation2 + $0x218] sm:$0xff]  ;;  %vm5421_vm5 = vcmask 1040384  }
  0x7e   :  { %6664 = vmatmul.mubr.msk.f32.gmra.mrb[30].mxu1 %vm12_vm1, %v8988_v59  ;;  %11034 = vst [vmem:[#allocation52_spill] sm:$0xff] %v9049_v55  ;;  %v9055_v59 = vld [vmem:[#allocation2 + $0x200] sm:$0xff]  ;;  %11036 = vst [vmem:[#allocation54_spill] sm:$0xff] %v9068_v43  ;;  %v9084_v37 = vld [vmem:[#allocation2 + $0x208] sm:$0x3]  ;;  %v9087_v49 = vsel %vm1652_vm4, %v1668_v28, %v1669_v3 }
  0x7f   :  { %6666 = vmatprep.mubr.msk.f32.mxu1 %vm12_vm1, %v539_v33  ;;  %v9046_v33 = vld [vmem:[#allocation2 + $0x1f0] sm:$0x3]  ;;  %11037 = vst [vmem:[#allocation55_spill] sm:$0xff] %v9077_v31  ;;  %v553_v60 = vrot.slane %v9055_v59, 1  ;;  %11039 = vst [vmem:[#allocation57_spill] sm:$0xff] %v9087_v49 }
  0x80   :  { %7056 = vmatmul.mubr.msk.f32.gmra.mrb[30].mxu0 %vm12_vm1, %v9012_v32  ;;  %v548_v32 = vrot.slane %v9026_v41, 1  ;;  %v550_v44 = vrot.slane %v9046_v33, 1 }
  0x81   :  { %7108 = vmatprep.mubr.msk.f32.mxu0 %vm12_vm1, %v9020_v39 }
  0x82   :  { %6667 = vmatmul.mubr.msk.f32.gmra.mrb[32].mxu1 %vm12_vm1, %v541_v56  ;;  %v9080_v56 = vsel %vm456_vm3, %v547_v34, %v548_v32  ;;  %v9111_v34 = vsel %vm1652_vm4, %v1669_v3, %v1671_v0  ;;  %v9127_v3 = vld [vmem:[#allocation2 + $0x230] sm:$0xff] }
  0x83   :  { %6669 = vmatprep.mubr.msk.f32.mxu1 %vm12_vm1, %v9041_v38  ;;  %11038 = vst [vmem:[#allocation56_spill] sm:$0xff] %v9080_v56  ;;  %v552_v38 = vrot.slane %v9053_v58, 1  ;;  %11041 = vst [vmem:[#allocation59_spill] sm:$0xff] %v9111_v34 }
  0x84   :  { %7109 = vmatmul.mubr.msk.f32.vlgmr.msra.gmra.mrb[0].mxu0 %vm12_vm1, %v9035_v24  ;;  %v1674_v24 = vrot.slane %v8490_v54, 2  ;;  %v555_v54 = vrot.slane %v9084_v37, 1 }
  0x85   :  { %7205 = vmatpush3.msk.msra.mxu0 %vm747_vm0, %v8612_v27  ;;  %7111 = vmatprep.mubr.msk.f32.mxu0 %vm12_vm1, %v9049_v55  ;;  %v1673_v27 = vrot.slane %v8488_v53, 2  ;;  %v9091_v55 = vld [vmem:[#allocation2 + $0x210] sm:$0xff]  ;;  %v9104_v53 = vsel %vm456_vm3, %v548_v32, %v550_v44  ;;  %v9114_v28 = vsel %vm456_vm3, %v552_v38, %v553_v60  ;;  %v1679_v44 = vrot.slane %v8517_v63, 2 }
  0x86   :  { %7302 = vmatprep.subr.msk.mxu0 %vm747_vm0, %v9061_v42  ;;  %6670 = vmatmul.mubr.msk.f32.gmra.mrb[34].mxu1 %vm12_vm1, %v9068_v43  ;;  %11040 = vst [vmem:[#allocation58_spill] sm:$0xff] %v9104_v53  ;;  %11042 = vst [vmem:[#allocation60_spill] sm:$0xff] %v9114_v28  ;;  %v557_v43 = vrot.slane %v9091_v55, 1  ;;  %v9136_v38 = vsel %vm456_vm3, %v553_v60, %v555_v54  ;;  %v9139_v62 = vsel %vm1652_vm4, %v1674_v24, %v1676_v57  ;;  %v9157_v57 = vld [vmem:[#allocation2 + $0x240] sm:$0xff] }
  0x87   :  { %6672 = vmatprep.mubr.msk.f32.mxu1 %vm12_vm1, %v9080_v56  ;;  %v558_v56 = vrot.slane %v9093_v46, 1  ;;  %v9121_v32 = vsel %vm1652_vm4, %v1673_v27, %v1674_v24  ;;  %11044 = vst [vmem:[#allocation62_spill] sm:$0xff] %v9136_v38  ;;  %11045 = vst [vmem:[#allocation63_spill] sm:$0xff] %v9139_v62  ;;  %v1681_v27 = vrot.slane %v8529_v2, 2  ;;  %v9153_v60 = vsel %vm1652_vm4, %v1678_v61, %v1679_v44  ;;  %v9374_v42 = vld [vmem:[#allocation2 + $0x2e0] sm:$0x3] }
  0x88   :  { %7112 = vmatmul.mubr.msk.f32.gmra.mrb[2].mxu0 %vm12_vm1, %v9077_v31  ;;  %v9118_v31 = vld [vmem:[#allocation2 + $0x220] sm:$0x3]  ;;  %11043 = vst [vmem:[#allocation61_spill] sm:$0xff] %v9121_v32  ;;  %11047 = vst [vmem:[#allocation65_spill] sm:$0xff] %v9153_v60  ;;  %v1683_v24 = vrot.slane %v8536_v6, 2  ;;  %v1684_v54 = vrot.slane %v8538_v7, 2 }
  0x89   :  { %7114 = vmatprep.mubr.msk.f32.mxu0 %vm12_vm1, %v9087_v49  ;;  %v9125_v49 = vld [vmem:[#allocation2 + $0x228] sm:$0xff]  ;;  %v560_v63 = vrot.slane %v9118_v31, 1  ;;  %v9145_v0 = vsel %vm456_vm3, %v557_v43, %v558_v56  ;;  %v1686_v7 = vrot.slane %v8594_v23, 2  ;;  %v9175_v43 = vsel %vm1652_vm4, %v1679_v44, %v1681_v27  ;;  %v9191_v44 = vld [vmem:[#allocation2 + $0x260] sm:$0xff] }
  0x8a   :  { %6673 = vmatmul.mubr.msk.f32.gmra.mrb[36].mxu1 %vm12_vm1, %v9104_v53  ;;  %11046 = vst [vmem:[#allocation64_spill] sm:$0xff] %v9145_v0  ;;  %v562_v53 = vrot.slane %v9125_v49, 1  ;;  %11049 = vst [vmem:[#allocation67_spill] sm:$0xff] %v9175_v43  ;;  %v1688_v23 = vrot.slane %v8604_v25, 2 }
  0x8b   :  { %6675 = vmatprep.mubr.msk.f32.mxu1 %vm12_vm1, %v9114_v28  ;;  %v563_v28 = vrot.slane %v9127_v3, 1  ;;  %v9168_v2 = vsel %vm456_vm3, %v558_v56, %v560_v63  ;;  %v9185_v56 = vsel %vm1652_vm4, %v1683_v24, %v1684_v54  ;;  %v1689_v63 = vrot.slane %v8606_v26, 2 }
  0x8c   :  { %7115 = vmatmul.mubr.msk.f32.gmra.mrb[4].mxu0 %vm12_vm1, %v9111_v34  ;;  %v9150_v34 = vld [vmem:[#allocation2 + $0x238] sm:$0x3]  ;;  %11048 = vst [vmem:[#allocation66_spill] sm:$0xff] %v9168_v2  ;;  %11051 = vst [vmem:[#allocation69_spill] sm:$0xff] %v9185_v56  ;;  %v1691_v26 = vrot.slane %v8652_v47, 2  ;;  %v9207_v27 = vsel %vm1652_vm4, %v1684_v54, %v1686_v7  ;;  %v1693_v47 = vrot.slane %v8662_v50, 2 }
  0x8d   :  { %7117 = vmatprep.mubr.msk.f32.mxu0 %vm12_vm1, %v9121_v32  ;;  %v9159_v32 = vld [vmem:[#allocation2 + $0x248] sm:$0xff]  ;;  %v565_v6 = vrot.slane %v9150_v34, 1  ;;  %v9178_v61 = vsel %vm456_vm3, %v562_v53, %v563_v28  ;;  %11053 = vst [vmem:[#allocation71_spill] sm:$0xff] %v9207_v27  ;;  %v9223_v54 = vld [vmem:[#allocation2 + $0x278] sm:$0xff] }
  0x8e   :  { %6676 = vmatmul.mubr.msk.f32.gmra.mrb[38].mxu1 %vm12_vm1, %v9136_v38  ;;  %11050 = vst [vmem:[#allocation68_spill] sm:$0xff] %v9178_v61  ;;  %v567_v38 = vrot.slane %v9157_v57, 1  ;;  %v9239_v7 = vsel %vm1652_vm4, %v1689_v63, %v1691_v26 }
  0x8f   :  { %6678 = vmatprep.mubr.msk.f32.mxu1 %vm12_vm1, %v9145_v0  ;;  %v568_v0 = vrot.slane %v9159_v32, 1  ;;  %v9200_v53 = vsel %vm456_vm3, %v563_v28, %v565_v6  ;;  %v9217_v28 = vsel %vm1652_vm4, %v1688_v23, %v1689_v63  ;;  %v1694_v6 = vrot.slane %v8664_v51, 2  ;;  %11057 = vst [vmem:[#allocation75_spill] sm:$0xff] %v9239_v7  ;;  %v9255_v63 = vld [vmem:[#allocation2 + $0x290] sm:$0xff] }
  0x90   :  { %7118 = vmatmul.mubr.msk.f32.gmra.mrb[6].mxu0 %vm12_vm1, %v9139_v62  ;;  %v9182_v62 = vld [vmem:[#allocation2 + $0x250] sm:$0x3]  ;;  %11052 = vst [vmem:[#allocation70_spill] sm:$0xff] %v9200_v53  ;;  %11055 = vst [vmem:[#allocation73_spill] sm:$0xff] %v9217_v28  ;;  %v1696_v51 = vrot.slane %v8682_v4, 2  ;;  %v1698_v4 = vrot.slane %v8686_v5, 2 }
  0x91   :  { %7120 = vmatprep.mubr.msk.f32.mxu0 %vm12_vm1, %v9153_v60  ;;  %v9189_v60 = vld [vmem:[#allocation2 + $0x258] sm:$0xff]  ;;  %v570_v25 = vrot.slane %v9182_v62, 1  ;;  %v9210_v24 = vsel %vm456_vm3, %v567_v38, %v568_v0 }
  0x92   :  { %6679 = vmatmul.mubr.msk.f32.gmra.mrb[40].mxu1 %vm12_vm1, %v9168_v2  ;;  %11054 = vst [vmem:[#allocation72_spill] sm:$0xff] %v9210_v24  ;;  %v572_v2 = vrot.slane %v9189_v60, 1  ;;  %v9267_v5 = vsel %vm1652_vm4, %v1694_v6, %v1696_v51  ;;  %v9285_v51 = vld [vmem:[#allocation2 + $0x2a0] sm:$0xff] }
  0x93   :  { %6681 = vmatprep.mubr.msk.f32.mxu1 %vm12_vm1, %v9178_v61  ;;  %v573_v61 = vrot.slane %v9191_v44, 1  ;;  %v9232_v38 = vsel %vm456_vm3, %v568_v0, %v570_v25  ;;  %v9249_v0 = vsel %vm1652_vm4, %v1693_v47, %v1694_v6  ;;  %v1699_v25 = vrot.slane %v8688_v8, 2  ;;  %11061 = vst [vmem:[#allocation79_spill] sm:$0xff] %v9267_v5 }
  0x94   :  { %7121 = vmatmul.mubr.msk.f32.gmra.mrb[8].mxu0 %vm12_vm1, %v9175_v43  ;;  %v9214_v43 = vld [vmem:[#allocation2 + $0x268] sm:$0x3]  ;;  %11056 = vst [vmem:[#allocation74_spill] sm:$0xff] %v9232_v38  ;;  %11059 = vst [vmem:[#allocation77_spill] sm:$0xff] %v9249_v0  ;;  %v1701_v47 = vrot.slane %v8705_v14, 2  ;;  %v1703_v6 = vrot.slane %v8709_v16, 2 }
  0x95   :  { %7123 = vmatprep.mubr.msk.f32.mxu0 %vm12_vm1, %v9185_v56  ;;  %v9221_v56 = vld [vmem:[#allocation2 + $0x270] sm:$0xff]  ;;  %v575_v50 = vrot.slane %v9214_v43, 1  ;;  %v9242_v23 = vsel %vm456_vm3, %v572_v2, %v573_v61 }
  0x96   :  { %6682 = vmatmul.mubr.msk.f32.gmra.mrb[42].mxu1 %vm12_vm1, %v9200_v53  ;;  %11058 = vst [vmem:[#allocation76_spill] sm:$0xff] %v9242_v23  ;;  %v577_v53 = vrot.slane %v9221_v56, 1 }
  0x97   :  { %6684 = vmatprep.mubr.msk.f32.mxu1 %vm12_vm1, %v9210_v24  ;;  %v578_v24 = vrot.slane %v9223_v54, 1  ;;  %v9264_v2 = vsel %vm456_vm3, %v573_v61, %v575_v50  ;;  %v9281_v61 = vsel %vm1652_vm4, %v1698_v4, %v1699_v25  ;;  %v1704_v50 = vrot.slane %v8711_v17, 2 }
  0x98   :  { %7124 = vmatmul.mubr.msk.f32.gmra.mrb[10].mxu0 %vm12_vm1, %v9207_v27  ;;  %v9246_v27 = vld [vmem:[#allocation2 + $0x280] sm:$0x3]  ;;  %11060 = vst [vmem:[#allocation78_spill] sm:$0xff] %v9264_v2  ;;  %11063 = vst [vmem:[#allocation81_spill] sm:$0xff] %v9281_v61  ;;  %v1706_v17 = vrot.slane %v8720_v19, 2  ;;  %v1708_v19 = vrot.slane %v8735_v29, 2 }
  0x99   :  { %7126 = vmatprep.mubr.msk.f32.mxu0 %vm12_vm1, %v9217_v28  ;;  %v9253_v28 = vld [vmem:[#allocation2 + $0x288] sm:$0xff]  ;;  %v580_v8 = vrot.slane %v9246_v27, 1  ;;  %v9273_v26 = vsel %vm456_vm3, %v577_v53, %v578_v24  ;;  %v9303_v53 = vsel %vm1652_vm4, %v1699_v25, %v1701_v47  ;;  %v9319_v25 = vld [vmem:[#allocation2 + $0x2c0] sm:$0xff] }
  0x9a   :  { %6685 = vmatmul.mubr.msk.f32.gmra.mrb[44].mxu1 %vm12_vm1, %v9232_v38  ;;  %11062 = vst [vmem:[#allocation80_spill] sm:$0xff] %v9273_v26  ;;  %v582_v38 = vrot.slane %v9253_v28, 1  ;;  %11065 = vst [vmem:[#allocation83_spill] sm:$0xff] %v9303_v53  ;;  %v9331_v29 = vsel %vm1652_vm4, %v1704_v50, %v1706_v17  ;;  %v9349_v17 = vld [vmem:[#allocation2 + $0x2d0] sm:$0xff] }
  0x9b   :  { %6687 = vmatprep.mubr.msk.f32.mxu1 %vm12_vm1, %v9242_v23  ;;  %v583_v23 = vrot.slane %v9255_v63, 1  ;;  %v9296_v14 = vsel %vm456_vm3, %v578_v24, %v580_v8  ;;  %v9313_v24 = vsel %vm1652_vm4, %v1703_v6, %v1704_v50  ;;  %v1709_v8 = vrot.slane %v8737_v30, 2  ;;  %11069 = vst [vmem:[#allocation87_spill] sm:$0xff] %v9331_v29 }
  0x9c   :  { %7127 = vmatmul.mubr.msk.f32.gmra.mrb[12].mxu0 %vm12_vm1, %v9239_v7  ;;  %v9278_v7 = vld [vmem:[#allocation2 + $0x298] sm:$0x3]  ;;  %11064 = vst [vmem:[#allocation82_spill] sm:$0xff] %v9296_v14  ;;  %11067 = vst [vmem:[#allocation85_spill] sm:$0xff] %v9313_v24  ;;  %v1711_v6 = vrot.slane %v8785_v18, 2  ;;  %v1713_v50 = vrot.slane %v8832_v12, 2 }
  0x9d   :  { %7129 = vmatprep.mubr.msk.f32.mxu0 %vm12_vm1, %v9249_v0  ;;  %v9287_v0 = vld [vmem:[#allocation2 + $0x2a8] sm:$0xff]  ;;  %v585_v16 = vrot.slane %v9278_v7, 1  ;;  %v9306_v4 = vsel %vm456_vm3, %v582_v38, %v583_v23 }
  0x9e   :  { %6688 = vmatmul.mubr.msk.f32.gmra.mrb[46].mxu1 %vm12_vm1, %v9264_v2  ;;  %11066 = vst [vmem:[#allocation84_spill] sm:$0xff] %v9306_v4  ;;  %v587_v2 = vrot.slane %v9285_v51, 1  ;;  %v9367_v39 = vsel %vm1652_vm4, %v1709_v8, %v1711_v6 }
  0x9f   :  { %6690 = vmatprep.mubr.msk.f32.mxu1 %vm12_vm1, %v9273_v26  ;;  %v588_v26 = vrot.slane %v9287_v0, 1  ;;  %v9328_v38 = vsel %vm456_vm3, %v583_v23, %v585_v16  ;;  %v9345_v23 = vsel %vm1652_vm4, %v1708_v19, %v1709_v8  ;;  %v1714_v16 = vrot.slane %v8834_v21, 2  ;;  %11073 = vst [vmem:[#allocation91_spill] sm:$0xff] %v9367_v39  ;;  %v9383_v8 = vld [vmem:[#allocation2 + $0x2f0] sm:$0xff]  ;;  %v9470_v21 = vld [vmem:[#allocation2 + $0x328] sm:$0x3] }
  0xa0   :  { %7130 = vmatmul.mubr.msk.f32.gmra.mrb[14].mxu0 %vm12_vm1, %v9267_v5  ;;  %v9310_v5 = vld [vmem:[#allocation2 + $0x2b0] sm:$0x3]  ;;  %11068 = vst [vmem:[#allocation86_spill] sm:$0xff] %v9328_v38  ;;  %11071 = vst [vmem:[#allocation89_spill] sm:$0xff] %v9345_v23  ;;  %v1716_v19 = vrot.slane %v8858_v45, 2  ;;  %v1718_v45 = vrot.slane %v8862_v22, 2 }
  0xa1   :  { %7132 = vmatprep.mubr.msk.f32.mxu0 %vm12_vm1, %v9281_v61  ;;  %v9317_v61 = vld [vmem:[#allocation2 + $0x2b8] sm:$0xff]  ;;  %v590_v30 = vrot.slane %v9310_v5, 1  ;;  %v9337_v47 = vsel %vm456_vm3, %v587_v2, %v588_v26 }
  0xa2   :  { %6691 = vmatmul.mubr.msk.f32.gmra.mrb[48].mxu1 %vm12_vm1, %v9296_v14  ;;  %11070 = vst [vmem:[#allocation88_spill] sm:$0xff] %v9337_v47  ;;  %v592_v14 = vrot.slane %v9317_v61, 1  ;;  %v9395_v6 = vsel %vm1652_vm4, %v1714_v16, %v1716_v19  ;;  %v9406_v22 = vld [vmem:[#allocation2 + $0x2f8] sm:$0x3]  ;;  %v9413_v19 = vld [vmem:[#allocation2 + $0x300] sm:$0xff] }
  0xa3   :  { %6693 = vmatprep.mubr.msk.f32.mxu1 %vm12_vm1, %v9306_v4  ;;  %v593_v4 = vrot.slane %v9319_v25, 1  ;;  %v9360_v18 = vsel %vm456_vm3, %v588_v26, %v590_v30  ;;  %v9377_v26 = vsel %vm1652_vm4, %v1713_v50, %v1714_v16  ;;  %v1719_v30 = vrot.slane %v8864_v40, 2  ;;  %11077 = vst [vmem:[#allocation95_spill] sm:$0xff] %v9395_v6 }
  0xa4   :  { %7133 = vmatmul.mubr.msk.f32.gmra.mrb[16].mxu0 %vm12_vm1, %v9303_v53  ;;  %v9342_v53 = vld [vmem:[#allocation2 + $0x2c8] sm:$0x3]  ;;  %11072 = vst [vmem:[#allocation90_spill] sm:$0xff] %v9360_v18  ;;  %11075 = vst [vmem:[#allocation93_spill] sm:$0xff] %v9377_v26  ;;  %v600_v50 = vrot.slane %v9374_v42, 1  ;;  %v1723_v16 = vrot.slane %v8885_v13, 2 }
  0xa5   :  { %7135 = vmatprep.mubr.msk.f32.mxu0 %vm12_vm1, %v9313_v24  ;;  %v9351_v24 = vld [vmem:[#allocation2 + $0x2d8] sm:$0xff]  ;;  %v595_v2 = vrot.slane %v9342_v53, 1  ;;  %v9438_v13 = vld [vmem:[#allocation2 + $0x310] sm:$0x3] }
  0xa6   :  { %6694 = vmatmul.mubr.msk.f32.gmra.mrb[50].mxu1 %vm12_vm1, %v9328_v38  ;;  %v9370_v38 = vsel %vm456_vm3, %v592_v14, %v593_v4  ;;  %11084 = vst [vmem:[#allocation102_spill] sm:$0xff] %v9438_v13 }
  0xa7   :  { %6696 = vmatprep.mubr.msk.f32.mxu1 %vm12_vm1, %v9337_v47  ;;  %11074 = vst [vmem:[#allocation92_spill] sm:$0xff] %v9370_v38  ;;  %v598_v47 = vrot.slane %v9351_v24, 1  ;;  %v9392_v14 = vsel %vm456_vm3, %v593_v4, %v595_v2  ;;  %v9409_v4 = vsel %vm1652_vm4, %v1718_v45, %v1719_v30  ;;  %v1724_v2 = vrot.slane %v8887_v9, 2 }
  0xa8   :  { %7136 = vmatmul.mubr.msk.f32.gmra.mrb[18].mxu0 %vm12_vm1, %v9331_v29  ;;  %v597_v29 = vrot.slane %v9349_v17, 1  ;;  %11076 = vst [vmem:[#allocation94_spill] sm:$0xff] %v9392_v14  ;;  %11079 = vst [vmem:[#allocation97_spill] sm:$0xff] %v9409_v4  ;;  %v1726_v45 = vrot.slane %v8904_v52, 2  ;;  %v1728_v52 = vrot.slane %v8911_v10, 2 }
  0xa9   :  { %7138 = vmatprep.mubr.msk.f32.mxu0 %vm12_vm1, %v9345_v23  ;;  %v9381_v23 = vld [vmem:[#allocation2 + $0x2e8] sm:$0xff] }
  0xaa   :  { %6697 = vmatmul.mubr.msk.f32.gmra.mrb[52].mxu1 %vm12_vm1, %v9360_v18  ;;  %v9401_v40 = vsel %vm456_vm3, %v597_v29, %v598_v47  ;;  %v1721_v18 = vrot.slane %v8881_v11, 2  ;;  %v9424_v11 = vsel %vm456_vm3, %v598_v47, %v600_v50  ;;  %v605_v29 = vrot.slane %v9406_v22, 1 }
  0xab   :  { %6699 = vmatprep.mubr.msk.f32.mxu1 %vm12_vm1, %v9370_v38  ;;  %11078 = vst [vmem:[#allocation96_spill] sm:$0xff] %v9401_v40  ;;  %v603_v38 = vrot.slane %v9383_v8, 1  ;;  %11081 = vst [vmem:[#allocation99_spill] sm:$0xff] %v9424_v11  ;;  %v9441_v47 = vsel %vm1652_vm4, %v1723_v16, %v1724_v2  ;;  %v1729_v50 = vrot.slane %v8913_v35, 2  ;;  %v610_v16 = vrot.slane %v9438_v13, 1 }
  0xac   :  { %7139 = vmatmul.mubr.msk.f32.gmra.mrb[20].mxu0 %vm12_vm1, %v9367_v39  ;;  %v602_v39 = vrot.slane %v9381_v23, 1  ;;  %v9431_v9 = vsel %vm1652_vm4, %v1719_v30, %v1721_v18  ;;  %11085 = vst [vmem:[#allocation103_spill] sm:$0xff] %v9441_v47  ;;  %v9447_v18 = vld [vmem:[#allocation2 + $0x320] sm:$0xff]  ;;  %v9459_v30 = vsel %vm1652_vm4, %v1724_v2, %v1726_v45  ;;  %v11092_v2 = vld [vmem:[#allocation40_spill] sm:$0xff] }
  0xad   :  { %7141 = vmatprep.mubr.msk.f32.mxu0 %vm12_vm1, %v9377_v26  ;;  %v9415_v26 = vld [vmem:[#allocation2 + $0x308] sm:$0xff]  ;;  %11082 = vst [vmem:[#allocation100_spill] sm:$0xff] %v9431_v9  ;;  %11086 = vst [vmem:[#allocation104_spill] sm:$0xff] %v9447_v18  ;;  %v11093_v45 = vld [vmem:[#allocation41_spill] sm:$0xff] }
  0xae   :  { %11080 = vst [vmem:[#allocation98_spill] sm:$0xff] %v9415_v26  ;;  %6700 = vmatmul.mubr.msk.f32.gmra.mrb[54].mxu1 %vm12_vm1, %v9392_v14  ;;  %v9434_v14 = vsel %vm456_vm3, %v602_v39, %v603_v38  ;;  %v9456_v39 = vsel %vm456_vm3, %v603_v38, %v605_v29  ;;  %11088 = vst [vmem:[#allocation106_spill] sm:$0xff] %v9459_v30  ;;  %v9473_v38 = vsel %vm1652_vm4, %v1728_v52, %v1729_v50 }
  0xaf   :  { %6702 = vmatprep.mubr.msk.f32.mxu1 %vm12_vm1, %v9401_v40  ;;  %11083 = vst [vmem:[#allocation101_spill] sm:$0xff] %v9434_v14  ;;  %v608_v40 = vrot.slane %v9415_v26, 1  ;;  %11087 = vst [vmem:[#allocation105_spill] sm:$0xff] %v9456_v39  ;;  %v3335_v29 = vrot.slane %v11092_v2, 2  ;;  %v3336_v13 = vrot.slane %v11093_v45, 2  ;;  %v3338_v45 = vrot.slane %v8973_v1, 2 }
  0xb0   :  { %7142 = vmatmul.mubr.msk.f32.gmra.mrb[22].mxu0 %vm12_vm1, %v9395_v6  ;;  %v607_v6 = vrot.slane %v9413_v19, 1 }
  0xb1   :  { %7144 = vmatprep.mubr.msk.f32.mxu0 %vm12_vm1, %v9409_v4  ;;  %v9445_v4 = vld [vmem:[#allocation2 + $0x318] sm:$0xff]  ;;  %v9513_v1 = vsel %vm1652_vm4, %v3336_v13, %v3338_v45  ;;  %v1749_v45 = vrot.slane %v9055_v59, 2 }
  0xb2   :  { %6703 = vmatmul.mubr.msk.f32.gmra.mrb[56].mxu1 %vm12_vm1, %v9424_v11  ;;  %v9465_v35 = vsel %vm456_vm3, %v607_v6, %v608_v40  ;;  %v11090_v11 = vld [vmem:[#allocation39_spill] sm:$0xff]  ;;  %v9484_v6 = vsel %vm456_vm3, %v608_v40, %v610_v16  ;;  %v1739_v40 = vrot.slane %v9000_v20, 2  ;;  %11099 = vst [vmem:[#allocation111_spill] sm:$0xff] %v9513_v1  ;;  %v1743_v16 = vrot.slane %v9024_v48, 2 }
  0xb3   :  { %6705 = vmatprep.mubr.msk.f32.mxu1 %vm12_vm1, %v9434_v14  ;;  %11089 = vst [vmem:[#allocation107_spill] sm:$0xff] %v9465_v35  ;;  %v1731_v10 = vrot.slane %v11090_v11, 2  ;;  %v613_v14 = vrot.slane %v9447_v18, 1  ;;  %11091 = vst [vmem:[#allocation39_spill] sm:$0xff] %v9473_v38  ;;  %v615_v11 = vrot.slane %v9470_v21, 1 }
  0xb4   :  { %7145 = vmatmul.mubr.msk.f32.gmra.mrb[24].mxu0 %vm12_vm1, %v9431_v9  ;;  %v612_v9 = vrot.slane %v9445_v4, 1  ;;  %11094 = vst [vmem:[#allocation40_spill] sm:$0xff] %v9484_v6 }
  0xb5   :  { %7147 = vmatprep.mubr.msk.f32.mxu0 %vm12_vm1, %v9441_v47  ;;  %v9490_v52 = vsel %vm1652_vm4, %v1729_v50, %v1731_v10  ;;  %v1741_v10 = vrot.slane %v9017_v36, 2  ;;  %v9738_v47 = vld [vmem:[#allocation2 + $0xe0] sm:$0xff] }
  0xb6   :  { %6706 = vmatmul.mubr.msk.f32.gmra.mrb[58].mxu1 %vm12_vm1, %v9456_v39  ;;  %11095 = vst [vmem:[#allocation41_spill] sm:$0xff] %v9490_v52  ;;  %v9493_v2 = vsel %vm456_vm3, %v612_v9, %v613_v14  ;;  %v9497_v39 = vsel %vm1652_vm4, %v3335_v29, %v3336_v13  ;;  %v9508_v9 = vsel %vm456_vm3, %v613_v14, %v615_v11  ;;  %v1744_v29 = vrot.slane %v9026_v41, 2  ;;  %v9525_v14 = vld [vmem:[#allocation2] sm:$0xff] }
  0xb7   :  { %6708 = vmatprep.mubr.msk.f32.mxu1 %vm12_vm1, %v9465_v35  ;;  %11096 = vst [vmem:[#allocation108_spill] sm:$0xff] %v9493_v2  ;;  %11097 = vst [vmem:[#allocation109_spill] sm:$0xff] %v9497_v39  ;;  %v1738_v35 = vrot.slane %v8998_v15, 2  ;;  %v9532_v13 = vsel %vm1652_vm4, %v1739_v40, %v1741_v10  ;;  %v1748_v11 = vrot.slane %v9053_v58, 2 }
  0xb8   :  { %7148 = vmatmul.mubr.msk.f32.gmra.mrb[26].mxu0 %vm12_vm1, %v9459_v30  ;;  %11098 = vst [vmem:[#allocation110_spill] sm:$0xff] %v9508_v9  ;;  %11101 = vst [vmem:[#allocation113_spill] sm:$0xff] %v9525_v14  ;;  %v9536_v36 = vsel %vm1652_vm4, %v1743_v16, %v1744_v29  ;;  %v1751_v16 = vrot.slane %v9084_v37, 2  ;;  %v9717_v30 = vld [vmem:[#allocation2 + $0xc8] sm:$0xff] }
  0xb9   :  { %7150 = vmatprep.mubr.msk.f32.mxu0 %vm12_vm1, %v9473_v38  ;;  %v9517_v50 = vsel %vm1652_vm4, %v1738_v35, %v1739_v40  ;;  %11102 = vst [vmem:[#allocation114_spill] sm:$0xff] %v9532_v13  ;;  %v1746_v35 = vrot.slane %v9046_v33, 2  ;;  %11103 = vst [vmem:[#allocation115_spill] sm:$0xff] %v9536_v36  ;;  %v11106_v40 = vld [vmem:[#allocation36_spill] sm:$0xff] }
  0xba   :  { %6709 = vmatmul.mubr.msk.f32.gmra.mrb[60].mxu1 %vm12_vm1, %v9484_v6  ;;  %11100 = vst [vmem:[#allocation112_spill] sm:$0xff] %v9517_v50  ;;  %v9553_v33 = vld [vmem:[#allocation2 + $0x18] sm:$0xff]  ;;  %v9570_v6 = vld [vmem:[#allocation2 + $0x20] sm:$0xff]  ;;  %v9583_v37 = vsel %vm1652_vm4, %v1749_v45, %v1751_v16  ;;  %v9696_v38 = vld [vmem:[#allocation2 + $0xb0] sm:$0xff] }
  0xbb   :  { %6711 = vmatprep.mubr.msk.f32.mxu1 %vm12_vm1, %v9493_v2  ;;  %11107 = vst [vmem:[#allocation36_spill] sm:$0xff] %v9553_v33  ;;  %v9560_v10 = vsel %vm1652_vm4, %v1744_v29, %v1746_v35  ;;  %v1754_v2 = vrot.slane %v9093_v46, 2  ;;  %11110 = vst [vmem:[#allocation120_spill] sm:$0xff] %v9570_v6  ;;  %v9576_v29 = vld [vmem:[#allocation2 + $0x30] sm:$0xff]  ;;  %v1756_v35 = vrot.slane %v9118_v31, 2 }
  0xbc   :  { %7151 = vmatmul.mubr.msk.f32.gmra.mrb[28].mxu0 %vm12_vm1, %v9490_v52  ;;  %11108 = vst [vmem:[#allocation118_spill] sm:$0xff] %v9560_v10  ;;  %11111 = vst [vmem:[#allocation121_spill] sm:$0xff] %v9583_v37  ;;  %v9675_v52 = vld [vmem:[#allocation2 + $0x98] sm:$0xff] }
  0xbd   :  { %7153 = vmatprep.mubr.msk.f32.mxu0 %vm12_vm1, %v9497_v39  ;;  %v9547_v39 = vld [vmem:[%s10746_s1 + $0xc] sm:$0xf]  ;;  %v9604_v31 = vsel %vm1652_vm4, %v1754_v2, %v1756_v35  ;;  %v1768_v35 = vrot.slane %v9189_v60, 2 }
  0xbe   :  { %6712 = vmatmul.mubr.msk.f32.gmra.mrb[62].mxu1 %vm12_vm1, %v9508_v9  ;;  %11105 = vst [vmem:[#allocation117_spill] sm:$0xff] %v9547_v39  ;;  %v9564_v9 = vsel %vm1652_vm4, %v1748_v11, %v1749_v45  ;;  %11113 = vst [vmem:[#allocation123_spill] sm:$0xff] %v9604_v31  ;;  %v1761_v45 = vrot.slane %v9150_v34, 2 }
  0xbf   :  { %6716 = vmatprep.mubr.msk.f32.mxu1 %vm12_vm1, %v9525_v14  ;;  %11109 = vst [vmem:[#allocation119_spill] sm:$0xff] %v9564_v9  ;;  %v11134_v14 = vld [vmem:[#allocation23_spill] sm:$0xff] }
  0xc0   :  { %7154 = vmatmul.mubr.msk.f32.gmra.mrb[30].mxu0 %vm12_vm1, %v9513_v1  ;;  %v9540_v1 = vld [vmem:[#allocation2 + $0x8] sm:$0xff] }
  0xc1   :  { %7156 = vmatprep.mubr.msk.f32.mxu0 %vm12_vm1, %v9517_v50  ;;  %11104 = vst [vmem:[#allocation116_spill] sm:$0xff] %v9540_v1  ;;  %v9654_v50 = vld [vmem:[#allocation2 + $0x80] sm:$0xff] }
  0xc2   :  { %6717 = vmatmul.mubr.msk.f32.vlgmr.msra.gmra.mrb[0].mxu1 %vm12_vm1, %v9540_v1  ;;  %v9780_v1 = vld [vmem:[#allocation2 + $0x110] sm:$0xff] }
  0xc3   :  { %6813 = vmatpush3.msk.msra.mxu1 %vm747_vm0, %v11106_v40  ;;  %6719 = vmatprep.mubr.msk.f32.mxu1 %vm12_vm1, %v9553_v33  ;;  %v1753_v40 = vrot.slane %v9091_v55, 2  ;;  %v1759_v33 = vrot.slane %v9127_v3, 2 }
  0xc4   :  { %7157 = vmatmul.mubr.msk.f32.gmra.mrb[32].mxu0 %vm12_vm1, %v9532_v13  ;;  %6910 = vmatprep.subr.msk.mxu1 %vm747_vm0, %v9547_v39  ;;  %v9633_v13 = vld [vmem:[#allocation2 + $0x68] sm:$0xff]  ;;  %v9759_v39 = vld [vmem:[#allocation2 + $0xf8] sm:$0xff] }
  0xc5   :  { %7159 = vmatprep.mubr.msk.f32.mxu0 %vm12_vm1, %v9536_v36  ;;  %v9587_v11 = vsel %vm1652_vm4, %v1753_v40, %v1754_v2  ;;  %v1763_v40 = vrot.slane %v9157_v57, 2  ;;  %v9612_v36 = vld [vmem:[#allocation2 + $0x50] sm:$0xff]  ;;  %v9625_v34 = vsel %vm1652_vm4, %v1759_v33, %v1761_v45 }
  0xc6   :  { %6720 = vmatmul.mubr.msk.f32.gmra.mrb[2].mxu1 %vm12_vm1, %v9570_v6  ;;  %11112 = vst [vmem:[#allocation122_spill] sm:$0xff] %v9587_v11  ;;  %v1758_v6 = vrot.slane %v9125_v49, 2  ;;  %11115 = vst [vmem:[#allocation125_spill] sm:$0xff] %v9625_v34 }
  0xc7   :  { %6722 = vmatprep.mubr.msk.f32.mxu1 %vm12_vm1, %v9576_v29 }
  0xc8   :  { %7160 = vmatmul.mubr.msk.f32.gmra.mrb[34].mxu0 %vm12_vm1, %v9560_v10  ;;  %v9591_v10 = vld [vmem:[#allocation2 + $0x38] sm:$0xff]  ;;  %v9608_v16 = vsel %vm1652_vm4, %v1758_v6, %v1759_v33  ;;  %v1766_v6 = vrot.slane %v9182_v62, 2  ;;  %v1771_v33 = vrot.slane %v9214_v43, 2 }
  0xc9   :  { %7162 = vmatprep.mubr.msk.f32.mxu0 %vm12_vm1, %v9564_v9  ;;  %v9597_v9 = vld [vmem:[#allocation2 + $0x48] sm:$0xff]  ;;  %11114 = vst [vmem:[#allocation124_spill] sm:$0xff] %v9608_v16 }
  0xca   :  { %6723 = vmatmul.mubr.msk.f32.gmra.mrb[4].mxu1 %vm12_vm1, %v9591_v10 }
  0xcb   :  { %6725 = vmatprep.mubr.msk.f32.mxu1 %vm12_vm1, %v9597_v9 }
  0xcc   :  { %7163 = vmatmul.mubr.msk.f32.gmra.mrb[36].mxu0 %vm12_vm1, %v9583_v37  ;;  %v1764_v37 = vrot.slane %v9159_v32, 2 }
  0xcd   :  { %7165 = vmatprep.mubr.msk.f32.mxu0 %vm12_vm1, %v9587_v11  ;;  %v9618_v11 = vld [vmem:[#allocation2 + $0x60] sm:$0xff] }
  0xce   :  { %6726 = vmatmul.mubr.msk.f32.gmra.mrb[6].mxu1 %vm12_vm1, %v9612_v36  ;;  %v9629_v2 = vsel %vm1652_vm4, %v1763_v40, %v1764_v37  ;;  %v9646_v62 = vsel %vm1652_vm4, %v1764_v37, %v1766_v6  ;;  %v1773_v40 = vrot.slane %v9221_v56, 2  ;;  %v1776_v37 = vrot.slane %v9246_v27, 2 }
  0xcf   :  { %6728 = vmatprep.mubr.msk.f32.mxu1 %vm12_vm1, %v9618_v11  ;;  %11116 = vst [vmem:[#allocation126_spill] sm:$0xff] %v9629_v2  ;;  %11117 = vst [vmem:[#allocation127_spill] sm:$0xff] %v9646_v62 }
  0xd0   :  { %7166 = vmatmul.mubr.msk.f32.gmra.mrb[38].mxu0 %vm12_vm1, %v9604_v31  ;;  %v1769_v31 = vrot.slane %v9191_v44, 2 }
  0xd1   :  { %7168 = vmatprep.mubr.msk.f32.mxu0 %vm12_vm1, %v9608_v16  ;;  %v9639_v16 = vld [vmem:[#allocation2 + $0x78] sm:$0xff] }
  0xd2   :  { %6729 = vmatmul.mubr.msk.f32.gmra.mrb[8].mxu1 %vm12_vm1, %v9633_v13  ;;  %v9650_v45 = vsel %vm1652_vm4, %v1768_v35, %v1769_v31  ;;  %v9667_v43 = vsel %vm1652_vm4, %v1769_v31, %v1771_v33  ;;  %v1778_v35 = vrot.slane %v9253_v28, 2  ;;  %v1781_v31 = vrot.slane %v9278_v7, 2 }
  0xd3   :  { %6731 = vmatprep.mubr.msk.f32.mxu1 %vm12_vm1, %v9639_v16  ;;  %11118 = vst [vmem:[#allocation128_spill] sm:$0xff] %v9650_v45  ;;  %11119 = vst [vmem:[#allocation129_spill] sm:$0xff] %v9667_v43 }
  0xd4   :  { %7169 = vmatmul.mubr.msk.f32.gmra.mrb[40].mxu0 %vm12_vm1, %v9625_v34  ;;  %v1774_v34 = vrot.slane %v9223_v54, 2 }
  0xd5   :  { %7171 = vmatprep.mubr.msk.f32.mxu0 %vm12_vm1, %v9629_v2  ;;  %v9660_v2 = vld [vmem:[#allocation2 + $0x90] sm:$0xff] }
  0xd6   :  { %6732 = vmatmul.mubr.msk.f32.gmra.mrb[10].mxu1 %vm12_vm1, %v9654_v50  ;;  %v9671_v6 = vsel %vm1652_vm4, %v1773_v40, %v1774_v34  ;;  %v9688_v27 = vsel %vm1652_vm4, %v1774_v34, %v1776_v37  ;;  %v1783_v40 = vrot.slane %v9285_v51, 2  ;;  %v1786_v34 = vrot.slane %v9310_v5, 2 }
  0xd7   :  { %6734 = vmatprep.mubr.msk.f32.mxu1 %vm12_vm1, %v9660_v2  ;;  %11120 = vst [vmem:[#allocation130_spill] sm:$0xff] %v9671_v6  ;;  %11121 = vst [vmem:[#allocation131_spill] sm:$0xff] %v9688_v27 }
  0xd8   :  { %7172 = vmatmul.mubr.msk.f32.gmra.mrb[42].mxu0 %vm12_vm1, %v9646_v62  ;;  %v1779_v62 = vrot.slane %v9255_v63, 2 }
  0xd9   :  { %7174 = vmatprep.mubr.msk.f32.mxu0 %vm12_vm1, %v9650_v45  ;;  %v9681_v45 = vld [vmem:[#allocation2 + $0xa8] sm:$0xff] }
  0xda   :  { %6735 = vmatmul.mubr.msk.f32.gmra.mrb[12].mxu1 %vm12_vm1, %v9675_v52  ;;  %v9692_v33 = vsel %vm1652_vm4, %v1778_v35, %v1779_v62  ;;  %v9709_v7 = vsel %vm1652_vm4, %v1779_v62, %v1781_v31  ;;  %v1788_v35 = vrot.slane %v9317_v61, 2  ;;  %v1791_v62 = vrot.slane %v9342_v53, 2 }
  0xdb   :  { %6737 = vmatprep.mubr.msk.f32.mxu1 %vm12_vm1, %v9681_v45  ;;  %11122 = vst [vmem:[#allocation132_spill] sm:$0xff] %v9692_v33  ;;  %11123 = vst [vmem:[#allocation133_spill] sm:$0xff] %v9709_v7 }
  0xdc   :  { %7175 = vmatmul.mubr.msk.f32.gmra.mrb[44].mxu0 %vm12_vm1, %v9667_v43  ;;  %v1784_v43 = vrot.slane %v9287_v0, 2 }
  0xdd   :  { %7177 = vmatprep.mubr.msk.f32.mxu0 %vm12_vm1, %v9671_v6  ;;  %v9702_v6 = vld [vmem:[#allocation2 + $0xc0] sm:$0xff] }
  0xde   :  { %6738 = vmatmul.mubr.msk.f32.gmra.mrb[14].mxu1 %vm12_vm1, %v9696_v38  ;;  %v9713_v37 = vsel %vm1652_vm4, %v1783_v40, %v1784_v43  ;;  %v9730_v5 = vsel %vm1652_vm4, %v1784_v43, %v1786_v34  ;;  %v1793_v40 = vrot.slane %v9349_v17, 2  ;;  %v1796_v43 = vrot.slane %v9374_v42, 2 }
  0xdf   :  { %6740 = vmatprep.mubr.msk.f32.mxu1 %vm12_vm1, %v9702_v6  ;;  %11124 = vst [vmem:[#allocation134_spill] sm:$0xff] %v9713_v37  ;;  %11125 = vst [vmem:[#allocation135_spill] sm:$0xff] %v9730_v5 }
  0xe0   :  { %7178 = vmatmul.mubr.msk.f32.gmra.mrb[46].mxu0 %vm12_vm1, %v9688_v27  ;;  %v1789_v27 = vrot.slane %v9319_v25, 2 }
  0xe1   :  { %7180 = vmatprep.mubr.msk.f32.mxu0 %vm12_vm1, %v9692_v33  ;;  %v9723_v33 = vld [vmem:[#allocation2 + $0xd8] sm:$0xff] }
  0xe2   :  { %6741 = vmatmul.mubr.msk.f32.gmra.mrb[16].mxu1 %vm12_vm1, %v9717_v30  ;;  %v9734_v31 = vsel %vm1652_vm4, %v1788_v35, %v1789_v27  ;;  %v9751_v53 = vsel %vm1652_vm4, %v1789_v27, %v1791_v62  ;;  %v1798_v35 = vrot.slane %v9381_v23, 2  ;;  %v1801_v27 = vrot.slane %v9406_v22, 2 }
  0xe3   :  { %6743 = vmatprep.mubr.msk.f32.mxu1 %vm12_vm1, %v9723_v33  ;;  %11126 = vst [vmem:[#allocation136_spill] sm:$0xff] %v9734_v31  ;;  %11127 = vst [vmem:[#allocation137_spill] sm:$0xff] %v9751_v53 }
  0xe4   :  { %7181 = vmatmul.mubr.msk.f32.gmra.mrb[48].mxu0 %vm12_vm1, %v9709_v7  ;;  %v1794_v7 = vrot.slane %v9351_v24, 2 }
  0xe5   :  { %7183 = vmatprep.mubr.msk.f32.mxu0 %vm12_vm1, %v9713_v37  ;;  %v9744_v37 = vld [vmem:[#allocation2 + $0xf0] sm:$0xff] }
  0xe6   :  { %6744 = vmatmul.mubr.msk.f32.gmra.mrb[18].mxu1 %vm12_vm1, %v9738_v47  ;;  %v9755_v34 = vsel %vm1652_vm4, %v1793_v40, %v1794_v7  ;;  %v9772_v42 = vsel %vm1652_vm4, %v1794_v7, %v1796_v43  ;;  %v1803_v40 = vrot.slane %v9413_v19, 2  ;;  %v11132_v7 = vld [vmem:[#allocation102_spill] sm:$0xff] }
  0xe7   :  { %6746 = vmatprep.mubr.msk.f32.mxu1 %vm12_vm1, %v9744_v37  ;;  %11128 = vst [vmem:[#allocation138_spill] sm:$0xff] %v9755_v34  ;;  %11129 = vst [vmem:[#allocation139_spill] sm:$0xff] %v9772_v42  ;;  %v1806_v43 = vrot.slane %v11132_v7, 2 }
  0xe8   :  { %7184 = vmatmul.mubr.msk.f32.gmra.mrb[50].mxu0 %vm12_vm1, %v9730_v5  ;;  %v1799_v5 = vrot.slane %v9383_v8, 2 }
  0xe9   :  { %7186 = vmatprep.mubr.msk.f32.mxu0 %vm12_vm1, %v9734_v31  ;;  %v9765_v31 = vld [vmem:[#allocation2 + $0x108] sm:$0xff] }
  0xea   :  { %6747 = vmatmul.mubr.msk.f32.gmra.mrb[20].mxu1 %vm12_vm1, %v9759_v39  ;;  %v9776_v62 = vsel %vm1652_vm4, %v1798_v35, %v1799_v5  ;;  %v9791_v22 = vsel %vm1652_vm4, %v1799_v5, %v1801_v27  ;;  %v11135_v5 = vld [vmem:[#allocation26_spill] sm:$0xff] }
  0xeb   :  { %6749 = vmatprep.mubr.msk.f32.mxu1 %vm12_vm1, %v9765_v31  ;;  %11130 = vst [vmem:[#allocation140_spill] sm:$0xff] %v9776_v62  ;;  %11131 = vst [vmem:[#allocation141_spill] sm:$0xff] %v9791_v22 }
  0xec   :  { %7187 = vmatmul.mubr.msk.f32.gmra.mrb[52].mxu0 %vm12_vm1, %v9751_v53  ;;  %v1804_v53 = vrot.slane %v9415_v26, 2  ;;  %v1809_v26 = vrot.slane %v9447_v18, 2  ;;  %v9820_v18 = vld [vmem:[#allocation2 + $0x340] sm:$0x3] }
  0xed   :  { %7189 = vmatprep.mubr.msk.f32.mxu0 %vm12_vm1, %v9755_v34  ;;  %v1808_v34 = vrot.slane %v9445_v4, 2  ;;  %11138 = vst [vmem:[#allocation142_spill] sm:$0xff] %v9820_v18 }
  0xee   :  { %6750 = vmatmul.mubr.msk.f32.gmra.mrb[22].mxu1 %vm12_vm1, %v9780_v1  ;;  %v9795_v35 = vsel %vm1652_vm4, %v1803_v40, %v1804_v53  ;;  %v9812_v27 = vsel %vm1652_vm4, %v1804_v53, %v1806_v43  ;;  %v1811_v40 = vrot.slane %v9470_v21, 2  ;;  %v3343_v53 = vrot.slane %v9820_v18, 2  ;;  %v11143_v43 = vld [vmem:[#allocation31_spill] sm:$0xff]  ;;  %v11159_v18 = vld [vmem:[#allocation116_spill] sm:$0xff] }
  0xef   :  { %6752 = vmatprep.mubr.msk.f32.mxu1 %vm12_vm1, %v8832_v12  ;;  %11133 = vst [vmem:[#allocation102_spill] sm:$0xff] %v9795_v35  ;;  %v9803_v12 = vld [vmem:[#allocation2 + $0x338] sm:$0xff]  ;;  %11136 = vst [vmem:[#allocation23_spill] sm:$0xff] %v9812_v27 }
  0xf0   :  { %7190 = vmatmul.mubr.msk.f32.gmra.mrb[54].mxu0 %vm12_vm1, %v9772_v42  ;;  %v9801_v42 = vld [vmem:[#allocation2 + $0x330] sm:$0xff]  ;;  %v9831_v21 = vsel %vm1652_vm4, %v1809_v26, %v1811_v40 }
  0xf1   :  { %7192 = vmatprep.mubr.msk.f32.mxu0 %vm12_vm1, %v9776_v62  ;;  %v3340_v7 = vrot.slane %v9801_v42, 2  ;;  %v3341_v62 = vrot.slane %v9803_v12, 2  ;;  %v11146_v40 = vld [vmem:[#allocation35_spill] sm:$0xff] }
  0xf2   :  { %6753 = vmatmul.mubr.msk.f32.gmra.mrb[24].mxu1 %vm12_vm1, %v11134_v14  ;;  %v9816_v14 = vsel %vm1652_vm4, %v1808_v34, %v1809_v26 }
  0xf3   :  { %6755 = vmatprep.mubr.msk.f32.mxu1 %vm12_vm1, %v11135_v5  ;;  %11137 = vst [vmem:[#allocation26_spill] sm:$0xff] %v9816_v14  ;;  %v11140_v5 = vld [vmem:[#allocation30_spill] sm:$0xff]  ;;  %v9835_v34 = vsel %vm1652_vm4, %v3340_v7, %v3341_v62  ;;  %v9846_v26 = vsel %vm1652_vm4, %v3341_v62, %v3343_v53  ;;  %v11147_v7 = vld [vmem:[#allocation44_spill] sm:$0xff]  ;;  %v11149_v53 = vld [vmem:[#allocation53_spill] sm:$0xff] }
  0xf4   :  { %7193 = vmatmul.mubr.msk.f32.gmra.mrb[56].mxu0 %vm12_vm1, %v9791_v22  ;;  %v11139_v22 = vld [vmem:[#allocation27_spill] sm:$0xff]  ;;  %11142 = vst [vmem:[#allocation30_spill] sm:$0xff] %v9835_v34  ;;  %11145 = vst [vmem:[#allocation31_spill] sm:$0xff] %v9846_v26  ;;  %v9861_v62 = vld [vmem:[%s10746_s1 + $0x20] sm:$0xf] }
  0xf5   :  { %7195 = vmatprep.mubr.msk.f32.mxu0 %vm12_vm1, %v9795_v35  ;;  %11141 = vst [vmem:[#allocation27_spill] sm:$0xff] %v9831_v21 }
  0xf6   :  { %6756 = vmatmul.mubr.msk.f32.gmra.mrb[26].mxu1 %vm12_vm1, %v11139_v22  ;;  %v11144_v22 = vld [vmem:[#allocation34_spill] sm:$0xff] }
  0xf7   :  { %6758 = vmatprep.mubr.msk.f32.mxu1 %vm12_vm1, %v11140_v5  ;;  %v11148_v5 = vld [vmem:[#allocation45_spill] sm:$0xff] }
  0xf8   :  { %7196 = vmatmul.mubr.msk.f32.gmra.mrb[58].mxu0 %vm12_vm1, %v9812_v27 }
  0xf9   :  { %7198 = vmatprep.mubr.msk.f32.mxu0 %vm12_vm1, %v9816_v14 }
  0xfa   :  { %6759 = vmatmul.mubr.msk.f32.gmra.mrb[28].mxu1 %vm12_vm1, %v11143_v43  ;;  %v9955_v43 = vld [vmem:[#allocation2 + $0x138] sm:$0xff] }
  0xfb   :  { %6761 = vmatprep.mubr.msk.f32.mxu1 %vm12_vm1, %v11144_v22  ;;  %11151 = vst [vmem:[#allocation35_spill] sm:$0xff] %v9955_v43  ;;  %v9961_v22 = vld [vmem:[#allocation2 + $0x140] sm:$0xff] }
  0xfc   :  { %7199 = vmatmul.mubr.msk.f32.gmra.mrb[60].mxu0 %vm12_vm1, %v9831_v21  ;;  %11152 = vst [vmem:[#allocation44_spill] sm:$0xff] %v9961_v22 }
  0xfd   :  { %7201 = vmatprep.mubr.msk.f32.mxu0 %vm12_vm1, %v9835_v34  ;;  %v11158_v34 = vld [vmem:[#allocation113_spill] sm:$0xff] }
  0xfe   :  { %6762 = vmatmul.mubr.msk.f32.gmra.mrb[30].mxu1 %vm12_vm1, %v11146_v40  ;;  %v9967_v40 = vld [vmem:[#allocation2 + $0x150] sm:$0xff] }
  0xff   :  { %6764 = vmatprep.mubr.msk.f32.mxu1 %vm12_vm1, %v11147_v7  ;;  %11153 = vst [vmem:[#allocation45_spill] sm:$0xff] %v9967_v40  ;;  %v9973_v7 = vld [vmem:[#allocation2 + $0x158] sm:$0xff] }
 0x100   :  { %7202 = vmatmul.mubr.msk.f32.gmra.mrb[62].mxu0 %vm12_vm1, %v9846_v26  ;;  %11154 = vst [vmem:[#allocation53_spill] sm:$0xff] %v9973_v7  ;;  %v9991_v26 = vld [vmem:[#allocation2 + $0x180] sm:$0xff] }
 0x101   :  { %7206 = vmatprep.mubr.msk.f32.mxu0 %vm12_vm1, %v9576_v29  ;;  %11157 = vst [vmem:[#allocation145_spill] sm:$0xff] %v9991_v26 }
 0x102   :  { %6765 = vmatmul.mubr.msk.f32.gmra.mrb[32].mxu1 %vm12_vm1, %v11148_v5  ;;  %v9979_v5 = vld [vmem:[#allocation2 + $0x168] sm:$0xff] }
 0x103   :  { %6767 = vmatprep.mubr.msk.f32.mxu1 %vm12_vm1, %v8998_v15  ;;  %v9943_v15 = vld [vmem:[#allocation2 + $0x120] sm:$0xff]  ;;  %11155 = vst [vmem:[#allocation143_spill] sm:$0xff] %v9979_v5 }
 0x104   :  { %7207 = vmatmul.mubr.msk.f32.vlgmr.msra.gmra.mrb[0].mxu0 %vm12_vm1, %v9591_v10 }
 0x105   :  { %7303 = vmatpush3.msk.msra.mxu0 %vm747_vm0, %v11149_v53  ;;  %7209 = vmatprep.mubr.msk.f32.mxu0 %vm12_vm1, %v9597_v9  ;;  %v9985_v53 = vld [vmem:[#allocation2 + $0x170] sm:$0xff] }
 0x106   :  { %7400 = vmatprep.subr.msk.mxu0 %vm747_vm0, %v9861_v62  ;;  %6768 = vmatmul.mubr.msk.f32.gmra.mrb[34].mxu1 %vm12_vm1, %v9000_v20  ;;  %v9949_v20 = vld [vmem:[#allocation2 + $0x128] sm:$0xff]  ;;  %11156 = vst [vmem:[#allocation144_spill] sm:$0xff] %v9985_v53 }
 0x107   :  { %6770 = vmatprep.mubr.msk.f32.mxu1 %vm12_vm1, %v9024_v48  ;;  %11150 = vst [vmem:[#allocation34_spill] sm:$0xff] %v9949_v20 }
 0x108   :  { %7210 = vmatmul.mubr.msk.f32.gmra.mrb[2].mxu0 %vm12_vm1, %v9612_v36 }
 0x109   :  { %7212 = vmatprep.mubr.msk.f32.mxu0 %vm12_vm1, %v9618_v11 }
 0x10a   :  { %6771 = vmatmul.mubr.msk.f32.gmra.mrb[36].mxu1 %vm12_vm1, %v9026_v41 }
 0x10b   :  { %6773 = vmatprep.mubr.msk.f32.mxu1 %vm12_vm1, %v9053_v58 }
 0x10c   :  { %7213 = vmatmul.mubr.msk.f32.gmra.mrb[4].mxu0 %vm12_vm1, %v9633_v13 }
 0x10d   :  { %7215 = vmatprep.mubr.msk.f32.mxu0 %vm12_vm1, %v9639_v16 }
 0x10e   :  { %6774 = vmatmul.mubr.msk.f32.gmra.mrb[38].mxu1 %vm12_vm1, %v9055_v59 }
 0x10f   :  { %6776 = vmatprep.mubr.msk.f32.mxu1 %vm12_vm1, %v9091_v55 }
 0x110   :  { %7216 = vmatmul.mubr.msk.f32.gmra.mrb[6].mxu0 %vm12_vm1, %v9654_v50 }
 0x111   :  { %7218 = vmatprep.mubr.msk.f32.mxu0 %vm12_vm1, %v9660_v2 }
 0x112   :  { %6777 = vmatmul.mubr.msk.f32.gmra.mrb[40].mxu1 %vm12_vm1, %v9093_v46 }
 0x113   :  { %6779 = vmatprep.mubr.msk.f32.mxu1 %vm12_vm1, %v9125_v49 }
 0x114   :  { %7219 = vmatmul.mubr.msk.f32.gmra.mrb[8].mxu0 %vm12_vm1, %v9675_v52 }
 0x115   :  { %7221 = vmatprep.mubr.msk.f32.mxu0 %vm12_vm1, %v9681_v45 }
 0x116   :  { %6780 = vmatmul.mubr.msk.f32.gmra.mrb[42].mxu1 %vm12_vm1, %v9127_v3 }
 0x117   :  { %6782 = vmatprep.mubr.msk.f32.mxu1 %vm12_vm1, %v9157_v57 }
 0x118   :  { %7222 = vmatmul.mubr.msk.f32.gmra.mrb[10].mxu0 %vm12_vm1, %v9696_v38 }
 0x119   :  { %7224 = vmatprep.mubr.msk.f32.mxu0 %vm12_vm1, %v9702_v6 }
 0x11a   :  { %6783 = vmatmul.mubr.msk.f32.gmra.mrb[44].mxu1 %vm12_vm1, %v9159_v32 }
 0x11b   :  { %6785 = vmatprep.mubr.msk.f32.mxu1 %vm12_vm1, %v9189_v60 }
 0x11c   :  { %7225 = vmatmul.mubr.msk.f32.gmra.mrb[12].mxu0 %vm12_vm1, %v9717_v30 }
 0x11d   :  { %7227 = vmatprep.mubr.msk.f32.mxu0 %vm12_vm1, %v9723_v33 }
 0x11e   :  { %6786 = vmatmul.mubr.msk.f32.gmra.mrb[46].mxu1 %vm12_vm1, %v9191_v44 }
 0x11f   :  { %6788 = vmatprep.mubr.msk.f32.mxu1 %vm12_vm1, %v9221_v56 }
 0x120   :  { %7228 = vmatmul.mubr.msk.f32.gmra.mrb[14].mxu0 %vm12_vm1, %v9738_v47 }
 0x121   :  { %7230 = vmatprep.mubr.msk.f32.mxu0 %vm12_vm1, %v9744_v37 }
 0x122   :  { %6789 = vmatmul.mubr.msk.f32.gmra.mrb[48].mxu1 %vm12_vm1, %v9223_v54 }
 0x123   :  { %6791 = vmatprep.mubr.msk.f32.mxu1 %vm12_vm1, %v9253_v28 }
 0x124   :  { %7231 = vmatmul.mubr.msk.f32.gmra.mrb[16].mxu0 %vm12_vm1, %v9759_v39 }
 0x125   :  { %7233 = vmatprep.mubr.msk.f32.mxu0 %vm12_vm1, %v9765_v31 }
 0x126   :  { %6792 = vmatmul.mubr.msk.f32.gmra.mrb[50].mxu1 %vm12_vm1, %v9255_v63 }
 0x127   :  { %6794 = vmatprep.mubr.msk.f32.mxu1 %vm12_vm1, %v9285_v51 }
 0x128   :  { %7234 = vmatmul.mubr.msk.f32.gmra.mrb[18].mxu0 %vm12_vm1, %v9780_v1 }
 0x129   :  { %7236 = vmatprep.mubr.msk.f32.mxu0 %vm12_vm1, %v9943_v15 }
 0x12a   :  { %6795 = vmatmul.mubr.msk.f32.gmra.mrb[52].mxu1 %vm12_vm1, %v9287_v0 }
 0x12b   :  { %6797 = vmatprep.mubr.msk.f32.mxu1 %vm12_vm1, %v9317_v61 }
 0x12c   :  { %7237 = vmatmul.mubr.msk.f32.gmra.mrb[20].mxu0 %vm12_vm1, %v9949_v20 }
 0x12d   :  { %7239 = vmatprep.mubr.msk.f32.mxu0 %vm12_vm1, %v9955_v43  ;;  %v8047_v43 = vld [vmem:[#allocation2 + $0x10] sm:$0x3] }
 0x12e   :  { %6798 = vmatmul.mubr.msk.f32.gmra.mrb[54].mxu1 %vm12_vm1, %v9319_v25  ;;  %v1656_v20 = vrot.slane %v8047_v43, 2 }
 0x12f   :  { %6800 = vmatprep.mubr.msk.f32.mxu1 %vm12_vm1, %v9349_v17 }
 0x130   :  { %7240 = vmatmul.mubr.msk.f32.gmra.mrb[22].mxu0 %vm12_vm1, %v9961_v22  ;;  %v11160_v22 = vld [vmem:[#allocation98_spill] sm:$0xff] }
 0x131   :  { %7242 = vmatprep.mubr.msk.f32.mxu0 %vm12_vm1, %v9967_v40  ;;  %v9997_v40 = vld [vmem:[#allocation2 + $0x198] sm:$0xff] }
 0x132   :  { %6801 = vmatmul.mubr.msk.f32.gmra.mrb[56].mxu1 %vm12_vm1, %v9351_v24 }
 0x133   :  { %6803 = vmatprep.mubr.msk.f32.mxu1 %vm12_vm1, %v9381_v23 }
 0x134   :  { %7243 = vmatmul.mubr.msk.f32.gmra.mrb[24].mxu0 %vm12_vm1, %v9973_v7  ;;  %v1653_v7 = vrot.slane %v11158_v34, 2  ;;  %v10009_v34 = vld [vmem:[#allocation2 + $0x1a0] sm:$0xff] }
 0x135   :  { %7245 = vmatprep.mubr.msk.f32.mxu0 %vm12_vm1, %v9979_v5  ;;  %v1654_v5 = vrot.slane %v11159_v18, 2 }
 0x136   :  { %6804 = vmatmul.mubr.msk.f32.gmra.mrb[58].mxu1 %vm12_vm1, %v9383_v8 }
 0x137   :  { %6806 = vmatprep.mubr.msk.f32.mxu1 %vm12_vm1, %v9413_v19  ;;  %v1655_v18 = vsel %vm1652_vm4, %v1653_v7, %v1654_v5  ;;  %v1657_v43 = vsel %vm1652_vm4, %v1654_v5, %v1656_v20  ;;  %v11164_v7 = vld [vmem:[#allocation49_spill] sm:$0xff]  ;;  %v10032_v20 = vld [vmem:[%s10746_s1 + $0x10] sm:$0xf]  ;;  %s8108_s1 = smov [#allocation3]  }
 0x138   :  { %7246 = vmatmul.mubr.msk.f32.gmra.mrb[26].mxu0 %vm12_vm1, %v9985_v53  ;;  %v10001_v53 = vld [vmem:[#allocation2 + $0x188] sm:$0xff]  ;;  %v11168_v5 = vld [vmem:[#allocation57_spill] sm:$0xff]  ;;  %s5430_s16 = sshll.u32 %s8108_s1, 4  ;;  %s5431_s16 = int_to_ptr.vmem [resolvable:$true] %s5430_s16 }
 0x139   :  { %7248 = vmatprep.mubr.msk.f32.mxu0 %vm12_vm1, %v9991_v26  ;;  %11161 = vst [vmem:[#allocation113_spill] sm:$0xff] %v10001_v53  ;;  %v11162_v26 = vld [vmem:[#allocation104_spill] sm:$0xff]  ;;  %s8083_s17 = scalar_lea.vmem %s5431_s16, 32  ;;  %p8088_p1 = scmp.lt.s32.totalorder %s5431_s16, %s5431_s16 }
 0x13a   :  { %6807 = vmatmul.mubr.msk.f32.gmra.mrb[60].mxu1 %vm12_vm1, %v11160_v22  ;;  %p8084_p0 = scmp.ne.s32.totalorder %s5431_s16, %s8083_s17  ;;  %p8089_p2 = scmp.lt.s32.totalorder %s8083_s17, %s8083_s17 }
 0x13b   :  { %6809 = vmatprep.mubr.msk.f32.mxu1 %vm12_vm1, %v9445_v4 }
 0x13c   :  { %7249 = vmatmul.mubr.msk.f32.gmra.mrb[28].mxu0 %vm12_vm1, %v10001_v53  ;;  %v11163_v53 = vld [vmem:[#allocation117_spill] sm:$0xff]  ;;  %p8090_p3 = por %p8089_p2, %p8088_p1 }
 0x13d   :  { %7251 = vmatprep.mubr.msk.f32.mxu0 %vm12_vm1, %v9997_v40 }
 0x13e   :  { %6810 = vmatmul.mubr.msk.f32.gmra.mrb[62].mxu1 %vm12_vm1, %v11162_v26  ;;  %p8091_p4 = pnand %p8090_p3, %p8084_p0 }
 0x13f   :  { %6814 = vmatprep.mubr.msk.f32.mxu1 %vm12_vm1, %v1655_v18  ;;  %v8051_v18 = vld [vmem:[#allocation2 + $0x1b8] sm:$0xff] }
 0x140   :  { %7252 = vmatmul.mubr.msk.f32.gmra.mrb[30].mxu0 %vm12_vm1, %v10009_v34 }
 0x141   :  { %7254 = vmatprep.mubr.msk.f32.mxu0 %vm12_vm1, %v9024_v48  ;;  %v11165_v48 = vld [vmem:[#allocation50_spill] sm:$0xff] }
 0x142   :  { %6815 = vmatmul.mubr.msk.f32.vlgmr.msra.gmra.mrb[0].mxu1 %vm12_vm1, %v1657_v43  ;;  %v1734_v43 = vrot.slane %v8051_v18, 2  ;;  %v11194_v18 = vld [vmem:[#allocation41_spill] sm:$0xff] }
 0x143   :  { %6911 = vmatpush3.msk.msra.mxu1 %vm747_vm0, %v11163_v53  ;;  %6817 = vmatprep.mubr.msk.f32.mxu1 %vm12_vm1, %v11164_v7  ;;  %v11169_v53 = vld [vmem:[#allocation59_spill] sm:$0xff] }
 0x144   :  { %7255 = vmatmul.mubr.msk.f32.gmra.mrb[32].mxu0 %vm12_vm1, %v9026_v41  ;;  %7498 = vmatprep.subr.msk.mxu1 %vm747_vm0, %v10032_v20  ;;  %v11166_v41 = vld [vmem:[#allocation52_spill] sm:$0xff]  ;;  %v10140_v7 = vld [vmem:[#allocation2 + $0x348] sm:$0xff] }
 0x145   :  { %7257 = vmatprep.mubr.msk.f32.mxu0 %vm12_vm1, %v9053_v58  ;;  %v11167_v58 = vld [vmem:[#allocation55_spill] sm:$0xff] }
 0x146   :  { %6818 = vmatmul.mubr.msk.f32.gmra.mrb[2].mxu1 %vm12_vm1, %v11165_v48  ;;  %v11191_v48 = vld [vmem:[#allocation106_spill] sm:$0xff] }
 0x147   :  { %6820 = vmatprep.mubr.msk.f32.mxu1 %vm12_vm1, %v11166_v41 }
 0x148   :  { %7258 = vmatmul.mubr.msk.f32.gmra.mrb[34].mxu0 %vm12_vm1, %v9055_v59  ;;  %v11170_v59 = vld [vmem:[#allocation61_spill] sm:$0xff] }
 0x149   :  { %7260 = vmatprep.mubr.msk.f32.mxu0 %vm12_vm1, %v9091_v55  ;;  %v11171_v55 = vld [vmem:[#allocation63_spill] sm:$0xff] }
 0x14a   :  { %6821 = vmatmul.mubr.msk.f32.gmra.mrb[4].mxu1 %vm12_vm1, %v11167_v58 }
 0x14b   :  { %6823 = vmatprep.mubr.msk.f32.mxu1 %vm12_vm1, %v11168_v5 }
 0x14c   :  { %7261 = vmatmul.mubr.msk.f32.gmra.mrb[36].mxu0 %vm12_vm1, %v9093_v46  ;;  %v11172_v46 = vld [vmem:[#allocation65_spill] sm:$0xff] }
 0x14d   :  { %7263 = vmatprep.mubr.msk.f32.mxu0 %vm12_vm1, %v9125_v49  ;;  %v11173_v49 = vld [vmem:[#allocation67_spill] sm:$0xff] }
 0x14e   :  { %6824 = vmatmul.mubr.msk.f32.gmra.mrb[6].mxu1 %vm12_vm1, %v11169_v53 }
 0x14f   :  { %6826 = vmatprep.mubr.msk.f32.mxu1 %vm12_vm1, %v11170_v59 }
 0x150   :  { %7264 = vmatmul.mubr.msk.f32.gmra.mrb[38].mxu0 %vm12_vm1, %v9127_v3  ;;  %v11174_v3 = vld [vmem:[#allocation69_spill] sm:$0xff] }
 0x151   :  { %7266 = vmatprep.mubr.msk.f32.mxu0 %vm12_vm1, %v9157_v57  ;;  %v11175_v57 = vld [vmem:[#allocation71_spill] sm:$0xff] }
 0x152   :  { %6827 = vmatmul.mubr.msk.f32.gmra.mrb[8].mxu1 %vm12_vm1, %v11171_v55 }
 0x153   :  { %6829 = vmatprep.mubr.msk.f32.mxu1 %vm12_vm1, %v11172_v46 }
 0x154   :  { %7267 = vmatmul.mubr.msk.f32.gmra.mrb[40].mxu0 %vm12_vm1, %v9159_v32  ;;  %v11176_v32 = vld [vmem:[#allocation73_spill] sm:$0xff] }
 0x155   :  { %7269 = vmatprep.mubr.msk.f32.mxu0 %vm12_vm1, %v9189_v60  ;;  %v11177_v60 = vld [vmem:[#allocation75_spill] sm:$0xff] }
 0x156   :  { %6830 = vmatmul.mubr.msk.f32.gmra.mrb[10].mxu1 %vm12_vm1, %v11173_v49 }
 0x157   :  { %6832 = vmatprep.mubr.msk.f32.mxu1 %vm12_vm1, %v11174_v3 }
 0x158   :  { %7270 = vmatmul.mubr.msk.f32.gmra.mrb[42].mxu0 %vm12_vm1, %v9191_v44  ;;  %v11178_v44 = vld [vmem:[#allocation77_spill] sm:$0xff] }
 0x159   :  { %7272 = vmatprep.mubr.msk.f32.mxu0 %vm12_vm1, %v9221_v56  ;;  %v11179_v56 = vld [vmem:[#allocation79_spill] sm:$0xff] }
 0x15a   :  { %6833 = vmatmul.mubr.msk.f32.gmra.mrb[12].mxu1 %vm12_vm1, %v11175_v57 }
 0x15b   :  { %6835 = vmatprep.mubr.msk.f32.mxu1 %vm12_vm1, %v11176_v32 }
 0x15c   :  { %7273 = vmatmul.mubr.msk.f32.gmra.mrb[44].mxu0 %vm12_vm1, %v9223_v54  ;;  %v11180_v54 = vld [vmem:[#allocation81_spill] sm:$0xff] }
 0x15d   :  { %7275 = vmatprep.mubr.msk.f32.mxu0 %vm12_vm1, %v9253_v28  ;;  %v11181_v28 = vld [vmem:[#allocation83_spill] sm:$0xff] }
 0x15e   :  { %6836 = vmatmul.mubr.msk.f32.gmra.mrb[14].mxu1 %vm12_vm1, %v11177_v60 }
 0x15f   :  { %6838 = vmatprep.mubr.msk.f32.mxu1 %vm12_vm1, %v11178_v44 }
 0x160   :  { %7276 = vmatmul.mubr.msk.f32.gmra.mrb[46].mxu0 %vm12_vm1, %v9255_v63  ;;  %v11182_v63 = vld [vmem:[#allocation85_spill] sm:$0xff] }
 0x161   :  { %7278 = vmatprep.mubr.msk.f32.mxu0 %vm12_vm1, %v9285_v51  ;;  %v11183_v51 = vld [vmem:[#allocation87_spill] sm:$0xff] }
 0x162   :  { %6839 = vmatmul.mubr.msk.f32.gmra.mrb[16].mxu1 %vm12_vm1, %v11179_v56 }
 0x163   :  { %6841 = vmatprep.mubr.msk.f32.mxu1 %vm12_vm1, %v11180_v54 }
 0x164   :  { %7279 = vmatmul.mubr.msk.f32.gmra.mrb[48].mxu0 %vm12_vm1, %v9287_v0  ;;  %v11184_v0 = vld [vmem:[#allocation89_spill] sm:$0xff] }
 0x165   :  { %7281 = vmatprep.mubr.msk.f32.mxu0 %vm12_vm1, %v9317_v61  ;;  %v11185_v61 = vld [vmem:[#allocation91_spill] sm:$0xff] }
 0x166   :  { %6842 = vmatmul.mubr.msk.f32.gmra.mrb[18].mxu1 %vm12_vm1, %v11181_v28 }
 0x167   :  { %6844 = vmatprep.mubr.msk.f32.mxu1 %vm12_vm1, %v11182_v63 }
 0x168   :  { %7282 = vmatmul.mubr.msk.f32.gmra.mrb[50].mxu0 %vm12_vm1, %v9319_v25  ;;  %v11186_v25 = vld [vmem:[#allocation93_spill] sm:$0xff] }
 0x169   :  { %7284 = vmatprep.mubr.msk.f32.mxu0 %vm12_vm1, %v9349_v17  ;;  %v11187_v17 = vld [vmem:[#allocation95_spill] sm:$0xff] }
 0x16a   :  { %6845 = vmatmul.mubr.msk.f32.gmra.mrb[20].mxu1 %vm12_vm1, %v11183_v51 }
 0x16b   :  { %6847 = vmatprep.mubr.msk.f32.mxu1 %vm12_vm1, %v11184_v0 }
 0x16c   :  { %7285 = vmatmul.mubr.msk.f32.gmra.mrb[52].mxu0 %vm12_vm1, %v9351_v24  ;;  %v11188_v24 = vld [vmem:[#allocation97_spill] sm:$0xff] }
 0x16d   :  { %7287 = vmatprep.mubr.msk.f32.mxu0 %vm12_vm1, %v9381_v23  ;;  %v11189_v23 = vld [vmem:[#allocation100_spill] sm:$0xff] }
 0x16e   :  { %6848 = vmatmul.mubr.msk.f32.gmra.mrb[22].mxu1 %vm12_vm1, %v11185_v61 }
 0x16f   :  { %6850 = vmatprep.mubr.msk.f32.mxu1 %vm12_vm1, %v11186_v25 }
 0x170   :  { %7288 = vmatmul.mubr.msk.f32.gmra.mrb[54].mxu0 %vm12_vm1, %v9383_v8  ;;  %v11190_v8 = vld [vmem:[#allocation103_spill] sm:$0xff] }
 0x171   :  { %7290 = vmatprep.mubr.msk.f32.mxu0 %vm12_vm1, %v9413_v19  ;;  %v8050_v19 = vld [vmem:[#allocation2 + $0x1b0] sm:$0xff] }
 0x172   :  { %6851 = vmatmul.mubr.msk.f32.gmra.mrb[24].mxu1 %vm12_vm1, %v11187_v17 }
 0x173   :  { %6853 = vmatprep.mubr.msk.f32.mxu1 %vm12_vm1, %v11188_v24  ;;  %v11197_v24 = vld [vmem:[#allocation112_spill] sm:$0xff] }
 0x174   :  { %7291 = vmatmul.mubr.msk.f32.gmra.mrb[56].mxu0 %vm12_vm1, %v11160_v22  ;;  %v1733_v22 = vrot.slane %v8050_v19, 2 }
 0x175   :  { %7293 = vmatprep.mubr.msk.f32.mxu0 %vm12_vm1, %v9445_v4  ;;  %v11192_v4 = vld [vmem:[#allocation39_spill] sm:$0xff] }
 0x176   :  { %6854 = vmatmul.mubr.msk.f32.gmra.mrb[26].mxu1 %vm12_vm1, %v11189_v23  ;;  %v10150_v23 = vld [vmem:[#allocation2 + $0x350] sm:$0xff]  ;;  %v1735_v19 = vsel %vm1652_vm4, %v1733_v22, %v1734_v43 }
 0x177   :  { %6856 = vmatprep.mubr.msk.f32.mxu1 %vm12_vm1, %v11190_v8  ;;  %11193 = vst [vmem:[#allocation116_spill] sm:$0xff] %v10150_v23  ;;  %v11198_v22 = vld [vmem:[#allocation8_spill] sm:$0xff] }
 0x178   :  { %7294 = vmatmul.mubr.msk.f32.gmra.mrb[58].mxu0 %vm12_vm1, %v11162_v26  ;;  %v8052_v26 = vld [vmem:[#allocation2 + $0x1c0] sm:$0x3] }
 0x179   :  { %7296 = vmatprep.mubr.msk.f32.mxu0 %vm12_vm1, %v9801_v42  ;;  %v1736_v8 = vrot.slane %v8052_v26, 2  ;;  %v11196_v26 = vld [vmem:[#allocation7_spill] sm:$0xff] }
 0x17a   :  { %6857 = vmatmul.mubr.msk.f32.gmra.mrb[28].mxu1 %vm12_vm1, %v11191_v48 }
 0x17b   :  { %6859 = vmatprep.mubr.msk.f32.mxu1 %vm12_vm1, %v11192_v4  ;;  %v1737_v48 = vsel %vm1652_vm4, %v1734_v43, %v1736_v8  ;;  %v11195_v4 = vld [vmem:[#allocation6_spill] sm:$0xff]  ;;  %v11200_v8 = vld [vmem:[#allocation9_spill] sm:$0xff]  ;;  %v11201_v43 = vld [vmem:[#allocation115_spill] sm:$0xff] }
 0x17c   :  { %7297 = vmatmul.mubr.msk.f32.gmra.mrb[60].mxu0 %vm12_vm1, %v9803_v12 }
 0x17d   :  { %7299 = vmatprep.mubr.msk.f32.mxu0 %vm12_vm1, %v10140_v7 }
 0x17e   :  { %6860 = vmatmul.mubr.msk.f32.gmra.mrb[30].mxu1 %vm12_vm1, %v11194_v18 }
 0x17f   :  { %6862 = vmatprep.mubr.msk.f32.mxu1 %vm12_vm1, %v1735_v19  ;;  %v11199_v19 = vld [vmem:[#allocation114_spill] sm:$0xff] }
 0x180   :  { %7300 = vmatmul.mubr.msk.f32.gmra.mrb[62].mxu0 %vm12_vm1, %v10150_v23 }
 0x181   :  { %7304 = vmatprep.mubr.msk.f32.mxu0 %vm12_vm1, %v11195_v4  ;;  %v11203_v4 = vld [vmem:[#allocation118_spill] sm:$0xff] }
 0x182   :  { %6863 = vmatmul.mubr.msk.f32.gmra.mrb[32].mxu1 %vm12_vm1, %v1737_v48  ;;  %v11202_v48 = vld [vmem:[#allocation10_spill] sm:$0xff] }
 0x183   :  { %6865 = vmatprep.mubr.msk.f32.mxu1 %vm12_vm1, %v11197_v24  ;;  %v11204_v24 = vld [vmem:[#allocation11_spill] sm:$0xff] }
 0x184   :  { %7305 = vmatmul.mubr.msk.f32.vlgmr.msra.gmra.mrb[0].mxu0 %vm12_vm1, %v11196_v26  ;;  %v11206_v26 = vld [vmem:[#allocation12_spill] sm:$0xff] }
 0x185   :  { %7401 = vmatpush3.msk.msra.mxu0 %vm747_vm0, %v9861_v62  ;;  %7307 = vmatprep.mubr.msk.f32.mxu0 %vm12_vm1, %v11198_v22  ;;  %v11205_v62 = vld [vmem:[#allocation119_spill] sm:$0xff]  ;;  %v11207_v22 = vld [vmem:[#allocation121_spill] sm:$0xff] }
 0x186   :  { %6866 = vmatmul.mubr.msk.f32.gmra.mrb[34].mxu1 %vm12_vm1, %v11199_v19  ;;  %v11208_v19 = vld [vmem:[#allocation13_spill] sm:$0xff] }
 0x187   :  { %6868 = vmatprep.mubr.msk.f32.mxu1 %vm12_vm1, %v11201_v43  ;;  %v11247_v43 = vld [vmem:[#allocation141_spill] sm:$0xff] }
 0x188   :  { %7308 = vmatmul.mubr.msk.f32.gmra.mrb[2].mxu0 %vm12_vm1, %v11200_v8  ;;  %v11209_v8 = vld [vmem:[#allocation122_spill] sm:$0xff] }
 0x189   :  { %7310 = vmatprep.mubr.msk.f32.mxu0 %vm12_vm1, %v11202_v48  ;;  %v11210_v48 = vld [vmem:[#allocation14_spill] sm:$0xff] }
 0x18a   :  { %6869 = vmatmul.mubr.msk.f32.gmra.mrb[36].mxu1 %vm12_vm1, %v11203_v4  ;;  %v11211_v4 = vld [vmem:[#allocation123_spill] sm:$0xff] }
 0x18b   :  { %6871 = vmatprep.mubr.msk.f32.mxu1 %vm12_vm1, %v11205_v62  ;;  %v11213_v62 = vld [vmem:[#allocation124_spill] sm:$0xff] }
 0x18c   :  { %7311 = vmatmul.mubr.msk.f32.gmra.mrb[4].mxu0 %vm12_vm1, %v11204_v24  ;;  %v11212_v24 = vld [vmem:[#allocation15_spill] sm:$0xff] }
 0x18d   :  { %7313 = vmatprep.mubr.msk.f32.mxu0 %vm12_vm1, %v11206_v26  ;;  %v11214_v26 = vld [vmem:[#allocation16_spill] sm:$0xff] }
 0x18e   :  { %6872 = vmatmul.mubr.msk.f32.gmra.mrb[38].mxu1 %vm12_vm1, %v11207_v22  ;;  %v11215_v22 = vld [vmem:[#allocation125_spill] sm:$0xff] }
 0x18f   :  { %6874 = vmatprep.mubr.msk.f32.mxu1 %vm12_vm1, %v11209_v8  ;;  %v11217_v8 = vld [vmem:[#allocation126_spill] sm:$0xff] }
 0x190   :  { %7314 = vmatmul.mubr.msk.f32.gmra.mrb[6].mxu0 %vm12_vm1, %v11208_v19  ;;  %v11216_v19 = vld [vmem:[#allocation17_spill] sm:$0xff] }
 0x191   :  { %7316 = vmatprep.mubr.msk.f32.mxu0 %vm12_vm1, %v11210_v48  ;;  %v11218_v48 = vld [vmem:[#allocation18_spill] sm:$0xff] }
 0x192   :  { %6875 = vmatmul.mubr.msk.f32.gmra.mrb[40].mxu1 %vm12_vm1, %v11211_v4  ;;  %v11219_v4 = vld [vmem:[#allocation127_spill] sm:$0xff] }
 0x193   :  { %6877 = vmatprep.mubr.msk.f32.mxu1 %vm12_vm1, %v11213_v62  ;;  %v11221_v62 = vld [vmem:[#allocation128_spill] sm:$0xff] }
 0x194   :  { %7317 = vmatmul.mubr.msk.f32.gmra.mrb[8].mxu0 %vm12_vm1, %v11212_v24  ;;  %v11220_v24 = vld [vmem:[#allocation19_spill] sm:$0xff] }
 0x195   :  { %7319 = vmatprep.mubr.msk.f32.mxu0 %vm12_vm1, %v11214_v26  ;;  %v11222_v26 = vld [vmem:[#allocation20_spill] sm:$0xff] }
 0x196   :  { %6878 = vmatmul.mubr.msk.f32.gmra.mrb[42].mxu1 %vm12_vm1, %v11215_v22  ;;  %v11223_v22 = vld [vmem:[#allocation129_spill] sm:$0xff] }
 0x197   :  { %6880 = vmatprep.mubr.msk.f32.mxu1 %vm12_vm1, %v11217_v8  ;;  %v11225_v8 = vld [vmem:[#allocation130_spill] sm:$0xff] }
 0x198   :  { %7320 = vmatmul.mubr.msk.f32.gmra.mrb[10].mxu0 %vm12_vm1, %v11216_v19  ;;  %v11224_v19 = vld [vmem:[#allocation21_spill] sm:$0xff] }
 0x199   :  { %7322 = vmatprep.mubr.msk.f32.mxu0 %vm12_vm1, %v11218_v48  ;;  %v11226_v48 = vld [vmem:[#allocation22_spill] sm:$0xff] }
 0x19a   :  { %6881 = vmatmul.mubr.msk.f32.gmra.mrb[44].mxu1 %vm12_vm1, %v11219_v4  ;;  %v11227_v4 = vld [vmem:[#allocation131_spill] sm:$0xff] }
 0x19b   :  { %6883 = vmatprep.mubr.msk.f32.mxu1 %vm12_vm1, %v11221_v62  ;;  %v11229_v62 = vld [vmem:[#allocation132_spill] sm:$0xff] }
 0x19c   :  { %7323 = vmatmul.mubr.msk.f32.gmra.mrb[12].mxu0 %vm12_vm1, %v11220_v24  ;;  %v11228_v24 = vld [vmem:[#allocation24_spill] sm:$0xff] }
 0x19d   :  { %7325 = vmatprep.mubr.msk.f32.mxu0 %vm12_vm1, %v11222_v26  ;;  %v11230_v26 = vld [vmem:[#allocation25_spill] sm:$0xff] }
 0x19e   :  { %6884 = vmatmul.mubr.msk.f32.gmra.mrb[46].mxu1 %vm12_vm1, %v11223_v22  ;;  %v11231_v22 = vld [vmem:[#allocation133_spill] sm:$0xff] }
 0x19f   :  { %6886 = vmatprep.mubr.msk.f32.mxu1 %vm12_vm1, %v11225_v8  ;;  %v11233_v8 = vld [vmem:[#allocation134_spill] sm:$0xff] }
 0x1a0   :  { %7326 = vmatmul.mubr.msk.f32.gmra.mrb[14].mxu0 %vm12_vm1, %v11224_v19  ;;  %v11232_v19 = vld [vmem:[#allocation28_spill] sm:$0xff] }
 0x1a1   :  { %7328 = vmatprep.mubr.msk.f32.mxu0 %vm12_vm1, %v11226_v48  ;;  %v11234_v48 = vld [vmem:[#allocation29_spill] sm:$0xff] }
 0x1a2   :  { %6887 = vmatmul.mubr.msk.f32.gmra.mrb[48].mxu1 %vm12_vm1, %v11227_v4  ;;  %v11235_v4 = vld [vmem:[#allocation135_spill] sm:$0xff] }
 0x1a3   :  { %6889 = vmatprep.mubr.msk.f32.mxu1 %vm12_vm1, %v11229_v62  ;;  %v11237_v62 = vld [vmem:[#allocation136_spill] sm:$0xff] }
 0x1a4   :  { %7329 = vmatmul.mubr.msk.f32.gmra.mrb[16].mxu0 %vm12_vm1, %v11228_v24  ;;  %v11236_v24 = vld [vmem:[#allocation32_spill] sm:$0xff] }
 0x1a5   :  { %7331 = vmatprep.mubr.msk.f32.mxu0 %vm12_vm1, %v11230_v26  ;;  %v11238_v26 = vld [vmem:[#allocation33_spill] sm:$0xff] }
 0x1a6   :  { %6890 = vmatmul.mubr.msk.f32.gmra.mrb[50].mxu1 %vm12_vm1, %v11231_v22  ;;  %v11239_v22 = vld [vmem:[#allocation137_spill] sm:$0xff] }
 0x1a7   :  { %6892 = vmatprep.mubr.msk.f32.mxu1 %vm12_vm1, %v11233_v8  ;;  %v11241_v8 = vld [vmem:[#allocation138_spill] sm:$0xff] }
 0x1a8   :  { %7332 = vmatmul.mubr.msk.f32.gmra.mrb[18].mxu0 %vm12_vm1, %v11232_v19  ;;  %v11240_v19 = vld [vmem:[#allocation37_spill] sm:$0xff] }
 0x1a9   :  { %7334 = vmatprep.mubr.msk.f32.mxu0 %vm12_vm1, %v11234_v48  ;;  %v11242_v48 = vld [vmem:[#allocation38_spill] sm:$0xff] }
 0x1aa   :  { %6893 = vmatmul.mubr.msk.f32.gmra.mrb[52].mxu1 %vm12_vm1, %v11235_v4  ;;  %v11243_v4 = vld [vmem:[#allocation139_spill] sm:$0xff] }
 0x1ab   :  { %6895 = vmatprep.mubr.msk.f32.mxu1 %vm12_vm1, %v11237_v62  ;;  %v11245_v62 = vld [vmem:[#allocation140_spill] sm:$0xff] }
 0x1ac   :  { %7335 = vmatmul.mubr.msk.f32.gmra.mrb[20].mxu0 %vm12_vm1, %v11236_v24  ;;  %v11244_v24 = vld [vmem:[#allocation42_spill] sm:$0xff] }
 0x1ad   :  { %7337 = vmatprep.mubr.msk.f32.mxu0 %vm12_vm1, %v11238_v26  ;;  %v11246_v26 = vld [vmem:[#allocation43_spill] sm:$0xff] }
 0x1ae   :  { %6896 = vmatmul.mubr.msk.f32.gmra.mrb[54].mxu1 %vm12_vm1, %v11239_v22  ;;  %v4276_v22 = vrot.slane %v10009_v34, 1 }
 0x1af   :  { %6898 = vmatprep.mubr.msk.f32.mxu1 %vm12_vm1, %v11241_v8  ;;  %v10268_v8 = vld [vmem:[#allocation2 + $0x1a8] sm:$0x3] }
 0x1b0   :  { %7338 = vmatmul.mubr.msk.f32.gmra.mrb[22].mxu0 %vm12_vm1, %v11240_v19  ;;  %v4275_v19 = vrot.slane %v9997_v40, 1 }
 0x1b1   :  { %7340 = vmatprep.mubr.msk.f32.mxu0 %vm12_vm1, %v11242_v48  ;;  %v11248_v48 = vld [vmem:[#allocation46_spill] sm:$0xff] }
 0x1b2   :  { %6899 = vmatmul.mubr.msk.f32.gmra.mrb[56].mxu1 %vm12_vm1, %v11243_v4  ;;  %v11250_v4 = vld [vmem:[#allocation48_spill] sm:$0xff] }
 0x1b3   :  { %6901 = vmatprep.mubr.msk.f32.mxu1 %vm12_vm1, %v11245_v62  ;;  %v4277_v62 = vsel %vm456_vm3, %v4275_v19, %v4276_v22  ;;  %v11252_v19 = vld [vmem:[#allocation56_spill] sm:$0xff] }
 0x1b4   :  { %7341 = vmatmul.mubr.msk.f32.gmra.mrb[24].mxu0 %vm12_vm1, %v11244_v24  ;;  %v11249_v24 = vld [vmem:[#allocation47_spill] sm:$0xff] }
 0x1b5   :  { %7343 = vmatprep.mubr.msk.f32.mxu0 %vm12_vm1, %v11246_v26  ;;  %v4278_v26 = vrot.slane %v10268_v8, 1 }
 0x1b6   :  { %6902 = vmatmul.mubr.msk.f32.gmra.mrb[58].mxu1 %vm12_vm1, %v11247_v43  ;;  %v10409_v43 = vld [vmem:[#allocation2 + $0x358] sm:$0x3] }
 0x1b7   :  { %6904 = vmatprep.mubr.msk.f32.mxu1 %vm12_vm1, %v9795_v35  ;;  %v4281_v35 = vrot.slane %v10150_v23, 1  ;;  %v11289_v23 = vld [vmem:[#allocation144_spill] sm:$0xff] }
 0x1b8   :  { %7344 = vmatmul.mubr.msk.f32.gmra.mrb[26].mxu0 %vm12_vm1, %v11248_v48  ;;  %v4279_v48 = vsel %vm456_vm3, %v4276_v22, %v4278_v26  ;;  %v11256_v22 = vld [vmem:[#allocation62_spill] sm:$0xff]  ;;  %v11277_v26 = vld [vmem:[#allocation105_spill] sm:$0xff] }
 0x1b9   :  { %7346 = vmatprep.mubr.msk.f32.mxu0 %vm12_vm1, %v11249_v24  ;;  %v11251_v24 = vld [vmem:[#allocation36_spill] sm:$0xff] }
 0x1ba   :  { %6905 = vmatmul.mubr.msk.f32.gmra.mrb[60].mxu1 %vm12_vm1, %v9812_v27  ;;  %v11253_v27 = vld [vmem:[#allocation120_spill] sm:$0xff] }
 0x1bb   :  { %6907 = vmatprep.mubr.msk.f32.mxu1 %vm12_vm1, %v9816_v14  ;;  %v11283_v14 = vld [vmem:[#allocation108_spill] sm:$0xff] }
 0x1bc   :  { %7347 = vmatmul.mubr.msk.f32.gmra.mrb[28].mxu0 %vm12_vm1, %v11250_v4  ;;  %v11254_v4 = vld [vmem:[#allocation58_spill] sm:$0xff] }
 0x1bd   :  { %7349 = vmatprep.mubr.msk.f32.mxu0 %vm12_vm1, %v4277_v62  ;;  %v11255_v62 = vld [vmem:[#allocation60_spill] sm:$0xff] }
 0x1be   :  { %6908 = vmatmul.mubr.msk.f32.gmra.mrb[62].mxu1 %vm12_vm1, %v9831_v21  ;;  %v11281_v21 = vld [vmem:[#allocation40_spill] sm:$0xff] }
 0x1bf   :  { %6912 = vmatprep.mubr.msk.f32.mxu1 %vm12_vm1, %v11251_v24  ;;  %v2869_v24 = vrot.slane %v9803_v12, 1 }
 0x1c0   :  { %7350 = vmatmul.mubr.msk.f32.gmra.mrb[30].mxu0 %vm12_vm1, %v4279_v48  ;;  %v11279_v48 = vld [vmem:[#allocation107_spill] sm:$0xff] }
 0x1c1   :  { %7352 = vmatprep.mubr.msk.f32.mxu0 %vm12_vm1, %v11252_v19 }
 0x1c2   :  { %6913 = vmatmul.mubr.msk.f32.vlgmr.msra.gmra.mrb[0].mxu1 %vm12_vm1, %v11253_v27  ;;  %v11257_v27 = vld [vmem:[#allocation64_spill] sm:$0xff] }
 0x1c3   :  { %7499 = vmatpush3.msk.msra.mxu1 %vm747_vm0, %v10032_v20  ;;  %6915 = vmatprep.mubr.msk.f32.mxu1 %vm12_vm1, %v9576_v29  ;;  %v11258_v20 = vld [vmem:[#allocation66_spill] sm:$0xff]  ;;  %v11259_v29 = vld [vmem:[#allocation68_spill] sm:$0xff] }
 0x1c4   :  { %7353 = vmatmul.mubr.msk.f32.gmra.mrb[32].mxu0 %vm12_vm1, %v11254_v4 }
 0x1c5   :  { %7355 = vmatprep.mubr.msk.f32.mxu0 %vm12_vm1, %v11255_v62 }
 0x1c6   :  { %6916 = vmatmul.mubr.msk.f32.gmra.mrb[2].mxu1 %vm12_vm1, %v9591_v10  ;;  %v11260_v10 = vld [vmem:[#allocation70_spill] sm:$0xff] }
 0x1c7   :  { %6918 = vmatprep.mubr.msk.f32.mxu1 %vm12_vm1, %v9597_v9  ;;  %v11261_v9 = vld [vmem:[#allocation72_spill] sm:$0xff] }
 0x1c8   :  { %7356 = vmatmul.mubr.msk.f32.gmra.mrb[34].mxu0 %vm12_vm1, %v11256_v22 }
 0x1c9   :  { %7358 = vmatprep.mubr.msk.f32.mxu0 %vm12_vm1, %v11257_v27 }
 0x1ca   :  { %6919 = vmatmul.mubr.msk.f32.gmra.mrb[4].mxu1 %vm12_vm1, %v9612_v36  ;;  %v11262_v36 = vld [vmem:[#allocation74_spill] sm:$0xff] }
 0x1cb   :  { %6921 = vmatprep.mubr.msk.f32.mxu1 %vm12_vm1, %v9618_v11  ;;  %v11263_v11 = vld [vmem:[#allocation76_spill] sm:$0xff] }
 0x1cc   :  { %7359 = vmatmul.mubr.msk.f32.gmra.mrb[36].mxu0 %vm12_vm1, %v11258_v20 }
 0x1cd   :  { %7361 = vmatprep.mubr.msk.f32.mxu0 %vm12_vm1, %v11259_v29 }
 0x1ce   :  { %6922 = vmatmul.mubr.msk.f32.gmra.mrb[6].mxu1 %vm12_vm1, %v9633_v13  ;;  %v11264_v13 = vld [vmem:[#allocation78_spill] sm:$0xff] }
 0x1cf   :  { %6924 = vmatprep.mubr.msk.f32.mxu1 %vm12_vm1, %v9639_v16  ;;  %v11265_v16 = vld [vmem:[#allocation80_spill] sm:$0xff] }
 0x1d0   :  { %7362 = vmatmul.mubr.msk.f32.gmra.mrb[38].mxu0 %vm12_vm1, %v11260_v10 }
 0x1d1   :  { %7364 = vmatprep.mubr.msk.f32.mxu0 %vm12_vm1, %v11261_v9 }
 0x1d2   :  { %6925 = vmatmul.mubr.msk.f32.gmra.mrb[8].mxu1 %vm12_vm1, %v9654_v50  ;;  %v11266_v50 = vld [vmem:[#allocation82_spill] sm:$0xff] }
 0x1d3   :  { %6927 = vmatprep.mubr.msk.f32.mxu1 %vm12_vm1, %v9660_v2  ;;  %v11267_v2 = vld [vmem:[#allocation84_spill] sm:$0xff] }
 0x1d4   :  { %7365 = vmatmul.mubr.msk.f32.gmra.mrb[40].mxu0 %vm12_vm1, %v11262_v36 }
 0x1d5   :  { %7367 = vmatprep.mubr.msk.f32.mxu0 %vm12_vm1, %v11263_v11 }
 0x1d6   :  { %6928 = vmatmul.mubr.msk.f32.gmra.mrb[10].mxu1 %vm12_vm1, %v9675_v52  ;;  %v11268_v52 = vld [vmem:[#allocation86_spill] sm:$0xff] }
 0x1d7   :  { %6930 = vmatprep.mubr.msk.f32.mxu1 %vm12_vm1, %v9681_v45  ;;  %v11269_v45 = vld [vmem:[#allocation88_spill] sm:$0xff] }
 0x1d8   :  { %7368 = vmatmul.mubr.msk.f32.gmra.mrb[42].mxu0 %vm12_vm1, %v11264_v13 }
 0x1d9   :  { %7370 = vmatprep.mubr.msk.f32.mxu0 %vm12_vm1, %v11265_v16 }
 0x1da   :  { %6931 = vmatmul.mubr.msk.f32.gmra.mrb[12].mxu1 %vm12_vm1, %v9696_v38  ;;  %v11270_v38 = vld [vmem:[#allocation90_spill] sm:$0xff] }
 0x1db   :  { %6933 = vmatprep.mubr.msk.f32.mxu1 %vm12_vm1, %v9702_v6  ;;  %v11271_v6 = vld [vmem:[#allocation92_spill] sm:$0xff] }
 0x1dc   :  { %7371 = vmatmul.mubr.msk.f32.gmra.mrb[44].mxu0 %vm12_vm1, %v11266_v50 }
 0x1dd   :  { %7373 = vmatprep.mubr.msk.f32.mxu0 %vm12_vm1, %v11267_v2 }
 0x1de   :  { %6934 = vmatmul.mubr.msk.f32.gmra.mrb[14].mxu1 %vm12_vm1, %v9717_v30  ;;  %v11272_v30 = vld [vmem:[#allocation94_spill] sm:$0xff] }
 0x1df   :  { %6936 = vmatprep.mubr.msk.f32.mxu1 %vm12_vm1, %v9723_v33  ;;  %v11273_v33 = vld [vmem:[#allocation96_spill] sm:$0xff] }
 0x1e0   :  { %7374 = vmatmul.mubr.msk.f32.gmra.mrb[46].mxu0 %vm12_vm1, %v11268_v52 }
 0x1e1   :  { %7376 = vmatprep.mubr.msk.f32.mxu0 %vm12_vm1, %v11269_v45 }
 0x1e2   :  { %6937 = vmatmul.mubr.msk.f32.gmra.mrb[16].mxu1 %vm12_vm1, %v9738_v47  ;;  %v11274_v47 = vld [vmem:[#allocation99_spill] sm:$0xff] }
 0x1e3   :  { %6939 = vmatprep.mubr.msk.f32.mxu1 %vm12_vm1, %v9744_v37  ;;  %v11275_v37 = vld [vmem:[#allocation101_spill] sm:$0xff] }
 0x1e4   :  { %7377 = vmatmul.mubr.msk.f32.gmra.mrb[48].mxu0 %vm12_vm1, %v11270_v38 }
 0x1e5   :  { %7379 = vmatprep.mubr.msk.f32.mxu0 %vm12_vm1, %v11271_v6 }
 0x1e6   :  { %6940 = vmatmul.mubr.msk.f32.gmra.mrb[18].mxu1 %vm12_vm1, %v9759_v39  ;;  %v11276_v39 = vld [vmem:[#allocation34_spill] sm:$0xff] }
 0x1e7   :  { %6942 = vmatprep.mubr.msk.f32.mxu1 %vm12_vm1, %v9765_v31  ;;  %v11278_v31 = vld [vmem:[#allocation35_spill] sm:$0xff] }
 0x1e8   :  { %7380 = vmatmul.mubr.msk.f32.gmra.mrb[50].mxu0 %vm12_vm1, %v11272_v30 }
 0x1e9   :  { %7382 = vmatprep.mubr.msk.f32.mxu0 %vm12_vm1, %v11273_v33 }
 0x1ea   :  { %6943 = vmatmul.mubr.msk.f32.gmra.mrb[20].mxu1 %vm12_vm1, %v9780_v1  ;;  %v2868_v1 = vrot.slane %v9801_v42, 1 }
 0x1eb   :  { %6945 = vmatprep.mubr.msk.f32.mxu1 %vm12_vm1, %v9943_v15  ;;  %v11280_v15 = vld [vmem:[#allocation44_spill] sm:$0xff] }
 0x1ec   :  { %7383 = vmatmul.mubr.msk.f32.gmra.mrb[52].mxu0 %vm12_vm1, %v11274_v47 }
 0x1ed   :  { %7385 = vmatprep.mubr.msk.f32.mxu0 %vm12_vm1, %v11275_v37  ;;  %v10407_v37 = vsel %vm456_vm3, %v2868_v1, %v2869_v24  ;;  %v4283_v1 = vrot.slane %v10409_v43, 1 }
 0x1ee   :  { %6946 = vmatmul.mubr.msk.f32.gmra.mrb[22].mxu1 %vm12_vm1, %v11276_v39  ;;  %v11282_v39 = vld [vmem:[#allocation45_spill] sm:$0xff]  ;;  %11285 = vst [vmem:[#allocation98_spill] sm:$0xff] %v10407_v37 }
 0x1ef   :  { %6948 = vmatprep.mubr.msk.f32.mxu1 %vm12_vm1, %v11278_v31  ;;  %v11284_v31 = vld [vmem:[#allocation142_spill] sm:$0xff] }
 0x1f0   :  { %7386 = vmatmul.mubr.msk.f32.gmra.mrb[54].mxu0 %vm12_vm1, %v11277_v26  ;;  %v2871_v26 = vrot.slane %v11284_v31, 1 }
 0x1f1   :  { %7388 = vmatprep.mubr.msk.f32.mxu0 %vm12_vm1, %v11279_v48  ;;  %v4280_v48 = vrot.slane %v10140_v7, 1 }
 0x1f2   :  { %6949 = vmatmul.mubr.msk.f32.gmra.mrb[24].mxu1 %vm12_vm1, %v11280_v15  ;;  %v11286_v15 = vld [vmem:[#allocation53_spill] sm:$0xff]  ;;  %v10420_v31 = vsel %vm456_vm3, %v2869_v24, %v2871_v26  ;;  %v8053_v26 = vld [vmem:[#allocation2 + $0x1c8] sm:$0xff] }
 0x1f3   :  { %6951 = vmatprep.mubr.msk.f32.mxu1 %vm12_vm1, %v11282_v39  ;;  %v11288_v39 = vld [vmem:[#allocation143_spill] sm:$0xff] }
 0x1f4   :  { %7389 = vmatmul.mubr.msk.f32.gmra.mrb[56].mxu0 %vm12_vm1, %v11281_v21  ;;  %v11287_v21 = vld [vmem:[#allocation110_spill] sm:$0xff] }
 0x1f5   :  { %7391 = vmatprep.mubr.msk.f32.mxu0 %vm12_vm1, %v11283_v14  ;;  %v4282_v14 = vsel %vm456_vm3, %v4280_v48, %v4281_v35  ;;  %v8076_v48 = vld [vmem:[#allocation2 + $0x2d8] sm:$0xff]  ;;  %v8077_v24 = vld [vmem:[#allocation2 + $0x2e8] sm:$0xff] }
 0x1f6   :  { %6952 = vmatmul.mubr.msk.f32.gmra.mrb[26].mxu1 %vm12_vm1, %v11286_v15  ;;  %v11290_v15 = vld [vmem:[#allocation145_spill] sm:$0xff] }
 0x1f7   :  { %6954 = vmatprep.mubr.msk.f32.mxu1 %vm12_vm1, %v11288_v39  ;;  %v4284_v39 = vsel %vm456_vm3, %v4281_v35, %v4283_v1  ;;  %v8056_v35 = vld [vmem:[#allocation2 + $0x1e8] sm:$0xff]  ;;  %v8078_v1 = vld [vmem:[#allocation2 + $0x2f0] sm:$0xff] }
 0x1f8   :  { %7392 = vmatmul.mubr.msk.f32.gmra.mrb[58].mxu0 %vm12_vm1, %v11287_v21 }
 0x1f9   :  { %7394 = vmatprep.mubr.msk.f32.mxu0 %vm12_vm1, %v10407_v37  ;;  %v11291_v37 = vld [vmem:[#allocation113_spill] sm:$0xff] }
 0x1fa   :  { %6955 = vmatmul.mubr.msk.f32.gmra.mrb[28].mxu1 %vm12_vm1, %v11289_v23  ;;  %v8054_v23 = vld [vmem:[#allocation2 + $0x1d0] sm:$0xff] }
 0x1fb   :  { %6957 = vmatprep.mubr.msk.f32.mxu1 %vm12_vm1, %v11290_v15  ;;  %v8079_v15 = vld [vmem:[#allocation2 + $0x300] sm:$0xff] }
 0x1fc   :  { %7395 = vmatmul.mubr.msk.f32.gmra.mrb[60].mxu0 %vm12_vm1, %v10420_v31 }
 0x1fd   :  { %7397 = vmatprep.mubr.msk.f32.mxu0 %vm12_vm1, %v4282_v14  ;;  %v8055_v14 = vld [vmem:[#allocation2 + $0x1e0] sm:$0xff] }
 0x1fe   :  { %6958 = vmatmul.mubr.msk.f32.gmra.mrb[30].mxu1 %vm12_vm1, %v11291_v37  ;;  %v8057_v37 = vld [vmem:[#allocation2 + $0x1f8] sm:$0xff] }
 0x1ff   :  { %6960 = vmatprep.mubr.msk.f32.mxu1 %vm12_vm1, %v8053_v26  ;;  %v4747_v26 = vrot.slane %v9997_v40, 2  ;;  %v11298_v40 = vld [vmem:[#allocation111_spill] sm:$0xff] }
 0x200   :  { %7398 = vmatmul.mubr.msk.f32.gmra.mrb[62].mxu0 %vm12_vm1, %v4284_v39  ;;  %v11296_v39 = vld [vmem:[#allocation39_spill] sm:$0xff] }
 0x201   :  { %7402 = vmatprep.mubr.msk.f32.mxu0 %vm12_vm1, %v11166_v41  ;;  %v8058_v41 = vld [vmem:[#allocation2 + $0x200] sm:$0xff] }
 0x202   :  { %6961 = vmatmul.mubr.msk.f32.gmra.mrb[32].mxu1 %vm12_vm1, %v8054_v23  ;;  %v4748_v23 = vrot.slane %v10009_v34, 2 }
 0x203   :  { %6963 = vmatprep.mubr.msk.f32.mxu1 %vm12_vm1, %v8055_v14  ;;  %v8080_v14 = vld [vmem:[#allocation2 + $0x308] sm:$0xff] }
 0x204   :  { %7403 = vmatmul.mubr.msk.f32.vlgmr.msra.gmra.mrb[0].mxu0 %vm12_vm1, %v11167_v58  ;;  %v8059_v58 = vld [vmem:[#allocation2 + $0x210] sm:$0xff] }
 0x205   :  { %7405 = vmatprep.mubr.msk.f32.mxu0 %vm12_vm1, %v11168_v5  ;;  %v8060_v5 = vld [vmem:[#allocation2 + $0x218] sm:$0xff] }
 0x206   :  { %6964 = vmatmul.mubr.msk.f32.gmra.mrb[34].mxu1 %vm12_vm1, %v8056_v35  ;;  %v8081_v35 = vld [vmem:[#allocation2 + $0x318] sm:$0xff] }
 0x207   :  { %6966 = vmatprep.mubr.msk.f32.mxu1 %vm12_vm1, %v8057_v37  ;;  %v11297_v37 = vld [vmem:[#allocation109_spill] sm:$0xff] }
 0x208   :  { %7406 = vmatmul.mubr.msk.f32.gmra.mrb[2].mxu0 %vm12_vm1, %v11169_v53  ;;  %v8061_v53 = vld [vmem:[#allocation2 + $0x228] sm:$0xff] }
 0x209   :  { %7408 = vmatprep.mubr.msk.f32.mxu0 %vm12_vm1, %v11170_v59  ;;  %v8062_v59 = vld [vmem:[#allocation2 + $0x230] sm:$0xff] }
 0x20a   :  { %6967 = vmatmul.mubr.msk.f32.gmra.mrb[36].mxu1 %vm12_vm1, %v8058_v41  ;;  %v4750_v41 = vrot.slane %v10268_v8, 2  ;;  %v11300_v8 = vld [vmem:[#allocation115_spill] sm:$0xff] }
 0x20b   :  { %6969 = vmatprep.mubr.msk.f32.mxu1 %vm12_vm1, %v8059_v58  ;;  %v4749_v58 = vsel %vm1652_vm4, %v4747_v26, %v4748_v23 }
 0x20c   :  { %7409 = vmatmul.mubr.msk.f32.gmra.mrb[4].mxu0 %vm12_vm1, %v11171_v55  ;;  %v8063_v55 = vld [vmem:[#allocation2 + $0x240] sm:$0xff]  ;;  %v4751_v34 = vsel %vm1652_vm4, %v4748_v23, %v4750_v41 }
 0x20d   :  { %7411 = vmatprep.mubr.msk.f32.mxu0 %vm12_vm1, %v11172_v46  ;;  %v8064_v46 = vld [vmem:[#allocation2 + $0x248] sm:$0xff] }
 0x20e   :  { %6970 = vmatmul.mubr.msk.f32.gmra.mrb[38].mxu1 %vm12_vm1, %v8060_v5  ;;  %v8082_v5 = vld [vmem:[#allocation2 + $0x320] sm:$0xff] }
 0x20f   :  { %6972 = vmatprep.mubr.msk.f32.mxu1 %vm12_vm1, %v8061_v53  ;;  %v11301_v53 = vld [vmem:[#allocation54_spill] sm:$0xff] }
 0x210   :  { %7412 = vmatmul.mubr.msk.f32.gmra.mrb[6].mxu0 %vm12_vm1, %v11173_v49  ;;  %v8065_v49 = vld [vmem:[#allocation2 + $0x258] sm:$0xff] }
 0x211   :  { %7414 = vmatprep.mubr.msk.f32.mxu0 %vm12_vm1, %v11174_v3  ;;  %v8066_v3 = vld [vmem:[#allocation2 + $0x260] sm:$0xff] }
 0x212   :  { %6973 = vmatmul.mubr.msk.f32.gmra.mrb[40].mxu1 %vm12_vm1, %v8062_v59  ;;  %v11302_v59 = vld [vmem:[#allocation118_spill] sm:$0xff] }
 0x213   :  { %6975 = vmatprep.mubr.msk.f32.mxu1 %vm12_vm1, %v8063_v55  ;;  %v11305_v55 = vld [vmem:[#allocation122_spill] sm:$0xff] }
 0x214   :  { %7415 = vmatmul.mubr.msk.f32.gmra.mrb[8].mxu0 %vm12_vm1, %v11175_v57  ;;  %v8067_v57 = vld [vmem:[#allocation2 + $0x270] sm:$0xff] }
 0x215   :  { %7417 = vmatprep.mubr.msk.f32.mxu0 %vm12_vm1, %v11176_v32  ;;  %v8068_v32 = vld [vmem:[#allocation2 + $0x278] sm:$0xff] }
 0x216   :  { %6976 = vmatmul.mubr.msk.f32.gmra.mrb[42].mxu1 %vm12_vm1, %v8064_v46  ;;  %v11306_v46 = vld [vmem:[#allocation123_spill] sm:$0xff] }
 0x217   :  { %6978 = vmatprep.mubr.msk.f32.mxu1 %vm12_vm1, %v8065_v49  ;;  %v11326_v49 = vld [vmem:[#allocation102_spill] sm:$0xff] }
 0x218   :  { %7418 = vmatmul.mubr.msk.f32.gmra.mrb[10].mxu0 %vm12_vm1, %v11177_v60  ;;  %v8069_v60 = vld [vmem:[#allocation2 + $0x288] sm:$0xff] }
 0x219   :  { %7420 = vmatprep.mubr.msk.f32.mxu0 %vm12_vm1, %v11178_v44  ;;  %v8070_v44 = vld [vmem:[#allocation2 + $0x290] sm:$0xff] }
 0x21a   :  { %6979 = vmatmul.mubr.msk.f32.gmra.mrb[44].mxu1 %vm12_vm1, %v8066_v3  ;;  %v11328_v3 = vld [vmem:[#allocation23_spill] sm:$0xff] }
 0x21b   :  { %6981 = vmatprep.mubr.msk.f32.mxu1 %vm12_vm1, %v8067_v57  ;;  %v11330_v57 = vld [vmem:[#allocation26_spill] sm:$0xff] }
 0x21c   :  { %7421 = vmatmul.mubr.msk.f32.gmra.mrb[12].mxu0 %vm12_vm1, %v11179_v56  ;;  %v8071_v56 = vld [vmem:[#allocation2 + $0x2a0] sm:$0xff] }
 0x21d   :  { %7423 = vmatprep.mubr.msk.f32.mxu0 %vm12_vm1, %v11180_v54  ;;  %v8072_v54 = vld [vmem:[#allocation2 + $0x2a8] sm:$0xff] }
 0x21e   :  { %6982 = vmatmul.mubr.msk.f32.gmra.mrb[46].mxu1 %vm12_vm1, %v8068_v32  ;;  %v11331_v32 = vld [vmem:[#allocation116_spill] sm:$0xff] }
 0x21f   :  { %6984 = vmatprep.mubr.msk.f32.mxu1 %vm12_vm1, %v8069_v60  ;;  %v4753_v60 = vrot.slane %v11331_v32, 2 }
 0x220   :  { %7424 = vmatmul.mubr.msk.f32.gmra.mrb[14].mxu0 %vm12_vm1, %v11181_v28  ;;  %v8073_v28 = vld [vmem:[#allocation2 + $0x2b8] sm:$0xff] }
 0x221   :  { %7426 = vmatprep.mubr.msk.f32.mxu0 %vm12_vm1, %v11182_v63  ;;  %v8074_v63 = vld [vmem:[#allocation2 + $0x2c0] sm:$0xff] }
 0x222   :  { %6985 = vmatmul.mubr.msk.f32.gmra.mrb[48].mxu1 %vm12_vm1, %v8070_v44  ;;  %v11332_v44 = vld [vmem:[#allocation40_spill] sm:$0xff] }
 0x223   :  { %6987 = vmatprep.mubr.msk.f32.mxu1 %vm12_vm1, %v8071_v56  ;;  %v11333_v56 = vld [vmem:[#allocation27_spill] sm:$0xff] }
 0x224   :  { %7427 = vmatmul.mubr.msk.f32.gmra.mrb[16].mxu0 %vm12_vm1, %v11183_v51  ;;  %v8075_v51 = vld [vmem:[#allocation2 + $0x2d0] sm:$0xff] }
 0x225   :  { %7429 = vmatprep.mubr.msk.f32.mxu0 %vm12_vm1, %v11184_v0  ;;  %v11292_v0 = vld [vmem:[#allocation97_spill] sm:$0xff] }
 0x226   :  { %6988 = vmatmul.mubr.msk.f32.gmra.mrb[50].mxu1 %vm12_vm1, %v8072_v54  ;;  %v11334_v54 = vld [vmem:[#allocation108_spill] sm:$0xff] }
 0x227   :  { %6990 = vmatprep.mubr.msk.f32.mxu1 %vm12_vm1, %v8073_v28  ;;  %v11335_v28 = vld [vmem:[#allocation30_spill] sm:$0xff] }
 0x228   :  { %7430 = vmatmul.mubr.msk.f32.gmra.mrb[18].mxu0 %vm12_vm1, %v11185_v61  ;;  %v11293_v61 = vld [vmem:[#allocation100_spill] sm:$0xff] }
 0x229   :  { %7432 = vmatprep.mubr.msk.f32.mxu0 %vm12_vm1, %v11186_v25  ;;  %v11294_v25 = vld [vmem:[#allocation103_spill] sm:$0xff] }
 0x22a   :  { %6991 = vmatmul.mubr.msk.f32.gmra.mrb[52].mxu1 %vm12_vm1, %v8074_v63  ;;  %v4755_v63 = vrot.slane %v10409_v43, 2 }
 0x22b   :  { %6993 = vmatprep.mubr.msk.f32.mxu1 %vm12_vm1, %v8075_v51 }
 0x22c   :  { %7433 = vmatmul.mubr.msk.f32.gmra.mrb[20].mxu0 %vm12_vm1, %v11187_v17  ;;  %v11295_v17 = vld [vmem:[#allocation106_spill] sm:$0xff] }
 0x22d   :  { %7435 = vmatprep.mubr.msk.f32.mxu0 %vm12_vm1, %v11292_v0  ;;  %v11337_v0 = vld [vmem:[#allocation98_spill] sm:$0xff] }
 0x22e   :  { %6994 = vmatmul.mubr.msk.f32.gmra.mrb[54].mxu1 %vm12_vm1, %v8076_v48  ;;  %v4756_v48 = vsel %vm1652_vm4, %v4753_v60, %v4755_v63 }
 0x22f   :  { %6996 = vmatprep.mubr.msk.f32.mxu1 %vm12_vm1, %v8077_v24 }
 0x230   :  { %7436 = vmatmul.mubr.msk.f32.gmra.mrb[22].mxu0 %vm12_vm1, %v11293_v61 }
 0x231   :  { %7438 = vmatprep.mubr.msk.f32.mxu0 %vm12_vm1, %v11294_v25 }
 0x232   :  { %6997 = vmatmul.mubr.msk.f32.gmra.mrb[56].mxu1 %vm12_vm1, %v8078_v1 }
 0x233   :  { %6999 = vmatprep.mubr.msk.f32.mxu1 %vm12_vm1, %v8079_v15 }
 0x234   :  { %7439 = vmatmul.mubr.msk.f32.gmra.mrb[24].mxu0 %vm12_vm1, %v11295_v17 }
 0x235   :  { %7441 = vmatprep.mubr.msk.f32.mxu0 %vm12_vm1, %v11296_v39 }
 0x236   :  { %7000 = vmatmul.mubr.msk.f32.gmra.mrb[58].mxu1 %vm12_vm1, %v8080_v14 }
 0x237   :  { %7002 = vmatprep.mubr.msk.f32.mxu1 %vm12_vm1, %v8081_v35 }
 0x238   :  { %7442 = vmatmul.mubr.msk.f32.gmra.mrb[26].mxu0 %vm12_vm1, %v11194_v18  ;;  %v11299_v18 = vld [vmem:[#allocation51_spill] sm:$0xff] }
 0x239   :  { %7444 = vmatprep.mubr.msk.f32.mxu0 %vm12_vm1, %v11297_v37 }
 0x23a   :  { %7003 = vmatmul.mubr.msk.f32.gmra.mrb[60].mxu1 %vm12_vm1, %v8082_v5 }
 0x23b   :  { %7005 = vmatprep.mubr.msk.f32.mxu1 %vm12_vm1, %v9801_v42  ;;  %v11303_v42 = vld [vmem:[#allocation119_spill] sm:$0xff] }
 0x23c   :  { %7445 = vmatmul.mubr.msk.f32.gmra.mrb[28].mxu0 %vm12_vm1, %v11298_v40 }
 0x23d   :  { %7447 = vmatprep.mubr.msk.f32.mxu0 %vm12_vm1, %v4749_v58 }
 0x23e   :  { %7006 = vmatmul.mubr.msk.f32.gmra.mrb[62].mxu1 %vm12_vm1, %v9803_v12  ;;  %v11304_v12 = vld [vmem:[#allocation121_spill] sm:$0xff] }
 0x23f   :  { %7058 = vmatprep.mubr.msk.f32.mxu1 %vm12_vm1, %v11299_v18 }
 0x240   :  { %7448 = vmatmul.mubr.msk.f32.gmra.mrb[30].mxu0 %vm12_vm1, %v4751_v34 }
 0x241   :  { %7450 = vmatprep.mubr.msk.f32.mxu0 %vm12_vm1, %v11300_v8 }
 0x242   :  { %7059 = vmatmul.mubr.msk.f32.vlgmr.msra.gmra.mrb[32].mxu1 %vm12_vm1, %v11301_v53 }
 0x243   :  { %7061 = vmatprep.mubr.msk.f32.mxu1 %vm12_vm1, %v11252_v19  ;;  %v11307_v19 = vld [vmem:[#allocation124_spill] sm:$0xff] }
 0x244   :  { %7451 = vmatmul.mubr.msk.f32.gmra.mrb[32].mxu0 %vm12_vm1, %v11302_v59 }
 0x245   :  { %7453 = vmatprep.mubr.msk.f32.mxu0 %vm12_vm1, %v11303_v42 }
 0x246   :  { %7062 = vmatmul.mubr.msk.f32.gmra.mrb[34].mxu1 %vm12_vm1, %v11254_v4  ;;  %v11308_v4 = vld [vmem:[#allocation125_spill] sm:$0xff] }
 0x247   :  { %7064 = vmatprep.mubr.msk.f32.mxu1 %vm12_vm1, %v11255_v62  ;;  %v11309_v62 = vld [vmem:[#allocation126_spill] sm:$0xff] }
 0x248   :  { %7454 = vmatmul.mubr.msk.f32.gmra.mrb[34].mxu0 %vm12_vm1, %v11304_v12 }
 0x249   :  { %7456 = vmatprep.mubr.msk.f32.mxu0 %vm12_vm1, %v11305_v55 }
 0x24a   :  { %7065 = vmatmul.mubr.msk.f32.gmra.mrb[36].mxu1 %vm12_vm1, %v11256_v22  ;;  %v11310_v22 = vld [vmem:[#allocation127_spill] sm:$0xff] }
 0x24b   :  { %7067 = vmatprep.mubr.msk.f32.mxu1 %vm12_vm1, %v11257_v27  ;;  %v11311_v27 = vld [vmem:[#allocation128_spill] sm:$0xff] }
 0x24c   :  { %7457 = vmatmul.mubr.msk.f32.gmra.mrb[36].mxu0 %vm12_vm1, %v11306_v46 }
 0x24d   :  { %7459 = vmatprep.mubr.msk.f32.mxu0 %vm12_vm1, %v11307_v19 }
 0x24e   :  { %7068 = vmatmul.mubr.msk.f32.gmra.mrb[38].mxu1 %vm12_vm1, %v11258_v20  ;;  %v11312_v20 = vld [vmem:[#allocation129_spill] sm:$0xff] }
 0x24f   :  { %7070 = vmatprep.mubr.msk.f32.mxu1 %vm12_vm1, %v11259_v29  ;;  %v11313_v29 = vld [vmem:[#allocation130_spill] sm:$0xff] }
 0x250   :  { %7460 = vmatmul.mubr.msk.f32.gmra.mrb[38].mxu0 %vm12_vm1, %v11308_v4 }
 0x251   :  { %7462 = vmatprep.mubr.msk.f32.mxu0 %vm12_vm1, %v11309_v62 }
 0x252   :  { %7071 = vmatmul.mubr.msk.f32.gmra.mrb[40].mxu1 %vm12_vm1, %v11260_v10  ;;  %v11314_v10 = vld [vmem:[#allocation131_spill] sm:$0xff] }
 0x253   :  { %7073 = vmatprep.mubr.msk.f32.mxu1 %vm12_vm1, %v11261_v9  ;;  %v11315_v9 = vld [vmem:[#allocation132_spill] sm:$0xff] }
 0x254   :  { %7463 = vmatmul.mubr.msk.f32.gmra.mrb[40].mxu0 %vm12_vm1, %v11310_v22 }
 0x255   :  { %7465 = vmatprep.mubr.msk.f32.mxu0 %vm12_vm1, %v11311_v27 }
 0x256   :  { %7074 = vmatmul.mubr.msk.f32.gmra.mrb[42].mxu1 %vm12_vm1, %v11262_v36  ;;  %v11316_v36 = vld [vmem:[#allocation133_spill] sm:$0xff] }
 0x257   :  { %7076 = vmatprep.mubr.msk.f32.mxu1 %vm12_vm1, %v11263_v11  ;;  %v11317_v11 = vld [vmem:[#allocation134_spill] sm:$0xff] }
 0x258   :  { %7466 = vmatmul.mubr.msk.f32.gmra.mrb[42].mxu0 %vm12_vm1, %v11312_v20 }
 0x259   :  { %7468 = vmatprep.mubr.msk.f32.mxu0 %vm12_vm1, %v11313_v29 }
 0x25a   :  { %7077 = vmatmul.mubr.msk.f32.gmra.mrb[44].mxu1 %vm12_vm1, %v11264_v13  ;;  %v11318_v13 = vld [vmem:[#allocation135_spill] sm:$0xff] }
 0x25b   :  { %7079 = vmatprep.mubr.msk.f32.mxu1 %vm12_vm1, %v11265_v16  ;;  %v11319_v16 = vld [vmem:[#allocation136_spill] sm:$0xff] }
 0x25c   :  { %7469 = vmatmul.mubr.msk.f32.gmra.mrb[44].mxu0 %vm12_vm1, %v11314_v10 }
 0x25d   :  { %7471 = vmatprep.mubr.msk.f32.mxu0 %vm12_vm1, %v11315_v9 }
 0x25e   :  { %7080 = vmatmul.mubr.msk.f32.gmra.mrb[46].mxu1 %vm12_vm1, %v11266_v50  ;;  %v11320_v50 = vld [vmem:[#allocation137_spill] sm:$0xff] }
 0x25f   :  { %7082 = vmatprep.mubr.msk.f32.mxu1 %vm12_vm1, %v11267_v2  ;;  %v11321_v2 = vld [vmem:[#allocation138_spill] sm:$0xff] }
 0x260   :  { %7472 = vmatmul.mubr.msk.f32.gmra.mrb[46].mxu0 %vm12_vm1, %v11316_v36 }
 0x261   :  { %7474 = vmatprep.mubr.msk.f32.mxu0 %vm12_vm1, %v11317_v11 }
 0x262   :  { %7083 = vmatmul.mubr.msk.f32.gmra.mrb[48].mxu1 %vm12_vm1, %v11268_v52  ;;  %v11322_v52 = vld [vmem:[#allocation139_spill] sm:$0xff] }
 0x263   :  { %7085 = vmatprep.mubr.msk.f32.mxu1 %vm12_vm1, %v11269_v45  ;;  %v11323_v45 = vld [vmem:[#allocation140_spill] sm:$0xff] }
 0x264   :  { %7475 = vmatmul.mubr.msk.f32.gmra.mrb[48].mxu0 %vm12_vm1, %v11318_v13 }
 0x265   :  { %7477 = vmatprep.mubr.msk.f32.mxu0 %vm12_vm1, %v11319_v16 }
 0x266   :  { %7086 = vmatmul.mubr.msk.f32.gmra.mrb[50].mxu1 %vm12_vm1, %v11270_v38  ;;  %v11324_v38 = vld [vmem:[#allocation141_spill] sm:$0xff] }
 0x267   :  { %7088 = vmatprep.mubr.msk.f32.mxu1 %vm12_vm1, %v11271_v6  ;;  %v11325_v6 = vld [vmem:[#allocation101_spill] sm:$0xff] }
 0x268   :  { %7478 = vmatmul.mubr.msk.f32.gmra.mrb[50].mxu0 %vm12_vm1, %v11320_v50 }
 0x269   :  { %7480 = vmatprep.mubr.msk.f32.mxu0 %vm12_vm1, %v11321_v2 }
 0x26a   :  { %7089 = vmatmul.mubr.msk.f32.gmra.mrb[52].mxu1 %vm12_vm1, %v11272_v30  ;;  %v11327_v30 = vld [vmem:[#allocation105_spill] sm:$0xff] }
 0x26b   :  { %7091 = vmatprep.mubr.msk.f32.mxu1 %vm12_vm1, %v11273_v33  ;;  %v11329_v33 = vld [vmem:[#allocation107_spill] sm:$0xff] }
 0x26c   :  { %7481 = vmatmul.mubr.msk.f32.gmra.mrb[52].mxu0 %vm12_vm1, %v11322_v52 }
 0x26d   :  { %7483 = vmatprep.mubr.msk.f32.mxu0 %vm12_vm1, %v11323_v45 }
 0x26e   :  { %7092 = vmatmul.mubr.msk.f32.gmra.mrb[54].mxu1 %vm12_vm1, %v11274_v47  ;;  %v4752_v47 = vrot.slane %v10140_v7, 2  ;;  %v11336_v7 = vld [vmem:[#allocation31_spill] sm:$0xff] }
 0x26f   :  { %7094 = vmatprep.mubr.msk.f32.mxu1 %vm12_vm1, %v11325_v6 }
 0x270   :  { %7484 = vmatmul.mubr.msk.f32.gmra.mrb[54].mxu0 %vm12_vm1, %v11324_v38  ;;  %v4754_v51 = vsel %vm1652_vm4, %v4752_v47, %v4753_v60 }
 0x271   :  { %7486 = vmatprep.mubr.msk.f32.mxu0 %vm12_vm1, %v11326_v49 }
 0x272   :  { %7095 = vmatmul.mubr.msk.f32.gmra.mrb[56].mxu1 %vm12_vm1, %v11327_v30 }
 0x273   :  { %7097 = vmatprep.mubr.msk.f32.mxu1 %vm12_vm1, %v11329_v33 }
 0x274   :  { %7487 = vmatmul.mubr.msk.f32.gmra.mrb[56].mxu0 %vm12_vm1, %v11328_v3 }
 0x275   :  { %7489 = vmatprep.mubr.msk.f32.mxu0 %vm12_vm1, %v11330_v57 }
 0x276   :  { %7098 = vmatmul.mubr.msk.f32.gmra.mrb[58].mxu1 %vm12_vm1, %v11332_v44 }
 0x277   :  { %7100 = vmatprep.mubr.msk.f32.mxu1 %vm12_vm1, %v11334_v54 }
 0x278   :  { %7490 = vmatmul.mubr.msk.f32.gmra.mrb[58].mxu0 %vm12_vm1, %v11333_v56 }
 0x279   :  { %7492 = vmatprep.mubr.msk.f32.mxu0 %vm12_vm1, %v11335_v28 }
 0x27a   :  { %7101 = vmatmul.mubr.msk.f32.gmra.mrb[60].mxu1 %vm12_vm1, %v11287_v21 }
 0x27b   :  { %7103 = vmatprep.mubr.msk.f32.mxu1 %vm12_vm1, %v11337_v0 }
 0x27c   :  { %7493 = vmatmul.mubr.msk.f32.gmra.mrb[60].mxu0 %vm12_vm1, %v11336_v7 }
 0x27d   :  { %7495 = vmatprep.mubr.msk.f32.mxu0 %vm12_vm1, %v4754_v51 }
 0x27e   :  { %7104 = vmatmul.mubr.msk.f32.gmra.mrb[62].mxu1 %vm12_vm1, %v10420_v31 }
 0x280   :  { %7496 = vmatmul.mubr.msk.f32.gmra.mrb[62].mxu0 %vm12_vm1, %v4756_v48 }
 0x295   :  { %v6914_v43 = vpop.f32.mrb[0].mxu1 }
 0x296   :  { %v2478_v61 = vpop.f32.mrb[1].mxu1 }
 0x299   :  { %v6917_v24 = vpop.f32.mrb[2].mxu1 }
 0x29a   :  { %v2488_v25 = vpop.f32.mrb[3].mxu1 }
 0x29d   :  { %v6920_v21 = vpop.f32.mrb[4].mxu1 }
 0x29e   :  { %v2498_v1 = vpop.f32.mrb[5].mxu1 }
 0x2a1   :  { %v6923_v17 = vpop.f32.mrb[6].mxu1 }
 0x2a2   :  { %v2508_v15 = vpop.f32.mrb[7].mxu1 }
 0x2a5   :  { %v6926_v39 = vpop.f32.mrb[8].mxu1 }
 0x2a6   :  { %v2518_v26 = vpop.f32.mrb[9].mxu1 }
 0x2a9   :  { %v10667_v23 = vpop.f32.mrb[10].mxu1 }
 0x2aa   :  { %v10669_v14 = vpop.f32.mrb[11].mxu1 }
 0x2ad   :  { %v10671_v35 = vpop.f32.mrb[12].mxu1 }
 0x2ae   :  { %v10673_v37 = vpop.f32.mrb[13].mxu1 }
 0x2b1   :  { %v10675_v31 = vpop.f32.mrb[14].mxu1 }
 0x2b2   :  { %v10677_v41 = vpop.f32.mrb[15].mxu1 }
 0x2b5   :  { %v10679_v58 = vpop.f32.mrb[16].mxu1 }
 0x2b6   :  { %v10681_v5 = vpop.f32.mrb[17].mxu1 }
 0x2b9   :  { %v10683_v40 = vpop.f32.mrb[18].mxu1 }
 0x2ba   :  { %v10685_v34 = vpop.f32.mrb[19].mxu1 }
 0x2bd   :  { %v10687_v18 = vpop.f32.mrb[20].mxu1 }
 0x2be   :  { %v10689_v8 = vpop.f32.mrb[21].mxu1 }
 0x2c1   :  { %v10691_v53 = vpop.f32.mrb[22].mxu1 }
 0x2c2   :  { %v10693_v59 = vpop.f32.mrb[23].mxu1 }
 0x2c5   :  { %v10695_v42 = vpop.f32.mrb[24].mxu1 }
 0x2c6   :  { %v10697_v12 = vpop.f32.mrb[25].mxu1 }
 0x2c9   :  { %v10699_v55 = vpop.f32.mrb[26].mxu1 }
 0x2ca   :  { %v10701_v46 = vpop.f32.mrb[27].mxu1 }
 0x2cd   :  { %v10703_v19 = vpop.f32.mrb[28].mxu1 }
 0x2ce   :  { %v10705_v4 = vpop.f32.mrb[29].mxu1 }
 0x2d1   :  { %v10707_v62 = vpop.f32.mrb[30].mxu1 }
 0x2d2   :  { %v10709_v22 = vpop.f32.mrb[31].mxu1 }
 0x2d7   :  { %v7404_v27 = vpop.f32.mrb[0].mxu0 }
 0x2d8   :  { %v7500_v20 = vadd.f32 %v7404_v27, %v6914_v43  ;;  %v4836_v29 = vpop.f32.mrb[1].mxu0 }
 0x2d9   :  { %v7501_v10 = vadd.f32 %v4836_v29, %v2478_v61 }
 0x2da   :  { %v5289_v9 = vmul.f32 %v7500_v20, %v7500_v20 }
 0x2db   :  { %v5219_v36 = vadd.f32 %v7501_v10, %v7500_v20  ;;  %v5288_v11 = vmul.f32 %v7501_v10, %v7501_v10  ;;  %v7407_v13 = vpop.f32.mrb[2].mxu0 }
 0x2dc   :  { %v7502_v16 = vadd.f32 %v7407_v13, %v6917_v24  ;;  %v4846_v50 = vpop.f32.mrb[3].mxu0 }
 0x2dd   :  { %v5352_v2 = vadd.f32 %v5289_v9, %v5288_v11  ;;  %v7503_v52 = vadd.f32 %v4846_v50, %v2488_v25 }
 0x2de   :  { %v5291_v3 = vmul.f32 %v7502_v16, %v7502_v16 }
 0x2df   :  { %v5220_v45 = vadd.f32 %v7503_v52, %v5219_v36  ;;  %v5290_v38 = vmul.f32 %v7503_v52, %v7503_v52  ;;  %v7410_v6 = vpop.f32.mrb[4].mxu0 }
 0x2e0   :  { %v7504_v49 = vadd.f32 %v7410_v6, %v6920_v21  ;;  %v4856_v30 = vpop.f32.mrb[5].mxu0 }
 0x2e1   :  { %v5221_v33 = vadd.f32 %v7502_v16, %v5220_v45  ;;  %v5353_v57 = vadd.f32 %v5352_v2, %v5290_v38  ;;  %v7505_v47 = vadd.f32 %v4856_v30, %v2498_v1 }
 0x2e2   :  { %v5293_v63 = vmul.f32 %v7504_v49, %v7504_v49 }
 0x2e3   :  { %v5354_v32 = vadd.f32 %v5353_v57, %v5291_v3  ;;  %v5222_v60 = vadd.f32 %v7505_v47, %v5221_v33  ;;  %v5292_v44 = vmul.f32 %v7505_v47, %v7505_v47  ;;  %v7413_v56 = vpop.f32.mrb[6].mxu0 }
 0x2e4   :  { %v7506_v54 = vadd.f32 %v7413_v56, %v6923_v17  ;;  %v4866_v28 = vpop.f32.mrb[7].mxu0 }
 0x2e5   :  { %v5355_v51 = vadd.f32 %v5354_v32, %v5292_v44  ;;  %v7507_v7 = vadd.f32 %v4866_v28, %v2508_v15  ;;  %v5223_v0 = vadd.f32 %v7504_v49, %v5222_v60 }
 0x2e6   :  { %v5295_v27 = vmul.f32 %v7506_v54, %v7506_v54 }
 0x2e7   :  { %v5224_v48 = vadd.f32 %v7507_v7, %v5223_v0  ;;  %v5294_v43 = vmul.f32 %v7507_v7, %v7507_v7  ;;  %v5356_v61 = vadd.f32 %v5355_v51, %v5293_v63  ;;  %v7416_v24 = vpop.f32.mrb[8].mxu0 }
 0x2e8   :  { %v7508_v25 = vadd.f32 %v7416_v24, %v6926_v39  ;;  %v4876_v21 = vpop.f32.mrb[9].mxu0 }
 0x2e9   :  { %v5357_v20 = vadd.f32 %v5356_v61, %v5294_v43  ;;  %v7509_v29 = vadd.f32 %v4876_v21, %v2518_v26  ;;  %v5225_v1 = vadd.f32 %v7506_v54, %v5224_v48 }
 0x2ea   :  { %v5297_v16 = vmul.f32 %v7508_v25, %v7508_v25 }
 0x2eb   :  { %v5226_v10 = vadd.f32 %v7509_v29, %v5225_v1  ;;  %v5296_v9 = vmul.f32 %v7509_v29, %v7509_v29  ;;  %v5358_v36 = vadd.f32 %v5357_v20, %v5295_v27  ;;  %v7419_v11 = vpop.f32.mrb[10].mxu0 }
 0x2ec   :  { %v7510_v17 = vadd.f32 %v7419_v11, %v10667_v23  ;;  %v4886_v13 = vpop.f32.mrb[11].mxu0 }
 0x2ed   :  { %v5359_v15 = vadd.f32 %v5358_v36, %v5296_v9  ;;  %v7511_v50 = vadd.f32 %v4886_v13, %v10669_v14  ;;  %v5227_v2 = vadd.f32 %v7508_v25, %v5226_v10 }
 0x2ee   :  { %v5299_v49 = vmul.f32 %v7510_v17, %v7510_v17 }
 0x2ef   :  { %v5228_v52 = vadd.f32 %v7511_v50, %v5227_v2  ;;  %v5298_v45 = vmul.f32 %v7511_v50, %v7511_v50  ;;  %v5360_v39 = vadd.f32 %v5359_v15, %v5297_v16  ;;  %v7422_v38 = vpop.f32.mrb[12].mxu0 }
 0x2f0   :  { %v7512_v6 = vadd.f32 %v7422_v38, %v10671_v35  ;;  %v4896_v26 = vpop.f32.mrb[13].mxu0 }
 0x2f1   :  { %v5361_v30 = vadd.f32 %v5360_v39, %v5298_v45  ;;  %v7513_v3 = vadd.f32 %v4896_v26, %v10673_v37  ;;  %v5229_v33 = vadd.f32 %v7510_v17, %v5228_v52 }
 0x2f2   :  { %v5301_v44 = vmul.f32 %v7512_v6, %v7512_v6 }
 0x2f3   :  { %v5230_v57 = vadd.f32 %v7513_v3, %v5229_v33  ;;  %v5300_v23 = vmul.f32 %v7513_v3, %v7513_v3  ;;  %v5362_v47 = vadd.f32 %v5361_v30, %v5299_v49  ;;  %v7425_v32 = vpop.f32.mrb[14].mxu0 }
 0x2f4   :  { %v7514_v60 = vadd.f32 %v7425_v32, %v10675_v31  ;;  %v4906_v14 = vpop.f32.mrb[15].mxu0 }
 0x2f5   :  { %v5363_v56 = vadd.f32 %v5362_v47, %v5300_v23  ;;  %v7515_v54 = vadd.f32 %v4906_v14, %v10677_v41  ;;  %v5231_v28 = vadd.f32 %v7512_v6, %v5230_v57 }
 0x2f6   :  { %v5303_v48 = vmul.f32 %v7514_v60, %v7514_v60 }
 0x2f7   :  { %v5232_v63 = vadd.f32 %v7515_v54, %v5231_v28  ;;  %v5302_v35 = vmul.f32 %v7515_v54, %v7515_v54  ;;  %v5364_v51 = vadd.f32 %v5363_v56, %v5301_v44  ;;  %v7428_v7 = vpop.f32.mrb[16].mxu0 }
 0x2f8   :  { %v7516_v0 = vadd.f32 %v7428_v7, %v10679_v58  ;;  %v4916_v37 = vpop.f32.mrb[17].mxu0 }
 0x2f9   :  { %v5365_v43 = vadd.f32 %v5364_v51, %v5302_v35  ;;  %v7517_v61 = vadd.f32 %v4916_v37, %v10681_v5  ;;  %v5233_v24 = vadd.f32 %v7514_v60, %v5232_v63 }
 0x2fa   :  { %v5305_v29 = vmul.f32 %v7516_v0, %v7516_v0 }
 0x2fb   :  { %v5234_v25 = vadd.f32 %v7517_v61, %v5233_v24  ;;  %v5304_v31 = vmul.f32 %v7517_v61, %v7517_v61  ;;  %v5366_v21 = vadd.f32 %v5365_v43, %v5303_v48  ;;  %v7431_v27 = vpop.f32.mrb[18].mxu0 }
 0x2fc   :  { %v7518_v20 = vadd.f32 %v7431_v27, %v10683_v40  ;;  %v4926_v41 = vpop.f32.mrb[19].mxu0 }
 0x2fd   :  { %v5367_v1 = vadd.f32 %v5366_v21, %v5304_v31  ;;  %v7519_v10 = vadd.f32 %v4926_v41, %v10685_v34  ;;  %v5235_v9 = vadd.f32 %v7516_v0, %v5234_v25 }
 0x2fe   :  { %v5307_v16 = vmul.f32 %v7518_v20, %v7518_v20 }
 0x2ff   :  { %v5236_v36 = vadd.f32 %v7519_v10, %v5235_v9  ;;  %v5306_v58 = vmul.f32 %v7519_v10, %v7519_v10  ;;  %v5368_v11 = vadd.f32 %v5367_v1, %v5305_v29  ;;  %v7434_v17 = vpop.f32.mrb[20].mxu0 }
 0x300   :  { %v7520_v13 = vadd.f32 %v7434_v17, %v10687_v18  ;;  %v4936_v5 = vpop.f32.mrb[21].mxu0 }
 0x301   :  { %v5369_v15 = vadd.f32 %v5368_v11, %v5306_v58  ;;  %v7521_v50 = vadd.f32 %v4936_v5, %v10689_v8  ;;  %v5237_v2 = vadd.f32 %v7518_v20, %v5236_v36 }
 0x302   :  { %v5309_v6 = vmul.f32 %v7520_v13, %v7520_v13 }
 0x303   :  { %v5238_v52 = vadd.f32 %v7521_v50, %v5237_v2  ;;  %v5308_v40 = vmul.f32 %v7521_v50, %v7521_v50  ;;  %v5370_v45 = vadd.f32 %v5369_v15, %v5307_v16  ;;  %v7437_v39 = vpop.f32.mrb[22].mxu0 }
 0x304   :  { %v7522_v38 = vadd.f32 %v7437_v39, %v10691_v53  ;;  %v4946_v34 = vpop.f32.mrb[23].mxu0 }
 0x305   :  { %v5371_v26 = vadd.f32 %v5370_v45, %v5308_v40  ;;  %v7523_v49 = vadd.f32 %v4946_v34, %v10693_v59  ;;  %v5239_v30 = vadd.f32 %v7520_v13, %v5238_v52 }
 0x306   :  { %v5311_v47 = vmul.f32 %v7522_v38, %v7522_v38 }
 0x307   :  { %v5240_v3 = vadd.f32 %v7523_v49, %v5239_v30  ;;  %v5310_v18 = vmul.f32 %v7523_v49, %v7523_v49  ;;  %v5372_v33 = vadd.f32 %v5371_v26, %v5309_v6  ;;  %v7440_v57 = vpop.f32.mrb[24].mxu0 }
 0x308   :  { %v7524_v23 = vadd.f32 %v7440_v57, %v10695_v42  ;;  %v4956_v8 = vpop.f32.mrb[25].mxu0 }
 0x309   :  { %v5373_v32 = vadd.f32 %v5372_v33, %v5310_v18  ;;  %v7525_v60 = vadd.f32 %v4956_v8, %v10697_v12  ;;  %v5241_v14 = vadd.f32 %v7522_v38, %v5240_v3 }
 0x30a   :  { %v5313_v63 = vmul.f32 %v7524_v23, %v7524_v23 }
 0x30b   :  { %v5242_v44 = vadd.f32 %v7525_v60, %v5241_v14  ;;  %v5312_v53 = vmul.f32 %v7525_v60, %v7525_v60  ;;  %v5374_v56 = vadd.f32 %v5373_v32, %v5311_v47  ;;  %v7443_v54 = vpop.f32.mrb[26].mxu0 }
 0x30c   :  { %v7526_v28 = vadd.f32 %v7443_v54, %v10699_v55  ;;  %v4966_v59 = vpop.f32.mrb[27].mxu0 }
 0x30d   :  { %v5375_v35 = vadd.f32 %v5374_v56, %v5312_v53  ;;  %v7527_v51 = vadd.f32 %v4966_v59, %v10701_v46  ;;  %v5243_v7 = vadd.f32 %v7524_v23, %v5242_v44 }
 0x30e   :  { %v5315_v61 = vmul.f32 %v7526_v28, %v7526_v28 }
 0x30f   :  { %v5244_v0 = vadd.f32 %v7527_v51, %v5243_v7  ;;  %v5314_v42 = vmul.f32 %v7527_v51, %v7527_v51  ;;  %v5376_v37 = vadd.f32 %v5375_v35, %v5313_v63  ;;  %v7446_v48 = vpop.f32.mrb[28].mxu0 }
 0x310   :  { %v7528_v43 = vadd.f32 %v7446_v48, %v10703_v19  ;;  %v4976_v12 = vpop.f32.mrb[29].mxu0 }
 0x311   :  { %v5377_v24 = vadd.f32 %v5376_v37, %v5314_v42  ;;  %v7529_v25 = vadd.f32 %v4976_v12, %v10705_v4  ;;  %v5245_v31 = vadd.f32 %v7526_v28, %v5244_v0 }
 0x312   :  { %v5317_v29 = vmul.f32 %v7528_v43, %v7528_v43 }
 0x313   :  { %v5246_v21 = vadd.f32 %v7529_v25, %v5245_v31  ;;  %v5316_v55 = vmul.f32 %v7529_v25, %v7529_v25  ;;  %v5378_v27 = vadd.f32 %v5377_v24, %v5315_v61  ;;  %v7449_v20 = vpop.f32.mrb[30].mxu0 }
 0x314   :  { %v7530_v41 = vadd.f32 %v7449_v20, %v10707_v62  ;;  %v4986_v46 = vpop.f32.mrb[31].mxu0 }
 0x315   :  { %v5379_v1 = vadd.f32 %v5378_v27, %v5316_v55  ;;  %v7531_v10 = vadd.f32 %v4986_v46, %v10709_v22  ;;  %v5247_v9 = vadd.f32 %v7528_v43, %v5246_v21  ;;  %v7060_v36 = vpop.f32.mrb[32].mxu1 }
 0x316   :  { %v3112_v17 = vpop.f32.mrb[33].mxu1  ;;  %v5319_v16 = vmul.f32 %v7530_v41, %v7530_v41 }
 0x317   :  { %v5248_v19 = vadd.f32 %v7531_v10, %v5247_v9  ;;  %v5318_v58 = vmul.f32 %v7531_v10, %v7531_v10  ;;  %v5380_v11 = vadd.f32 %v5379_v1, %v5317_v29  ;;  %v7452_v13 = vpop.f32.mrb[32].mxu0 }
 0x318   :  { %v7532_v4 = vadd.f32 %v7452_v13, %v7060_v36  ;;  %v4996_v5 = vpop.f32.mrb[33].mxu0 }
 0x319   :  { %v5381_v15 = vadd.f32 %v5380_v11, %v5318_v58  ;;  %v7533_v50 = vadd.f32 %v4996_v5, %v3112_v17  ;;  %v5249_v2 = vadd.f32 %v7530_v41, %v5248_v19  ;;  %v7063_v52 = vpop.f32.mrb[34].mxu1 }
 0x31a   :  { %v3122_v39 = vpop.f32.mrb[35].mxu1  ;;  %v5321_v6 = vmul.f32 %v7532_v4, %v7532_v4 }
 0x31b   :  { %v5250_v62 = vadd.f32 %v7533_v50, %v5249_v2  ;;  %v5320_v40 = vmul.f32 %v7533_v50, %v7533_v50  ;;  %v5382_v45 = vadd.f32 %v5381_v15, %v5319_v16  ;;  %v7455_v38 = vpop.f32.mrb[34].mxu0 }
 0x31c   :  { %v7534_v22 = vadd.f32 %v7455_v38, %v7063_v52  ;;  %v5006_v34 = vpop.f32.mrb[35].mxu0 }
 0x31d   :  { %v5383_v26 = vadd.f32 %v5382_v45, %v5320_v40  ;;  %v7535_v49 = vadd.f32 %v5006_v34, %v3122_v39  ;;  %v5251_v30 = vadd.f32 %v7532_v4, %v5250_v62  ;;  %v7066_v3 = vpop.f32.mrb[36].mxu1 }
 0x31e   :  { %v3132_v23 = vpop.f32.mrb[37].mxu1  ;;  %v5323_v60 = vmul.f32 %v7534_v22, %v7534_v22 }
 0x31f   :  { %v5252_v18 = vadd.f32 %v7535_v49, %v5251_v30  ;;  %v5322_v33 = vmul.f32 %v7535_v49, %v7535_v49  ;;  %v5384_v57 = vadd.f32 %v5383_v26, %v5321_v6  ;;  %v7458_v8 = vpop.f32.mrb[36].mxu0 }
 0x320   :  { %v7536_v47 = vadd.f32 %v7458_v8, %v7066_v3  ;;  %v5016_v32 = vpop.f32.mrb[37].mxu0 }
 0x321   :  { %v5385_v14 = vadd.f32 %v5384_v57, %v5322_v33  ;;  %v7537_v44 = vadd.f32 %v5016_v32, %v3132_v23  ;;  %v5253_v53 = vadd.f32 %v7534_v22, %v5252_v18  ;;  %v7069_v56 = vpop.f32.mrb[38].mxu1 }
 0x322   :  { %v3142_v63 = vpop.f32.mrb[39].mxu1  ;;  %v5325_v0 = vmul.f32 %v7536_v47, %v7536_v47 }
 0x323   :  { %v5254_v54 = vadd.f32 %v7537_v44, %v5253_v53  ;;  %v5324_v28 = vmul.f32 %v7537_v44, %v7537_v44  ;;  %v5386_v59 = vadd.f32 %v5385_v14, %v5323_v60  ;;  %v7461_v35 = vpop.f32.mrb[38].mxu0 }
 0x324   :  { %v7538_v51 = vadd.f32 %v7461_v35, %v7069_v56  ;;  %v5026_v7 = vpop.f32.mrb[39].mxu0 }
 0x325   :  { %v5387_v42 = vadd.f32 %v5386_v59, %v5324_v28  ;;  %v7539_v37 = vadd.f32 %v5026_v7, %v3142_v63  ;;  %v5255_v48 = vadd.f32 %v7536_v47, %v5254_v54  ;;  %v7072_v43 = vpop.f32.mrb[40].mxu1 }
 0x326   :  { %v3152_v25 = vpop.f32.mrb[41].mxu1  ;;  %v5327_v27 = vmul.f32 %v7538_v51, %v7538_v51 }
 0x327   :  { %v5256_v12 = vadd.f32 %v7539_v37, %v5255_v48  ;;  %v5326_v61 = vmul.f32 %v7539_v37, %v7539_v37  ;;  %v5388_v24 = vadd.f32 %v5387_v42, %v5325_v0  ;;  %v7464_v31 = vpop.f32.mrb[40].mxu0 }
 0x328   :  { %v7540_v21 = vadd.f32 %v7464_v31, %v7072_v43  ;;  %v5036_v55 = vpop.f32.mrb[41].mxu0 }
 0x329   :  { %v5389_v20 = vadd.f32 %v5388_v24, %v5326_v61  ;;  %v7541_v41 = vadd.f32 %v5036_v55, %v3152_v25  ;;  %v5257_v46 = vadd.f32 %v7538_v51, %v5256_v12  ;;  %v7075_v29 = vpop.f32.mrb[42].mxu1 }
 0x32a   :  { %v3162_v36 = vpop.f32.mrb[43].mxu1  ;;  %v5329_v17 = vmul.f32 %v7540_v21, %v7540_v21 }
 0x32b   :  { %v5258_v1 = vadd.f32 %v7541_v41, %v5257_v46  ;;  %v5328_v10 = vmul.f32 %v7541_v41, %v7541_v41  ;;  %v5390_v9 = vadd.f32 %v5389_v20, %v5327_v27  ;;  %v7467_v19 = vpop.f32.mrb[42].mxu0 }
 0x32c   :  { %v7542_v58 = vadd.f32 %v7467_v19, %v7075_v29  ;;  %v5046_v11 = vpop.f32.mrb[43].mxu0 }
 0x32d   :  { %v5391_v13 = vadd.f32 %v5390_v9, %v5328_v10  ;;  %v7543_v4 = vadd.f32 %v5046_v11, %v3162_v36  ;;  %v5259_v5 = vadd.f32 %v7540_v21, %v5258_v1  ;;  %v7078_v16 = vpop.f32.mrb[44].mxu1 }
 0x32e   :  { %v3172_v52 = vpop.f32.mrb[45].mxu1  ;;  %v5331_v39 = vmul.f32 %v7542_v58, %v7542_v58 }
 0x32f   :  { %v5260_v15 = vadd.f32 %v7543_v4, %v5259_v5  ;;  %v5330_v50 = vmul.f32 %v7543_v4, %v7543_v4  ;;  %v5392_v2 = vadd.f32 %v5391_v13, %v5329_v17  ;;  %v7470_v62 = vpop.f32.mrb[44].mxu0 }
 0x330   :  { %v7544_v40 = vadd.f32 %v7470_v62, %v7078_v16  ;;  %v5056_v45 = vpop.f32.mrb[45].mxu0 }
 0x331   :  { %v5393_v38 = vadd.f32 %v5392_v2, %v5330_v50  ;;  %v7545_v22 = vadd.f32 %v5056_v45, %v3172_v52  ;;  %v5261_v34 = vadd.f32 %v7542_v58, %v5260_v15  ;;  %v7081_v6 = vpop.f32.mrb[46].mxu1 }
 0x332   :  { %v3182_v3 = vpop.f32.mrb[47].mxu1  ;;  %v5333_v23 = vmul.f32 %v7544_v40, %v7544_v40 }
 0x333   :  { %v5262_v26 = vadd.f32 %v7545_v22, %v5261_v34  ;;  %v5332_v49 = vmul.f32 %v7545_v22, %v7545_v22  ;;  %v5394_v30 = vadd.f32 %v5393_v38, %v5331_v39  ;;  %v7473_v18 = vpop.f32.mrb[46].mxu0 }
 0x334   :  { %v7546_v33 = vadd.f32 %v7473_v18, %v7081_v6  ;;  %v5066_v57 = vpop.f32.mrb[47].mxu0 }
 0x335   :  { %v5395_v8 = vadd.f32 %v5394_v30, %v5332_v49  ;;  %v7547_v47 = vadd.f32 %v5066_v57, %v3182_v3  ;;  %v5263_v32 = vadd.f32 %v7544_v40, %v5262_v26  ;;  %v7084_v60 = vpop.f32.mrb[48].mxu1 }
 0x336   :  { %v3192_v56 = vpop.f32.mrb[49].mxu1  ;;  %v5335_v63 = vmul.f32 %v7546_v33, %v7546_v33 }
 0x337   :  { %v5264_v14 = vadd.f32 %v7547_v47, %v5263_v32  ;;  %v5334_v44 = vmul.f32 %v7547_v47, %v7547_v47  ;;  %v5396_v53 = vadd.f32 %v5395_v8, %v5333_v23  ;;  %v7476_v54 = vpop.f32.mrb[48].mxu0 }
 0x338   :  { %v7548_v28 = vadd.f32 %v7476_v54, %v7084_v60  ;;  %v5076_v59 = vpop.f32.mrb[49].mxu0 }
 0x339   :  { %v5397_v35 = vadd.f32 %v5396_v53, %v5334_v44  ;;  %v7549_v51 = vadd.f32 %v5076_v59, %v3192_v56  ;;  %v5265_v7 = vadd.f32 %v7546_v33, %v5264_v14  ;;  %v7087_v0 = vpop.f32.mrb[50].mxu1 }
 0x33a   :  { %v3202_v43 = vpop.f32.mrb[51].mxu1  ;;  %v5337_v25 = vmul.f32 %v7548_v28, %v7548_v28 }
 0x33b   :  { %v5266_v42 = vadd.f32 %v7549_v51, %v5265_v7  ;;  %v5336_v37 = vmul.f32 %v7549_v51, %v7549_v51  ;;  %v5398_v48 = vadd.f32 %v5397_v35, %v5335_v63  ;;  %v7479_v12 = vpop.f32.mrb[50].mxu0 }
 0x33c   :  { %v7550_v61 = vadd.f32 %v7479_v12, %v7087_v0  ;;  %v5086_v24 = vpop.f32.mrb[51].mxu0 }
 0x33d   :  { %v5399_v31 = vadd.f32 %v5398_v48, %v5336_v37  ;;  %v7551_v21 = vadd.f32 %v5086_v24, %v3202_v43  ;;  %v5267_v55 = vadd.f32 %v7548_v28, %v5266_v42  ;;  %v7090_v27 = vpop.f32.mrb[52].mxu1 }
 0x33e   :  { %v3212_v29 = vpop.f32.mrb[53].mxu1  ;;  %v5339_v36 = vmul.f32 %v7550_v61, %v7550_v61 }
 0x33f   :  { %v5268_v20 = vadd.f32 %v7551_v21, %v5267_v55  ;;  %v5338_v41 = vmul.f32 %v7551_v21, %v7551_v21  ;;  %v5400_v46 = vadd.f32 %v5399_v31, %v5337_v25  ;;  %v7482_v1 = vpop.f32.mrb[52].mxu0 }
 0x340   :  { %v7552_v10 = vadd.f32 %v7482_v1, %v7090_v27  ;;  %v5096_v9 = vpop.f32.mrb[53].mxu0 }
 0x341   :  { %v5401_v19 = vadd.f32 %v5400_v46, %v5338_v41  ;;  %v7553_v58 = vadd.f32 %v5096_v9, %v3212_v29  ;;  %v5269_v11 = vadd.f32 %v7550_v61, %v5268_v20  ;;  %v7093_v17 = vpop.f32.mrb[54].mxu1 }
 0x342   :  { %v3222_v16 = vpop.f32.mrb[55].mxu1  ;;  %v5341_v52 = vmul.f32 %v7552_v10, %v7552_v10 }
 0x343   :  { %v5270_v13 = vadd.f32 %v7553_v58, %v5269_v11  ;;  %v5340_v4 = vmul.f32 %v7553_v58, %v7553_v58  ;;  %v5402_v5 = vadd.f32 %v5401_v19, %v5339_v36  ;;  %v7485_v15 = vpop.f32.mrb[54].mxu0 }
 0x344   :  { %v7554_v50 = vadd.f32 %v7485_v15, %v7093_v17  ;;  %v5106_v2 = vpop.f32.mrb[55].mxu0 }
 0x345   :  { %v5403_v62 = vadd.f32 %v5402_v5, %v5340_v4  ;;  %v7555_v40 = vadd.f32 %v5106_v2, %v3222_v16  ;;  %v5271_v45 = vadd.f32 %v7552_v10, %v5270_v13  ;;  %v7096_v39 = vpop.f32.mrb[56].mxu1 }
 0x346   :  { %v3232_v6 = vpop.f32.mrb[57].mxu1  ;;  %v5343_v3 = vmul.f32 %v7554_v50, %v7554_v50 }
 0x347   :  { %v5272_v38 = vadd.f32 %v7555_v40, %v5271_v45  ;;  %v5342_v22 = vmul.f32 %v7555_v40, %v7555_v40  ;;  %v5404_v34 = vadd.f32 %v5403_v62, %v5341_v52  ;;  %v7488_v26 = vpop.f32.mrb[56].mxu0 }
 0x348   :  { %v7556_v49 = vadd.f32 %v7488_v26, %v7096_v39  ;;  %v5116_v30 = vpop.f32.mrb[57].mxu0 }
 0x349   :  { %v5405_v18 = vadd.f32 %v5404_v34, %v5342_v22  ;;  %v7557_v33 = vadd.f32 %v5116_v30, %v3232_v6  ;;  %v5273_v57 = vadd.f32 %v7554_v50, %v5272_v38  ;;  %v7099_v23 = vpop.f32.mrb[58].mxu1 }
 0x34a   :  { %v3242_v60 = vpop.f32.mrb[59].mxu1  ;;  %v5345_v56 = vmul.f32 %v7556_v49, %v7556_v49 }
 0x34b   :  { %v5274_v8 = vadd.f32 %v7557_v33, %v5273_v57  ;;  %v5344_v47 = vmul.f32 %v7557_v33, %v7557_v33  ;;  %v5406_v32 = vadd.f32 %v5405_v18, %v5343_v3  ;;  %v7491_v14 = vpop.f32.mrb[58].mxu0 }
 0x34c   :  { %v7558_v44 = vadd.f32 %v7491_v14, %v7099_v23  ;;  %v5126_v53 = vpop.f32.mrb[59].mxu0 }
 0x34d   :  { %v5407_v54 = vadd.f32 %v5406_v32, %v5344_v47  ;;  %v7559_v28 = vadd.f32 %v5126_v53, %v3242_v60  ;;  %v5275_v59 = vadd.f32 %v7556_v49, %v5274_v8  ;;  %v7102_v63 = vpop.f32.mrb[60].mxu1 }
 0x34e   :  { %v3252_v0 = vpop.f32.mrb[61].mxu1  ;;  %v5347_v43 = vmul.f32 %v7558_v44, %v7558_v44 }
 0x34f   :  { %v5276_v35 = vadd.f32 %v7559_v28, %v5275_v59  ;;  %v5346_v51 = vmul.f32 %v7559_v28, %v7559_v28  ;;  %v5408_v7 = vadd.f32 %v5407_v54, %v5345_v56  ;;  %v7494_v42 = vpop.f32.mrb[60].mxu0 }
 0x350   :  { %v7560_v37 = vadd.f32 %v7494_v42, %v7102_v63  ;;  %v5136_v48 = vpop.f32.mrb[61].mxu0 }
 0x351   :  { %v5409_v12 = vadd.f32 %v5408_v7, %v5346_v51  ;;  %v7561_v61 = vadd.f32 %v5136_v48, %v3252_v0  ;;  %v5277_v24 = vadd.f32 %v7558_v44, %v5276_v35  ;;  %v7105_v25 = vpop.f32.mrb[62].mxu1 }
 0x352   :  { %v3262_v27 = vpop.f32.mrb[63].mxu1  ;;  %v5349_v29 = vmul.f32 %v7560_v37, %v7560_v37 }
 0x353   :  { %v5278_v31 = vadd.f32 %v7561_v61, %v5277_v24  ;;  %v5348_v21 = vmul.f32 %v7561_v61, %v7561_v61  ;;  %v5410_v55 = vadd.f32 %v5409_v12, %v5347_v43  ;;  %v7497_v20 = vpop.f32.mrb[62].mxu0 }
 0x354   :  { %v7562_v41 = vadd.f32 %v7497_v20, %v7105_v25  ;;  %v5146_v46 = vpop.f32.mrb[63].mxu0 }
 0x355   :  { %v5411_v1 = vadd.f32 %v5410_v55, %v5348_v21  ;;  %v7563_v10 = vadd.f32 %v5146_v46, %v3262_v27  ;;  %v5279_v9 = vadd.f32 %v7560_v37, %v5278_v31 }
 0x356   :  { %v5351_v11 = vmul.f32 %v7562_v41, %v7562_v41 }
 0x357   :  { %v5280_v36 = vadd.f32 %v7563_v10, %v5279_v9  ;;  %v5350_v19 = vmul.f32 %v7563_v10, %v7563_v10  ;;  %v5412_v58 = vadd.f32 %v5411_v1, %v5349_v29 }
 0x359   :  { %v5281_v17 = vadd.f32 %v7562_v41, %v5280_v36  ;;  %v5413_v13 = vadd.f32 %v5412_v58, %v5350_v19 }
 0x35b   :  { %v5282_v4 = vrot.slane %v5281_v17, 4  ;;  %v5414_v5 = vadd.f32 %v5413_v13, %v5351_v11 }
 0x35d   :  { %v5283_v16 = vadd.f32 %v5282_v4, %v5281_v17  ;;  %v5415_v15 = vrot.slane %v5414_v5, 4 }
 0x35f   :  { %v5284_v50 = vrot.slane %v5283_v16, 2  ;;  %v5416_v2 = vadd.f32 %v5415_v15, %v5414_v5 }
 0x361   :  { %v5285_v52 = vadd.f32 %v5284_v50, %v5283_v16  ;;  %v5417_v62 = vrot.slane %v5416_v2, 2 }
 0x363   :  { %v5286_v40 = vrot.slane %v5285_v52, 1  ;;  %v5418_v45 = vadd.f32 %v5417_v62, %v5416_v2 }
 0x365   :  { %v5419_v39 = vrot.slane %v5418_v45, 1  ;;  %v5287_v38 = vadd.f32 %v5286_v40, %v5285_v52 }
 0x367   :  { %v5420_v22 = vadd.f32 %v5419_v39, %v5418_v45 }
 0x369   :  { %v5422_v34 = vsel %vm5421_vm5, %v5287_v38, %v5420_v22 }
 0x36a   :  { %5423 = vst [vmem:[#allocation3] sm:$0x3] %v5422_v34 }
 0x36b   :  { %8094 = shalt.err (!%p8091_p4)
}
 0x36c   :  { %s8095_s20 = scalar_lea.hbm %s10747_s2, 32 }
 0x36d   :  { %p8096_p5 = scmp.ne.s32.totalorder %s10747_s2, %s8095_s20  ;;  %p8099_p6 = scmp.lt.u32.totalorder %s8095_s20, %s10747_s2 }
 0x36f   :  { %p8101_p7 = pnand %p8099_p6, %p8096_p5 }
 0x371   :  { %8104 = shalt.err (!%p8101_p7)
}
 0x372   :  { %5433 = dma.vmem_to_hbm [thread:$0]  %s5431_s16, 32, %s10747_s2, [#allocation4]  }
 0x373   :  { %8105 = dma.done.wait [#allocation4], 32  }
 0x374   :  { %8106 = vsyncadd [#allocation4], 4294967264 }
 0x375   :  { %5437 = vsyncpa [#allocation4], 1 }

</bundles_post_ra>
